<compile_context>
chip_gen: v7x
topology: tpu7x:2x2x1
jax: 0.10.0
libtpu: 0.0.40
codegen_flags: <defaults>
</compile_context>

<pallas_src>
import jax
import jax.numpy as jnp
from jax.experimental import pallas as pl
from jax.experimental.pallas import tpu as pltpu

# Small, module-consistent shapes.
NUM_INPUTS = 32
HIDDEN = 512          # module hardcodes self.hidden = 512
NUM_ACTIONS = 4
NUM_ATOMS = 101       # module-level num_atoms = 101
ATOMS_PAD = 128       # lane-aligned atom dimension inside the kernel
OUT_W = NUM_ACTIONS * ATOMS_PAD   # lane-dense kernel output width (512)
NEG_MASK = -1e30      # softmax mask for padded atom lanes

BATCH = 16


def rainbow_kernel(x_ref,
                   w1, b1, w2, b2, w3, b3, w4, b4, w5, b5,
                   wh1, bh1, wv2, bv2, wa2, ba2,
                   out_ref):
    """RainbowDQN forward: trunk + fused dueling heads + per-action softmax."""
    f32 = jnp.float32
    bf16 = jnp.bfloat16

    def dense(h_bf16, w_ref, b_ref):
        # bf16 x bf16 MXU matmul, f32 accumulate, f32 bias add.
        return jnp.dot(h_bf16, w_ref[...], preferred_element_type=f32) + b_ref[...]

    def dense_relu(h_bf16, w_ref, b_ref):
        # Carry activations in bf16 between layers (weights are bf16 anyway).
        return jnp.maximum(dense(h_bf16, w_ref, b_ref), 0.0).astype(bf16)

    # Shared trunk: 5 x (Linear + ReLU). Single cast of the input to bf16.
    h = x_ref[...].astype(bf16)
    h = dense_relu(h, w1, b1)
    h = dense_relu(h, w2, b2)
    h = dense_relu(h, w3, b3)
    h = dense_relu(h, w4, b4)
    h = dense_relu(h, w5, b5)

    # Fused noisy_value1 | noisy_advantage1 hidden layer: (B, 2*HIDDEN).
    h2 = dense_relu(h, wh1, bh1)
    v_hidden = h2[:, :HIDDEN]        # lane-aligned slice (512 % 128 == 0)
    a_hidden = h2[:, HIDDEN:]

    # Output heads (padded to 128 atoms per action).
    # Value bias pad lanes carry NEG_MASK -> pad logits ~ -1e30 -> softmax 0.
    v = dense(v_hidden, wv2, bv2)            # (B, 128) f32
    adv = dense(a_hidden, wa2, ba2)          # (B, 4*128) f32, lane-aligned blocks

    # advantage.mean(dim=1) over actions via lane-aligned 128-wide slices.
    adv_mean = (adv[:, 0 * ATOMS_PAD:1 * ATOMS_PAD]
                + adv[:, 1 * ATOMS_PAD:2 * ATOMS_PAD]
                + adv[:, 2 * ATOMS_PAD:3 * ATOMS_PAD]
                + adv[:, 3 * ATOMS_PAD:4 * ATOMS_PAD]) * (1.0 / NUM_ACTIONS)

    vm = v - adv_mean
    for a in range(NUM_ACTIONS):
        logits = vm + adv[:, a * ATOMS_PAD:(a + 1) * ATOMS_PAD]
        m = jnp.max(logits, axis=-1, keepdims=True)
        e = jnp.exp(logits - m)                       # pad lanes underflow to 0
        s = jnp.sum(e, axis=-1, keepdims=True)
        p = e / s                                      # exact normalization
        out_ref[:, a * ATOMS_PAD:(a + 1) * ATOMS_PAD] = p.astype(out_ref.dtype)


def rainbow_forward(x, kparams, *, tile_b=None):
    """Pallas call; default is a single grid step over the whole batch."""
    batch = x.shape[0]
    if tile_b is None:
        tile_b = batch                     # whole batch in one step (grid=(1,))
    assert batch % tile_b == 0, "batch must be a multiple of the batch tile"
    num_tiles = batch // tile_b

    x_spec = pl.BlockSpec((tile_b, NUM_INPUTS), lambda i: (i, 0))
    # Constant block index -> Pallas keeps each weight resident across steps.
    weight_specs = [pl.BlockSpec(p.shape, lambda i: (0, 0)) for p in kparams]
    out_spec = pl.BlockSpec((tile_b, OUT_W), lambda i: (i, 0))

    out = pl.pallas_call(
        rainbow_kernel,
        out_shape=jax.ShapeDtypeStruct((batch, OUT_W), jnp.float32),
        grid=(num_tiles,),
        in_specs=[x_spec] + weight_specs,
        out_specs=out_spec,
        compiler_params=pltpu.CompilerParams(
            # Weight-DMA / latency bound at these shapes: do NOT megacore-shard
            # a tiny batch (that would duplicate the dominant weight DMA).
            dimension_semantics=("arbitrary",),
            vmem_limit_bytes=32 << 20),
    )(x, *kparams)

    # Lane-dense (batch, 4*128) -> (batch, 4, 101): drop the padded atoms.
    return out.reshape(batch, NUM_ACTIONS, ATOMS_PAD)[:, :, :NUM_ATOMS]


def init_params(key):
    """Deterministic synthetic parameters (PyTorch-Linear-like scaling), f32.

    Weights are (in, out); biases are (1, out). Noisy layers are represented
    by one effective (mu + sigma*eps) matrix each.
    """
    shapes = [
        (NUM_INPUTS, HIDDEN),                 # linear1
        (HIDDEN, HIDDEN),                     # linear2
        (HIDDEN, HIDDEN),                     # linear3
        (HIDDEN, HIDDEN),                     # linear4
        (HIDDEN, HIDDEN),                     # linear5
        (HIDDEN, HIDDEN),                     # noisy_value1
        (HIDDEN, NUM_ATOMS),                  # noisy_value2
        (HIDDEN, HIDDEN),                     # noisy_advantage1
        (HIDDEN, NUM_ATOMS * NUM_ACTIONS),    # noisy_advantage2
    ]
    params = []
    for shape in shapes:
        key, kw, kb = jax.random.split(key, 3)
        fan_in = shape[0]
        bound = 1.0 / (fan_in ** 0.5)
        w = jax.random.uniform(kw, shape, jnp.float32, -bound, bound)
        b = jax.random.uniform(kb, (1, shape[1]), jnp.float32, -bound, bound)
        params.append(w)
        params.append(b)
    return params


def prepare_kernel_params(params):
    """f32 reference params -> bf16, head-fused, atom-padded kernel params."""
    (w1, b1, w2, b2, w3, b3, w4, b4, w5, b5,
     wv1, bv1, wv2, bv2, wa1, ba1, wa2, ba2) = params
    bf16 = jnp.bfloat16
    pad = ATOMS_PAD - NUM_ATOMS

    # Fuse the two head hidden layers (same LHS): (512, 1024).
    wh1 = jnp.concatenate([wv1, wa1], axis=1).astype(bf16)
    bh1 = jnp.concatenate([bv1, ba1], axis=1)

    # Value output head padded 101 -> 128; bake softmax mask into pad bias.
    wv2p = jnp.pad(wv2, ((0, 0), (0, pad))).astype(bf16)
    bv2p = jnp.pad(bv2, ((0, 0), (0, pad)), constant_values=NEG_MASK)

    # Advantage output head: pad each action's 101-atom block to 128.
    wa2p = jnp.pad(wa2.reshape(HIDDEN, NUM_ACTIONS, NUM_ATOMS),
                   ((0, 0), (0, 0), (0, pad))).reshape(HIDDEN, OUT_W).astype(bf16)
    ba2p = jnp.pad(ba2.reshape(1, NUM_ACTIONS, NUM_ATOMS),
                   ((0, 0), (0, 0), (0, pad))).reshape(1, OUT_W)

    return (w1.astype(bf16), b1, w2.astype(bf16), b2, w3.astype(bf16), b3,
            w4.astype(bf16), b4, w5.astype(bf16), b5,
            wh1, bh1, wv2p, bv2p, wa2p, ba2p)


def reference_forward(x, params):
    """Pure-JAX f32 reference mirroring the PyTorch forward."""
    (w1, b1, w2, b2, w3, b3, w4, b4, w5, b5,
     wv1, bv1, wv2, bv2, wa1, ba1, wa2, ba2) = params
    h = x
    for w, b in ((w1, b1), (w2, b2), (w3, b3), (w4, b4), (w5, b5)):
        h = jax.nn.relu(h @ w + b)
    value = jax.nn.relu(h @ wv1 + bv1) @ wv2 + bv2
    adv = jax.nn.relu(h @ wa1 + ba1) @ wa2 + ba2
    value = value.reshape(x.shape[0], 1, NUM_ATOMS)
    adv = adv.reshape(x.shape[0], NUM_ACTIONS, NUM_ATOMS)
    logits = value + adv - adv.mean(axis=1, keepdims=True)
    return jax.nn.softmax(logits, axis=-1)


def reference_forward_bf16(x, params):
    """Pure-JAX reference with the same bf16-weight/activation precision."""
    (w1, b1, w2, b2, w3, b3, w4, b4, w5, b5,
     wv1, bv1, wv2, bv2, wa1, ba1, wa2, ba2) = params
    bf16 = jnp.bfloat16

    def dense(h, w, b):
        return jnp.dot(h.astype(bf16), w.astype(bf16),
                       preferred_element_type=jnp.float32) + b

    h = x
    for w, b in ((w1, b1), (w2, b2), (w3, b3), (w4, b4), (w5, b5)):
        h = jax.nn.relu(dense(h, w, b)).astype(bf16)
    value = dense(jax.nn.relu(dense(h, wv1, bv1)).astype(bf16), wv2, bv2)
    adv = dense(jax.nn.relu(dense(h, wa1, ba1)).astype(bf16), wa2, ba2)
    value = value.reshape(x.shape[0], 1, NUM_ATOMS)
    adv = adv.reshape(x.shape[0], NUM_ACTIONS, NUM_ATOMS)
    logits = value + adv - adv.mean(axis=1, keepdims=True)
    return jax.nn.softmax(logits.astype(jnp.float32), axis=-1)


if __name__ == "__main__":
    key = jax.random.PRNGKey(0)
    key, kx = jax.random.split(key)
    x = jax.random.normal(kx, (BATCH, NUM_INPUTS), jnp.float32)
    params = init_params(key)
    kparams = prepare_kernel_params(params)

    out = rainbow_forward(x, kparams)
    out = jax.block_until_ready(out)

    ref_f32 = reference_forward(x, params)
    ref_bf16 = reference_forward_bf16(x, params)

    assert out.shape == (BATCH, NUM_ACTIONS, NUM_ATOMS)
    # Precision-matched (bf16 weights/activations) reference.
    assert jnp.allclose(out, ref_bf16, atol=2e-3), \
        float(jnp.max(jnp.abs(out - ref_bf16)))
    # Loose check against the full-f32 reference (bf16 quantization slack).
    assert jnp.allclose(out, ref_f32, atol=2e-2)
    # Each action's distribution sums to 1 (exact softmax normalization).
    assert jnp.allclose(out.sum(-1), jnp.ones((BATCH, NUM_ACTIONS)), atol=1e-3)

    print("KERNEL_OK")
</pallas_src>

<mosaic_0001>
module attributes {stable_mosaic.version = 11 : i64} {
  func.func @rainbow_kernel(%arg0: i32, %arg1: memref<16x32xf32, #tpu.memory_space<vmem>>, %arg2: memref<32x512xbf16, #tpu.memory_space<vmem>>, %arg3: memref<1x512xf32, #tpu.memory_space<vmem>>, %arg4: memref<512x512xbf16, #tpu.memory_space<vmem>>, %arg5: memref<1x512xf32, #tpu.memory_space<vmem>>, %arg6: memref<512x512xbf16, #tpu.memory_space<vmem>>, %arg7: memref<1x512xf32, #tpu.memory_space<vmem>>, %arg8: memref<512x512xbf16, #tpu.memory_space<vmem>>, %arg9: memref<1x512xf32, #tpu.memory_space<vmem>>, %arg10: memref<512x512xbf16, #tpu.memory_space<vmem>>, %arg11: memref<1x512xf32, #tpu.memory_space<vmem>>, %arg12: memref<512x1024xbf16, #tpu.memory_space<vmem>>, %arg13: memref<1x1024xf32, #tpu.memory_space<vmem>>, %arg14: memref<512x128xbf16, #tpu.memory_space<vmem>>, %arg15: memref<1x128xf32, #tpu.memory_space<vmem>>, %arg16: memref<512x512xbf16, #tpu.memory_space<vmem>>, %arg17: memref<1x512xf32, #tpu.memory_space<vmem>>, %arg18: memref<16x512xf32, #tpu.memory_space<vmem>>) attributes {dimension_semantics = [#tpu.dimension_semantics<arbitrary>], iteration_bounds = array<i64: 1>, scalar_prefetch = 0 : i64, scratch_operands = 0 : i64, tpu.core_type = #tpu.core_type<tc>, window_params = [{transform_indices = @transform_0, window_bounds = array<i64: 16, 32>}, {pipeline_mode = #tpu.pipeline_mode<synchronous>, transform_indices = @transform_1, window_bounds = array<i64: 32, 512>}, {pipeline_mode = #tpu.pipeline_mode<synchronous>, transform_indices = @transform_2, window_bounds = array<i64: 1, 512>}, {pipeline_mode = #tpu.pipeline_mode<synchronous>, transform_indices = @transform_3, window_bounds = array<i64: 512, 512>}, {pipeline_mode = #tpu.pipeline_mode<synchronous>, transform_indices = @transform_4, window_bounds = array<i64: 1, 512>}, {pipeline_mode = #tpu.pipeline_mode<synchronous>, transform_indices = @transform_5, window_bounds = array<i64: 512, 512>}, {pipeline_mode = #tpu.pipeline_mode<synchronous>, transform_indices = @transform_6, window_bounds = array<i64: 1, 512>}, {pipeline_mode = #tpu.pipeline_mode<synchronous>, transform_indices = @transform_7, window_bounds = array<i64: 512, 512>}, {pipeline_mode = #tpu.pipeline_mode<synchronous>, transform_indices = @transform_8, window_bounds = array<i64: 1, 512>}, {pipeline_mode = #tpu.pipeline_mode<synchronous>, transform_indices = @transform_9, window_bounds = array<i64: 512, 512>}, {pipeline_mode = #tpu.pipeline_mode<synchronous>, transform_indices = @transform_10, window_bounds = array<i64: 1, 512>}, {pipeline_mode = #tpu.pipeline_mode<synchronous>, transform_indices = @transform_11, window_bounds = array<i64: 512, 1024>}, {pipeline_mode = #tpu.pipeline_mode<synchronous>, transform_indices = @transform_12, window_bounds = array<i64: 1, 1024>}, {pipeline_mode = #tpu.pipeline_mode<synchronous>, transform_indices = @transform_13, window_bounds = array<i64: 512, 128>}, {pipeline_mode = #tpu.pipeline_mode<synchronous>, transform_indices = @transform_14, window_bounds = array<i64: 1, 128>}, {pipeline_mode = #tpu.pipeline_mode<synchronous>, transform_indices = @transform_15, window_bounds = array<i64: 512, 512>}, {pipeline_mode = #tpu.pipeline_mode<synchronous>, transform_indices = @transform_16, window_bounds = array<i64: 1, 512>}, {transform_indices = @transform_17, window_bounds = array<i64: 16, 512>}]} {
    %c0 = arith.constant 0 : index
    %c0_0 = arith.constant 0 : index
    %0 = vector.load %arg1[%c0, %c0_0] : memref<16x32xf32, #tpu.memory_space<vmem>>, vector<16x32xf32>
    %1 = arith.truncf %0 : vector<16x32xf32> to vector<16x32xbf16>
    %c0_1 = arith.constant 0 : index
    %c0_2 = arith.constant 0 : index
    %2 = vector.load %arg2[%c0_1, %c0_2] : memref<32x512xbf16, #tpu.memory_space<vmem>>, vector<32x512xbf16>
    %cst = arith.constant dense<0.000000e+00> : vector<16x512xf32>
    %3 = tpu.matmul %1, %2, %cst {dimension_numbers = #tpu.dot_dimension_numbers<[1], [0], [0], [1], [0, 0, 1, 1], [], []>} : vector<16x32xbf16>, vector<32x512xbf16>, vector<16x512xf32> -> vector<16x512xf32>
    %c0_3 = arith.constant 0 : index
    %c0_4 = arith.constant 0 : index
    %4 = vector.load %arg3[%c0_3, %c0_4] : memref<1x512xf32, #tpu.memory_space<vmem>>, vector<1x512xf32>
    %5 = vector.broadcast %4 : vector<1x512xf32> to vector<16x512xf32>
    %6 = arith.addf %3, %5 : vector<16x512xf32>
    %cst_5 = arith.constant 0.000000e+00 : f32
    %7 = vector.broadcast %cst_5 : f32 to vector<16x512xf32>
    %8 = arith.maximumf %6, %7 : vector<16x512xf32>
    %9 = arith.truncf %8 : vector<16x512xf32> to vector<16x512xbf16>
    %c0_6 = arith.constant 0 : index
    %c0_7 = arith.constant 0 : index
    %10 = vector.load %arg4[%c0_6, %c0_7] : memref<512x512xbf16, #tpu.memory_space<vmem>>, vector<512x512xbf16>
    %cst_8 = arith.constant dense<0.000000e+00> : vector<16x512xf32>
    %11 = tpu.matmul %9, %10, %cst_8 {dimension_numbers = #tpu.dot_dimension_numbers<[1], [0], [0], [1], [0, 0, 1, 1], [], []>} : vector<16x512xbf16>, vector<512x512xbf16>, vector<16x512xf32> -> vector<16x512xf32>
    %c0_9 = arith.constant 0 : index
    %c0_10 = arith.constant 0 : index
    %12 = vector.load %arg5[%c0_9, %c0_10] : memref<1x512xf32, #tpu.memory_space<vmem>>, vector<1x512xf32>
    %13 = vector.broadcast %12 : vector<1x512xf32> to vector<16x512xf32>
    %14 = arith.addf %11, %13 : vector<16x512xf32>
    %cst_11 = arith.constant 0.000000e+00 : f32
    %15 = vector.broadcast %cst_11 : f32 to vector<16x512xf32>
    %16 = arith.maximumf %14, %15 : vector<16x512xf32>
    %17 = arith.truncf %16 : vector<16x512xf32> to vector<16x512xbf16>
    %c0_12 = arith.constant 0 : index
    %c0_13 = arith.constant 0 : index
    %18 = vector.load %arg6[%c0_12, %c0_13] : memref<512x512xbf16, #tpu.memory_space<vmem>>, vector<512x512xbf16>
    %cst_14 = arith.constant dense<0.000000e+00> : vector<16x512xf32>
    %19 = tpu.matmul %17, %18, %cst_14 {dimension_numbers = #tpu.dot_dimension_numbers<[1], [0], [0], [1], [0, 0, 1, 1], [], []>} : vector<16x512xbf16>, vector<512x512xbf16>, vector<16x512xf32> -> vector<16x512xf32>
    %c0_15 = arith.constant 0 : index
    %c0_16 = arith.constant 0 : index
    %20 = vector.load %arg7[%c0_15, %c0_16] : memref<1x512xf32, #tpu.memory_space<vmem>>, vector<1x512xf32>
    %21 = vector.broadcast %20 : vector<1x512xf32> to vector<16x512xf32>
    %22 = arith.addf %19, %21 : vector<16x512xf32>
    %cst_17 = arith.constant 0.000000e+00 : f32
    %23 = vector.broadcast %cst_17 : f32 to vector<16x512xf32>
    %24 = arith.maximumf %22, %23 : vector<16x512xf32>
    %25 = arith.truncf %24 : vector<16x512xf32> to vector<16x512xbf16>
    %c0_18 = arith.constant 0 : index
    %c0_19 = arith.constant 0 : index
    %26 = vector.load %arg8[%c0_18, %c0_19] : memref<512x512xbf16, #tpu.memory_space<vmem>>, vector<512x512xbf16>
    %cst_20 = arith.constant dense<0.000000e+00> : vector<16x512xf32>
    %27 = tpu.matmul %25, %26, %cst_20 {dimension_numbers = #tpu.dot_dimension_numbers<[1], [0], [0], [1], [0, 0, 1, 1], [], []>} : vector<16x512xbf16>, vector<512x512xbf16>, vector<16x512xf32> -> vector<16x512xf32>
    %c0_21 = arith.constant 0 : index
    %c0_22 = arith.constant 0 : index
    %28 = vector.load %arg9[%c0_21, %c0_22] : memref<1x512xf32, #tpu.memory_space<vmem>>, vector<1x512xf32>
    %29 = vector.broadcast %28 : vector<1x512xf32> to vector<16x512xf32>
    %30 = arith.addf %27, %29 : vector<16x512xf32>
    %cst_23 = arith.constant 0.000000e+00 : f32
    %31 = vector.broadcast %cst_23 : f32 to vector<16x512xf32>
    %32 = arith.maximumf %30, %31 : vector<16x512xf32>
    %33 = arith.truncf %32 : vector<16x512xf32> to vector<16x512xbf16>
    %c0_24 = arith.constant 0 : index
    %c0_25 = arith.constant 0 : index
    %34 = vector.load %arg10[%c0_24, %c0_25] : memref<512x512xbf16, #tpu.memory_space<vmem>>, vector<512x512xbf16>
    %cst_26 = arith.constant dense<0.000000e+00> : vector<16x512xf32>
    %35 = tpu.matmul %33, %34, %cst_26 {dimension_numbers = #tpu.dot_dimension_numbers<[1], [0], [0], [1], [0, 0, 1, 1], [], []>} : vector<16x512xbf16>, vector<512x512xbf16>, vector<16x512xf32> -> vector<16x512xf32>
    %c0_27 = arith.constant 0 : index
    %c0_28 = arith.constant 0 : index
    %36 = vector.load %arg11[%c0_27, %c0_28] : memref<1x512xf32, #tpu.memory_space<vmem>>, vector<1x512xf32>
    %37 = vector.broadcast %36 : vector<1x512xf32> to vector<16x512xf32>
    %38 = arith.addf %35, %37 : vector<16x512xf32>
    %cst_29 = arith.constant 0.000000e+00 : f32
    %39 = vector.broadcast %cst_29 : f32 to vector<16x512xf32>
    %40 = arith.maximumf %38, %39 : vector<16x512xf32>
    %41 = arith.truncf %40 : vector<16x512xf32> to vector<16x512xbf16>
    %c0_30 = arith.constant 0 : index
    %c0_31 = arith.constant 0 : index
    %42 = vector.load %arg12[%c0_30, %c0_31] : memref<512x1024xbf16, #tpu.memory_space<vmem>>, vector<512x1024xbf16>
    %cst_32 = arith.constant dense<0.000000e+00> : vector<16x1024xf32>
    %43 = tpu.matmul %41, %42, %cst_32 {dimension_numbers = #tpu.dot_dimension_numbers<[1], [0], [0], [1], [0, 0, 1, 1], [], []>} : vector<16x512xbf16>, vector<512x1024xbf16>, vector<16x1024xf32> -> vector<16x1024xf32>
    %c0_33 = arith.constant 0 : index
    %c0_34 = arith.constant 0 : index
    %44 = vector.load %arg13[%c0_33, %c0_34] : memref<1x1024xf32, #tpu.memory_space<vmem>>, vector<1x1024xf32>
    %45 = vector.broadcast %44 : vector<1x1024xf32> to vector<16x1024xf32>
    %46 = arith.addf %43, %45 : vector<16x1024xf32>
    %cst_35 = arith.constant 0.000000e+00 : f32
    %47 = vector.broadcast %cst_35 : f32 to vector<16x1024xf32>
    %48 = arith.maximumf %46, %47 : vector<16x1024xf32>
    %49 = arith.truncf %48 : vector<16x1024xf32> to vector<16x1024xbf16>
    %50 = vector.extract_strided_slice %49 {offsets = [0, 0], sizes = [16, 512], strides = [1, 1]} : vector<16x1024xbf16> to vector<16x512xbf16>
    %51 = vector.extract_strided_slice %49 {offsets = [0, 512], sizes = [16, 512], strides = [1, 1]} : vector<16x1024xbf16> to vector<16x512xbf16>
    %c0_36 = arith.constant 0 : index
    %c0_37 = arith.constant 0 : index
    %52 = vector.load %arg14[%c0_36, %c0_37] : memref<512x128xbf16, #tpu.memory_space<vmem>>, vector<512x128xbf16>
    %cst_38 = arith.constant dense<0.000000e+00> : vector<16x128xf32>
    %53 = tpu.matmul %50, %52, %cst_38 {dimension_numbers = #tpu.dot_dimension_numbers<[1], [0], [0], [1], [0, 0, 1, 1], [], []>} : vector<16x512xbf16>, vector<512x128xbf16>, vector<16x128xf32> -> vector<16x128xf32>
    %c0_39 = arith.constant 0 : index
    %c0_40 = arith.constant 0 : index
    %54 = vector.load %arg15[%c0_39, %c0_40] : memref<1x128xf32, #tpu.memory_space<vmem>>, vector<1x128xf32>
    %55 = vector.broadcast %54 : vector<1x128xf32> to vector<16x128xf32>
    %56 = arith.addf %53, %55 : vector<16x128xf32>
    %c0_41 = arith.constant 0 : index
    %c0_42 = arith.constant 0 : index
    %57 = vector.load %arg16[%c0_41, %c0_42] : memref<512x512xbf16, #tpu.memory_space<vmem>>, vector<512x512xbf16>
    %cst_43 = arith.constant dense<0.000000e+00> : vector<16x512xf32>
    %58 = tpu.matmul %51, %57, %cst_43 {dimension_numbers = #tpu.dot_dimension_numbers<[1], [0], [0], [1], [0, 0, 1, 1], [], []>} : vector<16x512xbf16>, vector<512x512xbf16>, vector<16x512xf32> -> vector<16x512xf32>
    %c0_44 = arith.constant 0 : index
    %c0_45 = arith.constant 0 : index
    %59 = vector.load %arg17[%c0_44, %c0_45] : memref<1x512xf32, #tpu.memory_space<vmem>>, vector<1x512xf32>
    %60 = vector.broadcast %59 : vector<1x512xf32> to vector<16x512xf32>
    %61 = arith.addf %58, %60 : vector<16x512xf32>
    %62 = vector.extract_strided_slice %61 {offsets = [0, 0], sizes = [16, 128], strides = [1, 1]} : vector<16x512xf32> to vector<16x128xf32>
    %63 = vector.extract_strided_slice %61 {offsets = [0, 128], sizes = [16, 128], strides = [1, 1]} : vector<16x512xf32> to vector<16x128xf32>
    %64 = arith.addf %62, %63 : vector<16x128xf32>
    %65 = vector.extract_strided_slice %61 {offsets = [0, 256], sizes = [16, 128], strides = [1, 1]} : vector<16x512xf32> to vector<16x128xf32>
    %66 = arith.addf %64, %65 : vector<16x128xf32>
    %67 = vector.extract_strided_slice %61 {offsets = [0, 384], sizes = [16, 128], strides = [1, 1]} : vector<16x512xf32> to vector<16x128xf32>
    %68 = arith.addf %66, %67 : vector<16x128xf32>
    %cst_46 = arith.constant 2.500000e-01 : f32
    %69 = vector.broadcast %cst_46 : f32 to vector<16x128xf32>
    %70 = arith.mulf %68, %69 : vector<16x128xf32>
    %71 = arith.subf %56, %70 : vector<16x128xf32>
    %72 = vector.extract_strided_slice %61 {offsets = [0, 0], sizes = [16, 128], strides = [1, 1]} : vector<16x512xf32> to vector<16x128xf32>
    %73 = arith.addf %71, %72 : vector<16x128xf32>
    %cst_47 = arith.constant dense<0xFF800000> : vector<16xf32>
    %74 = vector.multi_reduction <maximumf>, %73, %cst_47 [1] : vector<16x128xf32> to vector<16xf32>
    %75 = vector.shape_cast %74 : vector<16xf32> to vector<16x1xf32>
    %76 = vector.broadcast %75 : vector<16x1xf32> to vector<16x128xf32>
    %77 = arith.subf %73, %76 : vector<16x128xf32>
    %78 = math.exp %77 : vector<16x128xf32>
    %cst_48 = arith.constant dense<0.000000e+00> : vector<16xf32>
    %79 = vector.multi_reduction <add>, %78, %cst_48 [1] : vector<16x128xf32> to vector<16xf32>
    %80 = vector.shape_cast %79 : vector<16xf32> to vector<16x1xf32>
    %81 = vector.broadcast %80 : vector<16x1xf32> to vector<16x128xf32>
    %82 = arith.divf %78, %81 : vector<16x128xf32>
    %c0_49 = arith.constant 0 : index
    %c0_50 = arith.constant 0 : index
    %83 = vector.load %arg18[%c0_49, %c0_50] : memref<16x512xf32, #tpu.memory_space<vmem>>, vector<16x128xf32>
    tpu.vector_store %arg18[%c0_49, %c0_50], %82 {strides = array<i32>} : memref<16x512xf32, #tpu.memory_space<vmem>>, vector<16x128xf32>,
    %84 = vector.extract_strided_slice %61 {offsets = [0, 128], sizes = [16, 128], strides = [1, 1]} : vector<16x512xf32> to vector<16x128xf32>
    %85 = arith.addf %71, %84 : vector<16x128xf32>
    %cst_51 = arith.constant dense<0xFF800000> : vector<16xf32>
    %86 = vector.multi_reduction <maximumf>, %85, %cst_51 [1] : vector<16x128xf32> to vector<16xf32>
    %87 = vector.shape_cast %86 : vector<16xf32> to vector<16x1xf32>
    %88 = vector.broadcast %87 : vector<16x1xf32> to vector<16x128xf32>
    %89 = arith.subf %85, %88 : vector<16x128xf32>
    %90 = math.exp %89 : vector<16x128xf32>
    %cst_52 = arith.constant dense<0.000000e+00> : vector<16xf32>
    %91 = vector.multi_reduction <add>, %90, %cst_52 [1] : vector<16x128xf32> to vector<16xf32>
    %92 = vector.shape_cast %91 : vector<16xf32> to vector<16x1xf32>
    %93 = vector.broadcast %92 : vector<16x1xf32> to vector<16x128xf32>
    %94 = arith.divf %90, %93 : vector<16x128xf32>
    %c0_53 = arith.constant 0 : index
    %c128 = arith.constant 128 : index
    %95 = vector.load %arg18[%c0_53, %c128] : memref<16x512xf32, #tpu.memory_space<vmem>>, vector<16x128xf32>
    tpu.vector_store %arg18[%c0_53, %c128], %94 {strides = array<i32>} : memref<16x512xf32, #tpu.memory_space<vmem>>, vector<16x128xf32>,
    %96 = vector.extract_strided_slice %61 {offsets = [0, 256], sizes = [16, 128], strides = [1, 1]} : vector<16x512xf32> to vector<16x128xf32>
    %97 = arith.addf %71, %96 : vector<16x128xf32>
    %cst_54 = arith.constant dense<0xFF800000> : vector<16xf32>
    %98 = vector.multi_reduction <maximumf>, %97, %cst_54 [1] : vector<16x128xf32> to vector<16xf32>
    %99 = vector.shape_cast %98 : vector<16xf32> to vector<16x1xf32>
    %100 = vector.broadcast %99 : vector<16x1xf32> to vector<16x128xf32>
    %101 = arith.subf %97, %100 : vector<16x128xf32>
    %102 = math.exp %101 : vector<16x128xf32>
    %cst_55 = arith.constant dense<0.000000e+00> : vector<16xf32>
    %103 = vector.multi_reduction <add>, %102, %cst_55 [1] : vector<16x128xf32> to vector<16xf32>
    %104 = vector.shape_cast %103 : vector<16xf32> to vector<16x1xf32>
    %105 = vector.broadcast %104 : vector<16x1xf32> to vector<16x128xf32>
    %106 = arith.divf %102, %105 : vector<16x128xf32>
    %c0_56 = arith.constant 0 : index
    %c256 = arith.constant 256 : index
    %107 = vector.load %arg18[%c0_56, %c256] : memref<16x512xf32, #tpu.memory_space<vmem>>, vector<16x128xf32>
    tpu.vector_store %arg18[%c0_56, %c256], %106 {strides = array<i32>} : memref<16x512xf32, #tpu.memory_space<vmem>>, vector<16x128xf32>,
    %108 = vector.extract_strided_slice %61 {offsets = [0, 384], sizes = [16, 128], strides = [1, 1]} : vector<16x512xf32> to vector<16x128xf32>
    %109 = arith.addf %71, %108 : vector<16x128xf32>
    %cst_57 = arith.constant dense<0xFF800000> : vector<16xf32>
    %110 = vector.multi_reduction <maximumf>, %109, %cst_57 [1] : vector<16x128xf32> to vector<16xf32>
    %111 = vector.shape_cast %110 : vector<16xf32> to vector<16x1xf32>
    %112 = vector.broadcast %111 : vector<16x1xf32> to vector<16x128xf32>
    %113 = arith.subf %109, %112 : vector<16x128xf32>
    %114 = math.exp %113 : vector<16x128xf32>
    %cst_58 = arith.constant dense<0.000000e+00> : vector<16xf32>
    %115 = vector.multi_reduction <add>, %114, %cst_58 [1] : vector<16x128xf32> to vector<16xf32>
    %116 = vector.shape_cast %115 : vector<16xf32> to vector<16x1xf32>
    %117 = vector.broadcast %116 : vector<16x1xf32> to vector<16x128xf32>
    %118 = arith.divf %114, %117 : vector<16x128xf32>
    %c0_59 = arith.constant 0 : index
    %c384 = arith.constant 384 : index
    %119 = vector.load %arg18[%c0_59, %c384] : memref<16x512xf32, #tpu.memory_space<vmem>>, vector<16x128xf32>
    tpu.vector_store %arg18[%c0_59, %c384], %118 {strides = array<i32>} : memref<16x512xf32, #tpu.memory_space<vmem>>, vector<16x128xf32>,
    return
  }
  func.func @transform_0(%arg0: i32) -> (i32, i32) {
    %c0_i32 = arith.constant 0 : i32
    %c0_i32_0 = arith.constant 0 : i32
    return %arg0, %c0_i32 : i32, i32
  }
  func.func @transform_1(%arg0: i32) -> (i32, i32) {
    %c0_i32 = arith.constant 0 : i32
    %c0_i32_0 = arith.constant 0 : i32
    %c0_i32_1 = arith.constant 0 : i32
    return %c0_i32, %c0_i32_0 : i32, i32
  }
  func.func @transform_2(%arg0: i32) -> (i32, i32) {
    %c0_i32 = arith.constant 0 : i32
    %c0_i32_0 = arith.constant 0 : i32
    %c0_i32_1 = arith.constant 0 : i32
    return %c0_i32, %c0_i32_0 : i32, i32
  }
  func.func @transform_3(%arg0: i32) -> (i32, i32) {
    %c0_i32 = arith.constant 0 : i32
    %c0_i32_0 = arith.constant 0 : i32
    %c0_i32_1 = arith.constant 0 : i32
    return %c0_i32, %c0_i32_0 : i32, i32
  }
  func.func @transform_4(%arg0: i32) -> (i32, i32) {
    %c0_i32 = arith.constant 0 : i32
    %c0_i32_0 = arith.constant 0 : i32
    %c0_i32_1 = arith.constant 0 : i32
    return %c0_i32, %c0_i32_0 : i32, i32
  }
  func.func @transform_5(%arg0: i32) -> (i32, i32) {
    %c0_i32 = arith.constant 0 : i32
    %c0_i32_0 = arith.constant 0 : i32
    %c0_i32_1 = arith.constant 0 : i32
    return %c0_i32, %c0_i32_0 : i32, i32
  }
  func.func @transform_6(%arg0: i32) -> (i32, i32) {
    %c0_i32 = arith.constant 0 : i32
    %c0_i32_0 = arith.constant 0 : i32
    %c0_i32_1 = arith.constant 0 : i32
    return %c0_i32, %c0_i32_0 : i32, i32
  }
  func.func @transform_7(%arg0: i32) -> (i32, i32) {
    %c0_i32 = arith.constant 0 : i32
    %c0_i32_0 = arith.constant 0 : i32
    %c0_i32_1 = arith.constant 0 : i32
    return %c0_i32, %c0_i32_0 : i32, i32
  }
  func.func @transform_8(%arg0: i32) -> (i32, i32) {
    %c0_i32 = arith.constant 0 : i32
    %c0_i32_0 = arith.constant 0 : i32
    %c0_i32_1 = arith.constant 0 : i32
    return %c0_i32, %c0_i32_0 : i32, i32
  }
  func.func @transform_9(%arg0: i32) -> (i32, i32) {
    %c0_i32 = arith.constant 0 : i32
    %c0_i32_0 = arith.constant 0 : i32
    %c0_i32_1 = arith.constant 0 : i32
    return %c0_i32, %c0_i32_0 : i32, i32
  }
  func.func @transform_10(%arg0: i32) -> (i32, i32) {
    %c0_i32 = arith.constant 0 : i32
    %c0_i32_0 = arith.constant 0 : i32
    %c0_i32_1 = arith.constant 0 : i32
    return %c0_i32, %c0_i32_0 : i32, i32
  }
  func.func @transform_11(%arg0: i32) -> (i32, i32) {
    %c0_i32 = arith.constant 0 : i32
    %c0_i32_0 = arith.constant 0 : i32
    %c0_i32_1 = arith.constant 0 : i32
    return %c0_i32, %c0_i32_0 : i32, i32
  }
  func.func @transform_12(%arg0: i32) -> (i32, i32) {
    %c0_i32 = arith.constant 0 : i32
    %c0_i32_0 = arith.constant 0 : i32
    %c0_i32_1 = arith.constant 0 : i32
    return %c0_i32, %c0_i32_0 : i32, i32
  }
  func.func @transform_13(%arg0: i32) -> (i32, i32) {
    %c0_i32 = arith.constant 0 : i32
    %c0_i32_0 = arith.constant 0 : i32
    %c0_i32_1 = arith.constant 0 : i32
    return %c0_i32, %c0_i32_0 : i32, i32
  }
  func.func @transform_14(%arg0: i32) -> (i32, i32) {
    %c0_i32 = arith.constant 0 : i32
    %c0_i32_0 = arith.constant 0 : i32
    %c0_i32_1 = arith.constant 0 : i32
    return %c0_i32, %c0_i32_0 : i32, i32
  }
  func.func @transform_15(%arg0: i32) -> (i32, i32) {
    %c0_i32 = arith.constant 0 : i32
    %c0_i32_0 = arith.constant 0 : i32
    %c0_i32_1 = arith.constant 0 : i32
    return %c0_i32, %c0_i32_0 : i32, i32
  }
  func.func @transform_16(%arg0: i32) -> (i32, i32) {
    %c0_i32 = arith.constant 0 : i32
    %c0_i32_0 = arith.constant 0 : i32
    %c0_i32_1 = arith.constant 0 : i32
    return %c0_i32, %c0_i32_0 : i32, i32
  }
  func.func @transform_17(%arg0: i32) -> (i32, i32) {
    %c0_i32 = arith.constant 0 : i32
    %c0_i32_0 = arith.constant 0 : i32
    return %arg0, %c0_i32 : i32, i32
  }
}

</mosaic_0001>

<bundles_post_ra>
// kernel: tpu_custom_call.1
= control target key start
LH: loop header
LB: loop body
LE: loop exit
PB: predicated region body
PF: predicated region fallthrough
CT: control target
= control target key end

     0   :  { %s10432_s0 = inlined_call_operand.hbm [shape: f32[16,32], index: 0, kind: input, shape index: {}]   ;;  %s10433_s1 = inlined_call_operand.hbm [shape: bf16[32,512], index: 1, kind: input, shape index: {}]   ;;  %s10434_s2 = inlined_call_operand.vmem [shape: f32[1,512], index: 2, kind: input, shape index: {}]   ;;  %s10435_s3 = inlined_call_operand.hbm [shape: bf16[512,512], index: 3, kind: input, shape index: {}]   ;;  %s10436_s4 = inlined_call_operand.hbm [shape: f32[1,512], index: 4, kind: input, shape index: {}]   ;;  %s10437_s5 = inlined_call_operand.hbm [shape: bf16[512,512], index: 5, kind: input, shape index: {}]   ;;  %s10438_s6 = inlined_call_operand.vmem [shape: f32[1,512], index: 6, kind: input, shape index: {}]   ;;  %s10439_s7 = inlined_call_operand.hbm [shape: bf16[512,512], index: 7, kind: input, shape index: {}]   ;;  %s10440_s8 = inlined_call_operand.vmem [shape: f32[1,512], index: 8, kind: input, shape index: {}]   ;;  %s10441_s9 = inlined_call_operand.hbm [shape: bf16[512,512], index: 9, kind: input, shape index: {}]   ;;  %s10442_s10 = inlined_call_operand.vmem [shape: f32[1,512], index: 10, kind: input, shape index: {}]   ;;  %s10443_s11 = inlined_call_operand.hbm [shape: bf16[512,1024], index: 11, kind: input, shape index: {}]   ;;  %s10444_s12 = inlined_call_operand.vmem [shape: f32[1,1024], index: 12, kind: input, shape index: {}]   ;;  %s10445_s13 = inlined_call_operand.hbm [shape: bf16[512,128], index: 13, kind: input, shape index: {}]   ;;  %s10446_s14 = inlined_call_operand.vmem [shape: f32[1,128], index: 14, kind: input, shape index: {}]   ;;  %s10447_s15 = inlined_call_operand.hbm [shape: bf16[512,512], index: 15, kind: input, shape index: {}]   ;;  %s10448_s16 = inlined_call_operand.vmem [shape: f32[1,512], index: 16, kind: input, shape index: {}]   ;;  %s10449_s17 = inlined_call_operand.hbm [shape: f32[16,512], index: 17, kind: output, shape index: {}]  }
   0x1   :  { %10454 = sst [smem:[#allocation27_spill]] %s10432_s0 }
   0x2   :  { %10455 = sst [smem:[#allocation28_spill]] %s10433_s1 }
   0x3   :  { %10456 = sst [smem:[#allocation29_spill]] %s10448_s16 }
   0x4   :  { %10457 = sst [smem:[#allocation30_spill]] %s10449_s17 }
   0x5   :  { %22 = vsyncpa [#allocation3], 0 }
   0x6   :  { %23 = vsyncpa [#allocation6], 0 }
   0x7   :  { %24 = vsyncpa [#allocation9], 0 }
   0x8   :  { %25 = vsyncpa [#allocation12], 0 }
   0x9   :  { %26 = vsyncpa [#allocation15], 0 }
   0xa   :  { %27 = vsyncpa [#allocation18], 0 }
   0xb   :  { %28 = vsyncpa [#allocation4], 0  ;;  %s10043_s24 = smov [#allocation5]   ;;  %s10458_s28 = sld [smem:[#allocation28_spill]] }
   0xc   :  { %s46_s25 = sshll.u32 %s10043_s24, 4  ;;  %s47_s25 = int_to_ptr.vmem [resolvable:$true] %s46_s25 }
  0x11   :  { %s9787_s29 = scalar_lea.hbm %s10458_s28, 1024 }
  0x12   :  { %p9788_p0 = scmp.ne.s32.totalorder %s10458_s28, %s9787_s29  ;;  %p9791_p1 = scmp.lt.u32.totalorder %s9787_s29, %s10458_s28 }
  0x14   :  { %p9793_p2 = pnand %p9791_p1, %p9788_p0 }
  0x16   :  { %9796 = shalt.err (!%p9793_p2)
}
  0x17   :  { %s9797_s1 = scalar_lea.vmem %s47_s25, 1024  ;;  %p9802_p4 = scmp.lt.s32.totalorder %s47_s25, %s47_s25 }
  0x18   :  { %p9798_p3 = scmp.ne.s32.totalorder %s47_s25, %s9797_s1  ;;  %p9803_p5 = scmp.lt.s32.totalorder %s9797_s1, %s9797_s1 }
  0x1a   :  { %p9804_p6 = por %p9803_p5, %p9802_p4 }
  0x1c   :  { %p9805_p7 = pnand %p9804_p6, %p9798_p3 }
  0x1e   :  { %9808 = shalt.err (!%p9805_p7)
}
  0x1f   :  { %s10044_s20 = smov 256   ;;  %s10045_s21 = smov 16  }
  0x20   :  { %52 = dma.hbm_to_vmem [thread:$0]  %s10458_s28, 1024, %s47_s25, [#allocation6], %s10044_s20, %s10044_s20, %s10045_s21  }
  0x21   :  { %s10046_s24 = smov [#allocation8]   ;;  %s10047_s27 = smov [#allocation11]  }
  0x22   :  { %s73_s26 = sshll.u32 %s10046_s24, 4  ;;  %s96_s29 = sshll.u32 %s10047_s27, 4  ;;  %s74_s26 = int_to_ptr.vmem [resolvable:$true] %s73_s26  ;;  %s97_s29 = int_to_ptr.vmem [resolvable:$true] %s96_s29 }
  0x23   :  { %s9809_s18 = scalar_lea.hbm %s10436_s4, 64 }
  0x24   :  { %p9810_p8 = scmp.ne.s32.totalorder %s10436_s4, %s9809_s18  ;;  %p9813_p9 = scmp.lt.u32.totalorder %s9809_s18, %s10436_s4 }
  0x26   :  { %p9815_p10 = pnand %p9813_p9, %p9810_p8 }
  0x28   :  { %9818 = shalt.err (!%p9815_p10)
}
  0x29   :  { %s9819_s25 = scalar_lea.vmem %s74_s26, 64  ;;  %p9824_p12 = scmp.lt.s32.totalorder %s74_s26, %s74_s26 }
  0x2a   :  { %p9820_p11 = scmp.ne.s32.totalorder %s74_s26, %s9819_s25  ;;  %p9825_p13 = scmp.lt.s32.totalorder %s9819_s25, %s9819_s25 }
  0x2c   :  { %p9826_p0 = por %p9825_p13, %p9824_p12 }
  0x2e   :  { %p9827_p1 = pnand %p9826_p0, %p9820_p11 }
  0x30   :  { %9830 = shalt.err (!%p9827_p1)
}
  0x31   :  { %76 = dma.hbm_to_vmem [thread:$0]  %s10436_s4, 64, %s74_s26, [#allocation9]  }
  0x32   :  { %s9831_s27 = scalar_lea.hbm %s10439_s7, 16384 }
  0x33   :  { %p9832_p2 = scmp.ne.s32.totalorder %s10439_s7, %s9831_s27  ;;  %p9835_p3 = scmp.lt.u32.totalorder %s9831_s27, %s10439_s7 }
  0x35   :  { %p9837_p4 = pnand %p9835_p3, %p9832_p2 }
  0x37   :  { %9840 = shalt.err (!%p9837_p4)
}
  0x38   :  { %s9841_s18 = scalar_lea.vmem %s97_s29, 16384  ;;  %p9846_p6 = scmp.lt.s32.totalorder %s97_s29, %s97_s29 }
  0x39   :  { %p9842_p5 = scmp.ne.s32.totalorder %s97_s29, %s9841_s18  ;;  %p9847_p7 = scmp.lt.s32.totalorder %s9841_s18, %s9841_s18 }
  0x3b   :  { %p9848_p8 = por %p9847_p7, %p9846_p6 }
  0x3d   :  { %p9849_p9 = pnand %p9848_p8, %p9842_p5 }
  0x3f   :  { %9852 = shalt.err (!%p9849_p9)
}
  0x40   :  { %102 = dma.hbm_to_vmem [thread:$0]  %s10439_s7, 16384, %s97_s29, [#allocation12], %s10044_s20, %s10044_s20, %s10045_s21  }
  0x41   :  { %s10048_s19 = smov [#allocation14]   ;;  %s9853_s22 = scalar_lea.hbm %s10443_s11, 32768 }
  0x42   :  { %s124_s1 = sshll.u32 %s10048_s19, 4  ;;  %p9854_p10 = scmp.ne.s32.totalorder %s10443_s11, %s9853_s22  ;;  %s125_s1 = int_to_ptr.vmem [resolvable:$true] %s124_s1 }
  0x43   :  { %p9857_p11 = scmp.lt.u32.totalorder %s9853_s22, %s10443_s11 }
  0x45   :  { %p9859_p12 = pnand %p9857_p11, %p9854_p10 }
  0x47   :  { %9862 = shalt.err (!%p9859_p12)
}
  0x48   :  { %s9863_s17 = scalar_lea.vmem %s125_s1, 32768  ;;  %p9868_p0 = scmp.lt.s32.totalorder %s125_s1, %s125_s1 }
  0x49   :  { %p9864_p13 = scmp.ne.s32.totalorder %s125_s1, %s9863_s17  ;;  %p9869_p1 = scmp.lt.s32.totalorder %s9863_s17, %s9863_s17 }
  0x4b   :  { %p9870_p2 = por %p9869_p1, %p9868_p0 }
  0x4d   :  { %p9871_p3 = pnand %p9870_p2, %p9864_p13 }
  0x4f   :  { %9874 = shalt.err (!%p9871_p3)
}
  0x50   :  { %s10453_s7 = smov 512   ;;  %s10050_s29 = smov 32  }
  0x51   :  { %130 = dma.hbm_to_vmem [thread:$0]  %s10443_s11, 32768, %s125_s1, [#allocation15], %s10453_s7, %s10453_s7, %s10050_s29  }
  0x52   :  { %s10051_s18 = smov [#allocation2]   ;;  %s10459_s25 = sld [smem:[#allocation27_spill]] }
  0x53   :  { %s34_s4 = sshll.u32 %s10051_s18, 4  ;;  %s35_s4 = int_to_ptr.vmem [resolvable:$true] %s34_s4 }
  0x58   :  { %s9875_s28 = scalar_lea.hbm %s10459_s25, 256 }
  0x59   :  { %p9876_p4 = scmp.ne.s32.totalorder %s10459_s25, %s9875_s28  ;;  %p9879_p5 = scmp.lt.u32.totalorder %s9875_s28, %s10459_s25 }
  0x5b   :  { %p9881_p6 = pnand %p9879_p5, %p9876_p4 }
  0x5d   :  { %9884 = shalt.err (!%p9881_p6)
}
  0x5e   :  { %s9885_s16 = scalar_lea.vmem %s35_s4, 256  ;;  %p9890_p8 = scmp.lt.s32.totalorder %s35_s4, %s35_s4 }
  0x5f   :  { %p9886_p7 = scmp.ne.s32.totalorder %s35_s4, %s9885_s16  ;;  %p9891_p9 = scmp.lt.s32.totalorder %s9885_s16, %s9885_s16 }
  0x61   :  { %p9892_p10 = por %p9891_p9, %p9890_p8 }
  0x63   :  { %p9893_p11 = pnand %p9892_p10, %p9886_p7 }
  0x65   :  { %9896 = shalt.err (!%p9893_p11)
}
  0x66   :  { %s10052_s11 = smov 128   ;;  %s10053_s1 = smov 8  }
  0x67   :  { %40 = dma.hbm_to_vmem [thread:$0]  %s10459_s25, 256, %s35_s4, [#allocation3], %s10052_s11, %s10052_s11, %s10053_s1  }
  0x68   :  { %s10054_s30 = smov [#allocation7]   ;;  %s10055_s26 = smov [#allocation10]  }
  0x69   :  { %s60_s18 = sshll.u32 %s10054_s30, 4  ;;  %s82_s19 = sshll.u32 %s10055_s26, 4  ;;  %s61_s18 = int_to_ptr.vmem [resolvable:$true] %s60_s18  ;;  %s83_s19 = int_to_ptr.vmem [resolvable:$true] %s82_s19 }
  0x6a   :  { %s9897_s23 = scalar_lea.hbm %s10435_s3, 16384 }
  0x6b   :  { %p9898_p12 = scmp.ne.s32.totalorder %s10435_s3, %s9897_s23  ;;  %p9901_p13 = scmp.lt.u32.totalorder %s9897_s23, %s10435_s3 }
  0x6d   :  { %p9903_p0 = pnand %p9901_p13, %p9898_p12 }
  0x6f   :  { %9906 = shalt.err (!%p9903_p0)
}
  0x70   :  { %s9907_s4 = scalar_lea.vmem %s61_s18, 16384  ;;  %p9912_p2 = scmp.lt.s32.totalorder %s61_s18, %s61_s18 }
  0x71   :  { %p9908_p1 = scmp.ne.s32.totalorder %s61_s18, %s9907_s4  ;;  %p9913_p3 = scmp.lt.s32.totalorder %s9907_s4, %s9907_s4 }
  0x73   :  { %p9914_p4 = por %p9913_p3, %p9912_p2 }
  0x75   :  { %p9915_p5 = pnand %p9914_p4, %p9908_p1 }
  0x77   :  { %9918 = shalt.err (!%p9915_p5)
}
  0x78   :  { %66 = dma.hbm_to_vmem [thread:$0]  %s10435_s3, 16384, %s61_s18, [#allocation6], %s10044_s20, %s10044_s20, %s10045_s21  }
  0x79   :  { %s9919_s17 = scalar_lea.hbm %s10437_s5, 16384 }
  0x7a   :  { %p9920_p6 = scmp.ne.s32.totalorder %s10437_s5, %s9919_s17  ;;  %p9923_p7 = scmp.lt.u32.totalorder %s9919_s17, %s10437_s5 }
  0x7c   :  { %p9925_p8 = pnand %p9923_p7, %p9920_p6 }
  0x7e   :  { %9928 = shalt.err (!%p9925_p8)
}
  0x7f   :  { %s9929_s22 = scalar_lea.vmem %s83_s19, 16384  ;;  %p9934_p10 = scmp.lt.s32.totalorder %s83_s19, %s83_s19 }
  0x80   :  { %p9930_p9 = scmp.ne.s32.totalorder %s83_s19, %s9929_s22  ;;  %p9935_p11 = scmp.lt.s32.totalorder %s9929_s22, %s9929_s22 }
  0x82   :  { %p9936_p12 = por %p9935_p11, %p9934_p10 }
  0x84   :  { %p9937_p13 = pnand %p9936_p12, %p9930_p9 }
  0x86   :  { %9940 = shalt.err (!%p9937_p13)
}
  0x87   :  { %88 = dma.hbm_to_vmem [thread:$0]  %s10437_s5, 16384, %s83_s19, [#allocation9], %s10044_s20, %s10044_s20, %s10045_s21  }
  0x88   :  { %s10056_s23 = smov [#allocation13]   ;;  %s10057_s27 = smov [#allocation16]  }
  0x89   :  { %s110_s24 = sshll.u32 %s10056_s23, 4  ;;  %s138_s16 = sshll.u32 %s10057_s27, 4  ;;  %s111_s24 = int_to_ptr.vmem [resolvable:$true] %s110_s24  ;;  %s139_s16 = int_to_ptr.vmem [resolvable:$true] %s138_s16 }
  0x8a   :  { %s9941_s11 = scalar_lea.hbm %s10441_s9, 16384 }
  0x8b   :  { %p9942_p0 = scmp.ne.s32.totalorder %s10441_s9, %s9941_s11  ;;  %p9945_p1 = scmp.lt.u32.totalorder %s9941_s11, %s10441_s9 }
  0x8d   :  { %p9947_p2 = pnand %p9945_p1, %p9942_p0 }
  0x8f   :  { %9950 = shalt.err (!%p9947_p2)
}
  0x90   :  { %s9951_s5 = scalar_lea.vmem %s111_s24, 16384  ;;  %p9956_p4 = scmp.lt.s32.totalorder %s111_s24, %s111_s24 }
  0x91   :  { %p9952_p3 = scmp.ne.s32.totalorder %s111_s24, %s9951_s5  ;;  %p9957_p5 = scmp.lt.s32.totalorder %s9951_s5, %s9951_s5 }
  0x93   :  { %p9958_p6 = por %p9957_p5, %p9956_p4 }
  0x95   :  { %p9959_p7 = pnand %p9958_p6, %p9952_p3 }
  0x97   :  { %9962 = shalt.err (!%p9959_p7)
}
  0x98   :  { %116 = dma.hbm_to_vmem [thread:$0]  %s10441_s9, 16384, %s111_s24, [#allocation12], %s10044_s20, %s10044_s20, %s10045_s21  }
  0x99   :  { %s9963_s22 = scalar_lea.hbm %s10445_s13, 4096 }
  0x9a   :  { %p9964_p8 = scmp.ne.s32.totalorder %s10445_s13, %s9963_s22  ;;  %p9967_p9 = scmp.lt.u32.totalorder %s9963_s22, %s10445_s13 }
  0x9c   :  { %p9969_p10 = pnand %p9967_p9, %p9964_p8 }
  0x9e   :  { %9972 = shalt.err (!%p9969_p10)
}
  0x9f   :  { %s9973_s4 = scalar_lea.vmem %s139_s16, 4096  ;;  %p9978_p12 = scmp.lt.s32.totalorder %s139_s16, %s139_s16 }
  0xa0   :  { %p9974_p11 = scmp.ne.s32.totalorder %s139_s16, %s9973_s4  ;;  %p9979_p13 = scmp.lt.s32.totalorder %s9973_s4, %s9973_s4 }
  0xa2   :  { %p9980_p0 = por %p9979_p13, %p9978_p12 }
  0xa4   :  { %p9981_p1 = pnand %p9980_p0, %p9974_p11 }
  0xa6   :  { %9984 = shalt.err (!%p9981_p1)
}
  0xa7   :  { %s10058_s9 = smov 64   ;;  %s10059_s24 = smov 4  }
  0xa8   :  { %144 = dma.hbm_to_vmem [thread:$0]  %s10445_s13, 4096, %s139_s16, [#allocation15], %s10058_s9, %s10058_s9, %s10059_s24  }
  0xa9   :  { %s10060_s1 = smov [#allocation17]   ;;  %s9985_s5 = scalar_lea.hbm %s10447_s15, 16384 }
  0xaa   :  { %s152_s7 = sshll.u32 %s10060_s1, 4  ;;  %p9986_p2 = scmp.ne.s32.totalorder %s10447_s15, %s9985_s5  ;;  %s153_s7 = int_to_ptr.vmem [resolvable:$true] %s152_s7 }
  0xab   :  { %p9989_p3 = scmp.lt.u32.totalorder %s9985_s5, %s10447_s15 }
  0xad   :  { %p9991_p4 = pnand %p9989_p3, %p9986_p2 }
  0xaf   :  { %9994 = shalt.err (!%p9991_p4)
}
  0xb0   :  { %s9995_s22 = scalar_lea.vmem %s153_s7, 16384  ;;  %p10000_p6 = scmp.lt.s32.totalorder %s153_s7, %s153_s7 }
  0xb1   :  { %p9996_p5 = scmp.ne.s32.totalorder %s153_s7, %s9995_s22  ;;  %p10001_p7 = scmp.lt.s32.totalorder %s9995_s22, %s9995_s22 }
  0xb3   :  { %p10002_p8 = por %p10001_p7, %p10000_p6 }
  0xb5   :  { %p10003_p9 = pnand %p10002_p8, %p9996_p5 }
  0xb7   :  { %10006 = shalt.err (!%p10003_p9)
}
  0xb8   :  { %158 = dma.hbm_to_vmem [thread:$0]  %s10447_s15, 16384, %s153_s7, [#allocation18], %s10044_s20, %s10044_s20, %s10045_s21  }
  0xb9   :  { %10029 = dma.done.wait [#allocation3], 256  }
  0xba   :  { %10030 = vsyncadd [#allocation3], 4294967040 }
  0xbb   :  { %10031 = dma.done.wait [#allocation6], 17408  }
  0xbc   :  { %10032 = vsyncadd [#allocation6], 4294949888 }
  0xbd   :  { %10033 = dma.done.wait [#allocation9], 16448  }
  0xbe   :  { %10034 = vsyncadd [#allocation9], 4294950848 }
  0xbf   :  { %10035 = dma.done.wait [#allocation12], 32768  }
  0xc0   :  { %10036 = vsyncadd [#allocation12], 4294934528 }
  0xc1   :  { %10037 = dma.done.wait [#allocation15], 36864  }
  0xc2   :  { %10038 = vsyncadd [#allocation15], 4294930432 }
  0xc3   :  { %10039 = dma.done.wait [#allocation18], 16384  }
  0xc4   :  { %10040 = vsyncadd [#allocation18], 4294950912  ;;  %v10061_v0 = vmov 0   ;;  %v8751_v1 = vld [vmem:[#allocation5 + $0x4] ss:$16 sps:$4 sm:$0xff]   ;;  %v193_v6 = vld [vmem:[#allocation2 + $0x8] sm:$0xff] }
  0xc5   :  { %301 = vmatprep.mubr.bf16.mxu0 %v10061_v0  ;;  %344 = vmatprep.mubr.bf16.mxu1 %v10061_v0  ;;  %v8753_v2 = vld [vmem:[#allocation5] ss:$16 sps:$4 sm:$0xff]   ;;  %v8754_v3 = vld [vmem:[#allocation5 + $0x24] ss:$16 sps:$4 sm:$0xff]   ;;  %v8757_v7 = vld [vmem:[#allocation5 + $0xc] ss:$16 sps:$4 sm:$0xff]  }
  0xc6   :  { %269 = vmatprep.subr.bf16.mxu0 %v8751_v1  ;;  %v8756_v4 = vld [vmem:[#allocation5 + $0x20] ss:$16 sps:$4 sm:$0xff]   ;;  %v8759_v8 = vld [vmem:[#allocation5 + $0x8] ss:$16 sps:$4 sm:$0xff]   ;;  %v8760_v9 = vld [vmem:[#allocation5 + $0x2c] ss:$16 sps:$4 sm:$0xff]   ;;  %312 = vmatprep.subr.bf16.mxu1 %v8757_v7 }
  0xc7   :  { %v192_v5 = vld [vmem:[#allocation2] sm:$0xff]  ;;  %270 = vmatpush1.bf16.msra.mxu0 %v8753_v2  ;;  %v8762_v10 = vld [vmem:[#allocation5 + $0x28] ss:$16 sps:$4 sm:$0xff]   ;;  %vm265_vm0 = vcmask 261120   ;;  %313 = vmatpush1.bf16.msra.mxu1 %v8759_v8  ;;  %v8768_v14 = vld [vmem:[#allocation7 + $0xc] ss:$16 sps:$4 sm:$0xff]  }
  0xc8   :  { %271 = vmatprep.subr.bf16.mxu0 %v8754_v3  ;;  %v194_v11 = vpack.c.bf16 %v193_v6, %v192_v5  ;;  %v8763_v12 = vld [vmem:[#allocation7] ss:$16 sps:$4 sm:$0xff]   ;;  %v8765_v13 = vld [vmem:[#allocation7 + $0x4] ss:$16 sps:$4 sm:$0xff]   ;;  %314 = vmatprep.subr.bf16.mxu1 %v8760_v9  ;;  %v8766_v16 = vld [vmem:[#allocation7 + $0x8] ss:$16 sps:$4 sm:$0xff]  }
  0xc9   :  { %v8771_v15 = vld [vmem:[#allocation7 + $0x24] ss:$16 sps:$4 sm:$0xff]   ;;  %v8769_v17 = vld [vmem:[#allocation7 + $0x20] ss:$16 sps:$4 sm:$0xff]   ;;  %v8774_v18 = vld [vmem:[#allocation7 + $0x2c] ss:$16 sps:$4 sm:$0xff]  }
  0xca   :  { %v8777_v19 = vld [vmem:[#allocation7 + $0x44] ss:$16 sps:$4 sm:$0xff]   ;;  %v8772_v20 = vld [vmem:[#allocation7 + $0x28] ss:$16 sps:$4 sm:$0xff]   ;;  %v8775_v21 = vld [vmem:[#allocation7 + $0x40] ss:$16 sps:$4 sm:$0xff]  }
  0xcb   :  { %272 = vmatpush1.bf16.msra.mxu0 %v8756_v4  ;;  %315 = vmatpush1.bf16.msra.mxu1 %v8762_v10  ;;  %v8780_v22 = vld [vmem:[#allocation7 + $0x4c] ss:$16 sps:$4 sm:$0xff]   ;;  %v8783_v23 = vld [vmem:[#allocation7 + $0x64] ss:$16 sps:$4 sm:$0xff]   ;;  %v8778_v24 = vld [vmem:[#allocation7 + $0x48] ss:$16 sps:$4 sm:$0xff]  }
  0xcc   :  { %1157 = vmatprep.subr.bf16.mxu0 %v8765_v13  ;;  %1243 = vmatprep.subr.bf16.mxu1 %v8768_v14  ;;  %v8781_v25 = vld [vmem:[#allocation7 + $0x60] ss:$16 sps:$4 sm:$0xff]   ;;  %v8786_v26 = vld [vmem:[#allocation7 + $0x6c] ss:$16 sps:$4 sm:$0xff]   ;;  %v8789_v27 = vld [vmem:[#allocation7 + $0x84] ss:$16 sps:$4 sm:$0xff]   ;;  %v205_v14 = vlaneseq }
  0xcd   :  { %v8784_v28 = vld [vmem:[#allocation7 + $0x68] ss:$16 sps:$4 sm:$0xff]   ;;  %v8787_v29 = vld [vmem:[#allocation7 + $0x80] ss:$16 sps:$4 sm:$0xff]   ;;  %v8792_v30 = vld [vmem:[#allocation7 + $0x8c] ss:$16 sps:$4 sm:$0xff]  }
  0xce   :  { %7644 = vmatmul.mubr.msk.bf16.vlgmr.msra.gmra.mrb[0].mxu0 %vm265_vm0, %v194_v11  ;;  %7645 = vmatmul.mubr.msk.bf16.vlgmr.msra.gmra.mrb[0].mxu1 %vm265_vm0, %v194_v11  ;;  %v8795_v31 = vld [vmem:[#allocation7 + $0xa4] ss:$16 sps:$4 sm:$0xff]   ;;  %v8790_v32 = vld [vmem:[#allocation7 + $0x88] ss:$16 sps:$4 sm:$0xff]   ;;  %v8793_v33 = vld [vmem:[#allocation7 + $0xa0] ss:$16 sps:$4 sm:$0xff]  }
  0xcf   :  { %1158 = vmatpush1.bf16.msra.mxu0 %v8763_v12  ;;  %1244 = vmatpush1.bf16.msra.mxu1 %v8766_v16  ;;  %v8798_v34 = vld [vmem:[#allocation7 + $0xac] ss:$16 sps:$4 sm:$0xff]   ;;  %v8801_v35 = vld [vmem:[#allocation7 + $0xc4] ss:$16 sps:$4 sm:$0xff]   ;;  %v8796_v36 = vld [vmem:[#allocation7 + $0xa8] ss:$16 sps:$4 sm:$0xff]  }
  0xd0   :  { %1159 = vmatprep.subr.bf16.mxu0 %v8771_v15  ;;  %1245 = vmatprep.subr.bf16.mxu1 %v8774_v18  ;;  %v8799_v37 = vld [vmem:[#allocation7 + $0xc0] ss:$16 sps:$4 sm:$0xff]   ;;  %v8804_v38 = vld [vmem:[#allocation7 + $0xcc] ss:$16 sps:$4 sm:$0xff]   ;;  %v8807_v39 = vld [vmem:[#allocation7 + $0xe4] ss:$16 sps:$4 sm:$0xff]  }
  0xd1   :  { %v8802_v40 = vld [vmem:[#allocation7 + $0xc8] ss:$16 sps:$4 sm:$0xff]   ;;  %v8805_v41 = vld [vmem:[#allocation7 + $0xe0] ss:$16 sps:$4 sm:$0xff]   ;;  %v8810_v42 = vld [vmem:[#allocation7 + $0xec] ss:$16 sps:$4 sm:$0xff]  }
  0xd2   :  { %v8813_v43 = vld [vmem:[#allocation7 + $0x104] ss:$16 sps:$4 sm:$0xff]   ;;  %v8808_v44 = vld [vmem:[#allocation7 + $0xe8] ss:$16 sps:$4 sm:$0xff]   ;;  %v8811_v45 = vld [vmem:[#allocation7 + $0x100] ss:$16 sps:$4 sm:$0xff]  }
  0xd3   :  { %1160 = vmatpush1.bf16.msra.mxu0 %v8769_v17  ;;  %1246 = vmatpush1.bf16.msra.mxu1 %v8772_v20  ;;  %v8816_v46 = vld [vmem:[#allocation7 + $0x10c] ss:$16 sps:$4 sm:$0xff]   ;;  %v8819_v47 = vld [vmem:[#allocation7 + $0x124] ss:$16 sps:$4 sm:$0xff]   ;;  %v8814_v48 = vld [vmem:[#allocation7 + $0x108] ss:$16 sps:$4 sm:$0xff]  }
  0xd4   :  { %1161 = vmatprep.subr.bf16.mxu0 %v8777_v19  ;;  %1247 = vmatprep.subr.bf16.mxu1 %v8780_v22  ;;  %v8817_v49 = vld [vmem:[#allocation7 + $0x120] ss:$16 sps:$4 sm:$0xff]   ;;  %v8822_v50 = vld [vmem:[#allocation7 + $0x12c] ss:$16 sps:$4 sm:$0xff]   ;;  %v8825_v51 = vld [vmem:[#allocation7 + $0x144] ss:$16 sps:$4 sm:$0xff]  }
  0xd5   :  { %v8820_v52 = vld [vmem:[#allocation7 + $0x128] ss:$16 sps:$4 sm:$0xff]   ;;  %v8823_v53 = vld [vmem:[#allocation7 + $0x140] ss:$16 sps:$4 sm:$0xff]   ;;  %v8828_v54 = vld [vmem:[#allocation7 + $0x14c] ss:$16 sps:$4 sm:$0xff]  }
  0xd6   :  { %v8831_v55 = vld [vmem:[#allocation7 + $0x164] ss:$16 sps:$4 sm:$0xff]   ;;  %v8826_v56 = vld [vmem:[#allocation7 + $0x148] ss:$16 sps:$4 sm:$0xff]   ;;  %v8829_v57 = vld [vmem:[#allocation7 + $0x160] ss:$16 sps:$4 sm:$0xff]  }
  0xd7   :  { %1162 = vmatpush1.bf16.msra.mxu0 %v8775_v21  ;;  %1248 = vmatpush1.bf16.msra.mxu1 %v8778_v24  ;;  %v8834_v58 = vld [vmem:[#allocation7 + $0x16c] ss:$16 sps:$4 sm:$0xff]   ;;  %v8837_v59 = vld [vmem:[#allocation7 + $0x184] ss:$16 sps:$4 sm:$0xff]   ;;  %v8832_v60 = vld [vmem:[#allocation7 + $0x168] ss:$16 sps:$4 sm:$0xff]  }
  0xd8   :  { %1163 = vmatprep.subr.bf16.mxu0 %v8783_v23  ;;  %1249 = vmatprep.subr.bf16.mxu1 %v8786_v26  ;;  %v8835_v61 = vld [vmem:[#allocation7 + $0x180] ss:$16 sps:$4 sm:$0xff]   ;;  %v8840_v62 = vld [vmem:[#allocation7 + $0x18c] ss:$16 sps:$4 sm:$0xff]   ;;  %v8843_v63 = vld [vmem:[#allocation7 + $0x1a4] ss:$16 sps:$4 sm:$0xff]  }
  0xd9   :  { %v8838_v0 = vld [vmem:[#allocation7 + $0x188] ss:$16 sps:$4 sm:$0xff]   ;;  %v8841_v1 = vld [vmem:[#allocation7 + $0x1a0] ss:$16 sps:$4 sm:$0xff]   ;;  %v8846_v2 = vld [vmem:[#allocation7 + $0x1ac] ss:$16 sps:$4 sm:$0xff]  }
  0xda   :  { %v8844_v3 = vld [vmem:[#allocation7 + $0x1a8] ss:$16 sps:$4 sm:$0xff]   ;;  %v8849_v4 = vld [vmem:[#allocation7 + $0x1c4] ss:$16 sps:$4 sm:$0xff]   ;;  %v8852_v5 = vld [vmem:[#allocation7 + $0x1cc] ss:$16 sps:$4 sm:$0xff]  }
  0xdb   :  { %1164 = vmatpush1.bf16.msra.mxu0 %v8781_v25  ;;  %1250 = vmatpush1.bf16.msra.mxu1 %v8784_v28  ;;  %v8847_v6 = vld [vmem:[#allocation7 + $0x1c0] ss:$16 sps:$4 sm:$0xff]   ;;  %v8850_v7 = vld [vmem:[#allocation7 + $0x1c8] ss:$16 sps:$4 sm:$0xff]   ;;  %v8855_v8 = vld [vmem:[#allocation7 + $0x1e4] ss:$16 sps:$4 sm:$0xff]  }
  0xdc   :  { %1165 = vmatprep.subr.bf16.mxu0 %v8789_v27  ;;  %1251 = vmatprep.subr.bf16.mxu1 %v8792_v30  ;;  %v8858_v9 = vld [vmem:[#allocation7 + $0x1ec] ss:$16 sps:$4 sm:$0xff]   ;;  %v8853_v10 = vld [vmem:[#allocation7 + $0x1e0] ss:$16 sps:$4 sm:$0xff]   ;;  %v8856_v11 = vld [vmem:[#allocation7 + $0x1e8] ss:$16 sps:$4 sm:$0xff]  }
  0xdd   :  { %v8861_v12 = vld [vmem:[#allocation7 + $0x204] ss:$16 sps:$4 sm:$0xff]   ;;  %v8864_v13 = vld [vmem:[#allocation7 + $0x20c] ss:$16 sps:$4 sm:$0xff]   ;;  %v10296_v15 = vshrl.u32 %v205_v14, 7  ;;  %s10460_s24 = sld [smem:[#allocation29_spill]] }
  0xde   :  { %v203_v16 = vld [vmem:[%s10434_s2] sm:$0xf]  ;;  %v8898_v14 = vld [vmem:[#allocation7 + $0x2c8] ss:$16 sps:$4 sm:$0xff]  }
  0xdf   :  { %1166 = vmatpush1.bf16.msra.mxu0 %v8787_v29  ;;  %1252 = vmatpush1.bf16.msra.mxu1 %v8790_v32  ;;  %v10302_v17 = vsub.s32 0, %v10296_v15  ;;  %v10305_v18 = vsub.s32 1, %v10296_v15  ;;  %v10309_v20 = vsub.s32 2, %v10296_v15  ;;  %v10313_v22 = vsub.s32 3, %v10296_v15 }
  0xe0   :  { %1167 = vmatprep.subr.bf16.mxu0 %v8795_v31  ;;  %1253 = vmatprep.subr.bf16.mxu1 %v8798_v34 }
  0xe1   :  { %v208_v19 = vrot.slane %v203_v16, %v10302_v17  ;;  %v212_v21 = vrot.slane %v203_v16, %v10305_v18  ;;  %v216_v26 = vrot.slane %v203_v16, %v10309_v20  ;;  %v220_v29 = vrot.slane %v203_v16, %v10313_v22  ;;  %v8903_v16 = vld [vmem:[#allocation7 + $0x2e4] ss:$16 sps:$4 sm:$0xff]  }
  0xe3   :  { %1168 = vmatpush1.bf16.msra.mxu0 %v8793_v33  ;;  %1254 = vmatpush1.bf16.msra.mxu1 %v8796_v36 }
  0xe4   :  { %1169 = vmatprep.subr.bf16.mxu0 %v8801_v35  ;;  %1255 = vmatprep.subr.bf16.mxu1 %v8804_v38 }
  0xe7   :  { %1170 = vmatpush1.bf16.msra.mxu0 %v8799_v37  ;;  %1256 = vmatpush1.bf16.msra.mxu1 %v8802_v40  ;;  %v8859_v40 = vld [vmem:[#allocation7 + $0x200] ss:$16 sps:$4 sm:$0xff]  }
  0xe8   :  { %1171 = vmatprep.subr.bf16.mxu0 %v8807_v39  ;;  %1257 = vmatprep.subr.bf16.mxu1 %v8810_v42 }
  0xeb   :  { %1172 = vmatpush1.bf16.msra.mxu0 %v8805_v41  ;;  %1258 = vmatpush1.bf16.msra.mxu1 %v8808_v44  ;;  %v8862_v41 = vld [vmem:[#allocation7 + $0x208] ss:$16 sps:$4 sm:$0xff]  }
  0xec   :  { %1173 = vmatprep.subr.bf16.mxu0 %v8813_v43  ;;  %1259 = vmatprep.subr.bf16.mxu1 %v8816_v46  ;;  %v8870_v46 = vld [vmem:[#allocation7 + $0x22c] ss:$16 sps:$4 sm:$0xff]  }
  0xef   :  { %1174 = vmatpush1.bf16.msra.mxu0 %v8811_v45  ;;  %1260 = vmatpush1.bf16.msra.mxu1 %v8814_v48  ;;  %v8867_v45 = vld [vmem:[#allocation7 + $0x224] ss:$16 sps:$4 sm:$0xff]  }
  0xf0   :  { %1175 = vmatprep.subr.bf16.mxu0 %v8819_v47  ;;  %1261 = vmatprep.subr.bf16.mxu1 %v8822_v50 }
  0xf3   :  { %1176 = vmatpush1.bf16.msra.mxu0 %v8817_v49  ;;  %1262 = vmatpush1.bf16.msra.mxu1 %v8820_v52 }
  0xf4   :  { %1177 = vmatprep.subr.bf16.mxu0 %v8825_v51  ;;  %1263 = vmatprep.subr.bf16.mxu1 %v8828_v54  ;;  %v8865_v54 = vld [vmem:[#allocation7 + $0x220] ss:$16 sps:$4 sm:$0xff]  }
  0xf7   :  { %1178 = vmatpush1.bf16.msra.mxu0 %v8823_v53  ;;  %1264 = vmatpush1.bf16.msra.mxu1 %v8826_v56 }
  0xf8   :  { %1179 = vmatprep.subr.bf16.mxu0 %v8831_v55  ;;  %1265 = vmatprep.subr.bf16.mxu1 %v8834_v58  ;;  %v8868_v55 = vld [vmem:[#allocation7 + $0x228] ss:$16 sps:$4 sm:$0xff]   ;;  %v8876_v58 = vld [vmem:[#allocation7 + $0x24c] ss:$16 sps:$4 sm:$0xff]  }
  0xfb   :  { %1180 = vmatpush1.bf16.msra.mxu0 %v8829_v57  ;;  %1266 = vmatpush1.bf16.msra.mxu1 %v8832_v60  ;;  %v8873_v57 = vld [vmem:[#allocation7 + $0x244] ss:$16 sps:$4 sm:$0xff]  }
  0xfc   :  { %1181 = vmatprep.subr.bf16.mxu0 %v8837_v59  ;;  %1267 = vmatprep.subr.bf16.mxu1 %v8840_v62  ;;  %v8874_v62 = vld [vmem:[#allocation7 + $0x248] ss:$16 sps:$4 sm:$0xff]  }
  0xff   :  { %1182 = vmatpush1.bf16.msra.mxu0 %v8835_v61  ;;  %1268 = vmatpush1.bf16.msra.mxu1 %v8838_v0  ;;  %v8871_v61 = vld [vmem:[#allocation7 + $0x240] ss:$16 sps:$4 sm:$0xff]   ;;  %v8882_v0 = vld [vmem:[#allocation7 + $0x26c] ss:$16 sps:$4 sm:$0xff]  }
 0x100   :  { %1183 = vmatprep.subr.bf16.mxu0 %v8843_v63  ;;  %1269 = vmatprep.subr.bf16.mxu1 %v8846_v2  ;;  %v8879_v63 = vld [vmem:[#allocation7 + $0x264] ss:$16 sps:$4 sm:$0xff]   ;;  %v8880_v2 = vld [vmem:[#allocation7 + $0x268] ss:$16 sps:$4 sm:$0xff]  }
 0x103   :  { %1184 = vmatpush1.bf16.msra.mxu0 %v8841_v1  ;;  %1270 = vmatpush1.bf16.msra.mxu1 %v8844_v3  ;;  %v8877_v1 = vld [vmem:[#allocation7 + $0x260] ss:$16 sps:$4 sm:$0xff]   ;;  %v8885_v3 = vld [vmem:[#allocation7 + $0x284] ss:$16 sps:$4 sm:$0xff]  }
 0x104   :  { %1185 = vmatprep.subr.bf16.mxu0 %v8849_v4  ;;  %1271 = vmatprep.subr.bf16.mxu1 %v8852_v5  ;;  %v8888_v4 = vld [vmem:[#allocation7 + $0x28c] ss:$16 sps:$4 sm:$0xff]   ;;  %v8883_v5 = vld [vmem:[#allocation7 + $0x280] ss:$16 sps:$4 sm:$0xff]  }
 0x107   :  { %1186 = vmatpush1.bf16.msra.mxu0 %v8847_v6  ;;  %1272 = vmatpush1.bf16.msra.mxu1 %v8850_v7  ;;  %v8886_v6 = vld [vmem:[#allocation7 + $0x288] ss:$16 sps:$4 sm:$0xff]   ;;  %v8891_v7 = vld [vmem:[#allocation7 + $0x2a4] ss:$16 sps:$4 sm:$0xff]  }
 0x108   :  { %1187 = vmatprep.subr.bf16.mxu0 %v8855_v8  ;;  %1273 = vmatprep.subr.bf16.mxu1 %v8858_v9  ;;  %v8894_v8 = vld [vmem:[#allocation7 + $0x2ac] ss:$16 sps:$4 sm:$0xff]   ;;  %v8889_v9 = vld [vmem:[#allocation7 + $0x2a0] ss:$16 sps:$4 sm:$0xff]  }
 0x10b   :  { %1188 = vmatpush1.bf16.msra.mxu0 %v8853_v10  ;;  %1274 = vmatpush1.bf16.msra.mxu1 %v8856_v11  ;;  %v8892_v10 = vld [vmem:[#allocation7 + $0x2a8] ss:$16 sps:$4 sm:$0xff]   ;;  %v8897_v11 = vld [vmem:[#allocation7 + $0x2c4] ss:$16 sps:$4 sm:$0xff]  }
 0x10c   :  { %1200 = vmatprep.subr.bf16.mxu0 %v8861_v12  ;;  %1286 = vmatprep.subr.bf16.mxu1 %v8864_v13  ;;  %v8900_v12 = vld [vmem:[#allocation7 + $0x2cc] ss:$16 sps:$4 sm:$0xff]   ;;  %v8895_v13 = vld [vmem:[#allocation7 + $0x2c0] ss:$16 sps:$4 sm:$0xff]  }
 0x1a1   :  { %v303_v23 = vpop.f32.mrb[0].mxu0  ;;  %v346_v33 = vpop.f32.mrb[0].mxu1 }
 0x1a2   :  { %v304_v24 = vadd.f32 %v303_v23, %v208_v19  ;;  %v305_v25 = vpop.f32.mrb[1].mxu0  ;;  %v347_v36 = vadd.f32 %v346_v33, %v216_v26  ;;  %v348_v37 = vpop.f32.mrb[1].mxu1  ;;  %v8904_v23 = vld [vmem:[#allocation7 + $0x2e8] ss:$16 sps:$4 sm:$0xff]   ;;  %v8924_v33 = vld [vmem:[#allocation7 + $0x34c] ss:$16 sps:$4 sm:$0xff]  }
 0x1a3   :  { %v306_v27 = vadd.f32 %v305_v25, %v212_v21  ;;  %v307_v28 = vpop.f32.mrb[2].mxu0  ;;  %v349_v42 = vadd.f32 %v348_v37, %v220_v29  ;;  %v350_v43 = vpop.f32.mrb[2].mxu1  ;;  %v8912_v25 = vld [vmem:[#allocation7 + $0x30c] ss:$16 sps:$4 sm:$0xff]  }
 0x1a4   :  { %v308_v30 = vadd.f32 %v307_v28, %v208_v19  ;;  %v309_v31 = vpop.f32.mrb[3].mxu0  ;;  %v355_v34 = vmax.f32 %v304_v24, 0.0  ;;  %v357_v47 = vmax.f32 %v347_v36, 0.0  ;;  %v351_v48 = vadd.f32 %v350_v43, %v216_v26  ;;  %v352_v49 = vpop.f32.mrb[3].mxu1  ;;  %v8906_v19 = vld [vmem:[#allocation7 + $0x2ec] ss:$16 sps:$4 sm:$0xff]  }
 0x1a5   :  { %v310_v32 = vadd.f32 %v309_v31, %v212_v21  ;;  %v356_v38 = vmax.f32 %v306_v27, 0.0  ;;  %v358_v51 = vmax.f32 %v349_v42, 0.0  ;;  %v353_v52 = vadd.f32 %v352_v49, %v220_v29  ;;  %v8901_v21 = vld [vmem:[#allocation7 + $0x2e0] ss:$16 sps:$4 sm:$0xff]   ;;  %v8909_v24 = vld [vmem:[#allocation7 + $0x304] ss:$16 sps:$4 sm:$0xff]  }
 0x1a6   :  { %v359_v35 = vmax.f32 %v308_v30, 0.0  ;;  %v361_v53 = vmax.f32 %v351_v48, 0.0  ;;  %v8907_v26 = vld [vmem:[#allocation7 + $0x300] ss:$16 sps:$4 sm:$0xff]   ;;  %v8910_v27 = vld [vmem:[#allocation7 + $0x308] ss:$16 sps:$4 sm:$0xff]  }
 0x1a7   :  { %v360_v39 = vmax.f32 %v310_v32, 0.0  ;;  %v362_v56 = vmax.f32 %v353_v52, 0.0  ;;  %v8915_v28 = vld [vmem:[#allocation7 + $0x324] ss:$16 sps:$4 sm:$0xff]   ;;  %v8918_v29 = vld [vmem:[#allocation7 + $0x32c] ss:$16 sps:$4 sm:$0xff]  }
 0x1a8   :  { %v363_v44 = vpack.c.bf16 %v359_v35, %v355_v34  ;;  %v10317_v59 = vpack.c.bf16 %v361_v53, %v357_v47  ;;  %v8913_v30 = vld [vmem:[#allocation7 + $0x320] ss:$16 sps:$4 sm:$0xff]   ;;  %v8916_v31 = vld [vmem:[#allocation7 + $0x328] ss:$16 sps:$4 sm:$0xff]   ;;  %v8921_v32 = vld [vmem:[#allocation7 + $0x344] ss:$16 sps:$4 sm:$0xff]  }
 0x1a9   :  { %v364_v50 = vpack.c.bf16 %v360_v39, %v356_v38  ;;  %v366_v60 = vpack.c.bf16 %v362_v56, %v358_v51  ;;  %v8919_v34 = vld [vmem:[#allocation7 + $0x340] ss:$16 sps:$4 sm:$0xff]   ;;  %v8922_v35 = vld [vmem:[#allocation7 + $0x348] ss:$16 sps:$4 sm:$0xff]   ;;  %v8927_v36 = vld [vmem:[#allocation7 + $0x364] ss:$16 sps:$4 sm:$0xff]  }
 0x1aa   :  { %v8930_v37 = vld [vmem:[#allocation7 + $0x36c] ss:$16 sps:$4 sm:$0xff]   ;;  %v8925_v38 = vld [vmem:[#allocation7 + $0x360] ss:$16 sps:$4 sm:$0xff]   ;;  %v8928_v39 = vld [vmem:[#allocation7 + $0x368] ss:$16 sps:$4 sm:$0xff]  }
 0x1ab   :  { %1189 = vmatprep.mubr.bf16.mxu0 %v364_v50  ;;  %1275 = vmatprep.mubr.bf16.mxu1 %v364_v50  ;;  %v8931_v42 = vld [vmem:[#allocation7 + $0x380] ss:$16 sps:$4 sm:$0xff]   ;;  %v8934_v43 = vld [vmem:[#allocation7 + $0x388] ss:$16 sps:$4 sm:$0xff]   ;;  %v8945_v48 = vld [vmem:[#allocation7 + $0x3c4] ss:$16 sps:$4 sm:$0xff]  }
 0x1ac   :  { %1190 = vmatmul.mubr.bf16.vlgmr.msra.gmra.mrb[4].mxu0 %v363_v44  ;;  %1276 = vmatmul.mubr.bf16.vlgmr.msra.gmra.mrb[4].mxu1 %v363_v44  ;;  %v8939_v44 = vld [vmem:[#allocation7 + $0x3a4] ss:$16 sps:$4 sm:$0xff]   ;;  %v8940_v47 = vld [vmem:[#allocation7 + $0x3a8] ss:$16 sps:$4 sm:$0xff]   ;;  %v8948_v49 = vld [vmem:[#allocation7 + $0x3cc] ss:$16 sps:$4 sm:$0xff]  }
 0x1ad   :  { %1201 = vmatpush1.bf16.msra.mxu0 %v8859_v40  ;;  %1287 = vmatpush1.bf16.msra.mxu1 %v8862_v41  ;;  %v8933_v40 = vld [vmem:[#allocation7 + $0x384] ss:$16 sps:$4 sm:$0xff]   ;;  %v8936_v41 = vld [vmem:[#allocation7 + $0x38c] ss:$16 sps:$4 sm:$0xff]   ;;  %v8943_v50 = vld [vmem:[#allocation7 + $0x3c0] ss:$16 sps:$4 sm:$0xff]  }
 0x1ae   :  { %1202 = vmatprep.subr.bf16.mxu0 %v8867_v45  ;;  %1288 = vmatprep.subr.bf16.mxu1 %v8870_v46  ;;  %v8942_v45 = vld [vmem:[#allocation7 + $0x3ac] ss:$16 sps:$4 sm:$0xff]   ;;  %v8937_v46 = vld [vmem:[#allocation7 + $0x3a0] ss:$16 sps:$4 sm:$0xff]   ;;  %v8946_v51 = vld [vmem:[#allocation7 + $0x3c8] ss:$16 sps:$4 sm:$0xff]  }
 0x1af   :  { %1232 = vmatprep.mubr.bf16.mxu0 %v366_v60  ;;  %1318 = vmatprep.mubr.bf16.mxu1 %v366_v60  ;;  %v8951_v52 = vld [vmem:[#allocation7 + $0x3e4] ss:$16 sps:$4 sm:$0xff]   ;;  %v8954_v53 = vld [vmem:[#allocation7 + $0x3ec] ss:$16 sps:$4 sm:$0xff]   ;;  %v8957_v56 = vld [vmem:[#allocation10 + $0x4] ss:$16 sps:$4 sm:$0xff]  }
 0x1b0   :  { %v8958_v60 = vld [vmem:[#allocation10 + $0x8] ss:$16 sps:$4 sm:$0xff]  }
 0x1b1   :  { %1203 = vmatpush1.bf16.msra.mxu0 %v8865_v54  ;;  %1289 = vmatpush1.bf16.msra.mxu1 %v8868_v55  ;;  %v8949_v54 = vld [vmem:[#allocation7 + $0x3e0] ss:$16 sps:$4 sm:$0xff]   ;;  %v8952_v55 = vld [vmem:[#allocation7 + $0x3e8] ss:$16 sps:$4 sm:$0xff]  }
 0x1b2   :  { %1204 = vmatprep.subr.bf16.mxu0 %v8873_v57  ;;  %1290 = vmatprep.subr.bf16.mxu1 %v8876_v58  ;;  %v8960_v57 = vld [vmem:[#allocation10 + $0xc] ss:$16 sps:$4 sm:$0xff]   ;;  %v8955_v58 = vld [vmem:[#allocation10] ss:$16 sps:$4 sm:$0xff]  }
 0x1b5   :  { %1205 = vmatpush1.bf16.msra.mxu0 %v8871_v61  ;;  %1291 = vmatpush1.bf16.msra.mxu1 %v8874_v62  ;;  %v8963_v61 = vld [vmem:[#allocation10 + $0x24] ss:$16 sps:$4 sm:$0xff]   ;;  %v8966_v62 = vld [vmem:[#allocation10 + $0x2c] ss:$16 sps:$4 sm:$0xff]  }
 0x1b6   :  { %1206 = vmatprep.subr.bf16.mxu0 %v8879_v63  ;;  %1292 = vmatprep.subr.bf16.mxu1 %v8882_v0  ;;  %v8961_v63 = vld [vmem:[#allocation10 + $0x20] ss:$16 sps:$4 sm:$0xff]   ;;  %v8964_v0 = vld [vmem:[#allocation10 + $0x28] ss:$16 sps:$4 sm:$0xff]  }
 0x1b9   :  { %1207 = vmatpush1.bf16.msra.mxu0 %v8877_v1  ;;  %1293 = vmatpush1.bf16.msra.mxu1 %v8880_v2  ;;  %v8969_v1 = vld [vmem:[#allocation10 + $0x44] ss:$16 sps:$4 sm:$0xff]   ;;  %v8972_v2 = vld [vmem:[#allocation10 + $0x4c] ss:$16 sps:$4 sm:$0xff]  }
 0x1ba   :  { %1208 = vmatprep.subr.bf16.mxu0 %v8885_v3  ;;  %1294 = vmatprep.subr.bf16.mxu1 %v8888_v4  ;;  %v8967_v3 = vld [vmem:[#allocation10 + $0x40] ss:$16 sps:$4 sm:$0xff]   ;;  %v8970_v4 = vld [vmem:[#allocation10 + $0x48] ss:$16 sps:$4 sm:$0xff]  }
 0x1bd   :  { %1209 = vmatpush1.bf16.msra.mxu0 %v8883_v5  ;;  %1295 = vmatpush1.bf16.msra.mxu1 %v8886_v6  ;;  %v8975_v5 = vld [vmem:[#allocation10 + $0x64] ss:$16 sps:$4 sm:$0xff]   ;;  %v8978_v6 = vld [vmem:[#allocation10 + $0x6c] ss:$16 sps:$4 sm:$0xff]  }
 0x1be   :  { %1210 = vmatprep.subr.bf16.mxu0 %v8891_v7  ;;  %1296 = vmatprep.subr.bf16.mxu1 %v8894_v8  ;;  %v8973_v7 = vld [vmem:[#allocation10 + $0x60] ss:$16 sps:$4 sm:$0xff]   ;;  %v8976_v8 = vld [vmem:[#allocation10 + $0x68] ss:$16 sps:$4 sm:$0xff]  }
 0x1c1   :  { %1211 = vmatpush1.bf16.msra.mxu0 %v8889_v9  ;;  %1297 = vmatpush1.bf16.msra.mxu1 %v8892_v10  ;;  %v8984_v9 = vld [vmem:[#allocation10 + $0x8c] ss:$16 sps:$4 sm:$0xff]   ;;  %v8979_v10 = vld [vmem:[#allocation10 + $0x80] ss:$16 sps:$4 sm:$0xff]  }
 0x1c2   :  { %1212 = vmatprep.subr.bf16.mxu0 %v8897_v11  ;;  %1298 = vmatprep.subr.bf16.mxu1 %v8900_v12  ;;  %v8982_v11 = vld [vmem:[#allocation10 + $0x88] ss:$16 sps:$4 sm:$0xff]   ;;  %v8987_v12 = vld [vmem:[#allocation10 + $0xa4] ss:$16 sps:$4 sm:$0xff]  }
 0x1c5   :  { %1213 = vmatpush1.bf16.msra.mxu0 %v8895_v13  ;;  %1299 = vmatpush1.bf16.msra.mxu1 %v8898_v14  ;;  %v8990_v13 = vld [vmem:[#allocation10 + $0xac] ss:$16 sps:$4 sm:$0xff]   ;;  %v8985_v14 = vld [vmem:[#allocation10 + $0xa0] ss:$16 sps:$4 sm:$0xff]  }
 0x1c6   :  { %1214 = vmatprep.subr.bf16.mxu0 %v8903_v16  ;;  %1300 = vmatprep.subr.bf16.mxu1 %v8906_v19  ;;  %v8988_v16 = vld [vmem:[#allocation10 + $0xa8] ss:$16 sps:$4 sm:$0xff]   ;;  %v8993_v19 = vld [vmem:[#allocation10 + $0xc4] ss:$16 sps:$4 sm:$0xff]  }
 0x1c9   :  { %1215 = vmatpush1.bf16.msra.mxu0 %v8901_v21  ;;  %1301 = vmatpush1.bf16.msra.mxu1 %v8904_v23  ;;  %v8996_v21 = vld [vmem:[#allocation10 + $0xcc] ss:$16 sps:$4 sm:$0xff]   ;;  %v8991_v23 = vld [vmem:[#allocation10 + $0xc0] ss:$16 sps:$4 sm:$0xff]  }
 0x1ca   :  { %1216 = vmatprep.subr.bf16.mxu0 %v8909_v24  ;;  %1302 = vmatprep.subr.bf16.mxu1 %v8912_v25  ;;  %v8994_v24 = vld [vmem:[#allocation10 + $0xc8] ss:$16 sps:$4 sm:$0xff]   ;;  %v8999_v25 = vld [vmem:[#allocation10 + $0xe4] ss:$16 sps:$4 sm:$0xff]  }
 0x1cd   :  { %1217 = vmatpush1.bf16.msra.mxu0 %v8907_v26  ;;  %1303 = vmatpush1.bf16.msra.mxu1 %v8910_v27  ;;  %v9002_v26 = vld [vmem:[#allocation10 + $0xec] ss:$16 sps:$4 sm:$0xff]   ;;  %v8997_v27 = vld [vmem:[#allocation10 + $0xe0] ss:$16 sps:$4 sm:$0xff]  }
 0x1ce   :  { %1218 = vmatprep.subr.bf16.mxu0 %v8915_v28  ;;  %1304 = vmatprep.subr.bf16.mxu1 %v8918_v29  ;;  %v9000_v28 = vld [vmem:[#allocation10 + $0xe8] ss:$16 sps:$4 sm:$0xff]   ;;  %v9005_v29 = vld [vmem:[#allocation10 + $0x104] ss:$16 sps:$4 sm:$0xff]  }
 0x1d1   :  { %1219 = vmatpush1.bf16.msra.mxu0 %v8913_v30  ;;  %1305 = vmatpush1.bf16.msra.mxu1 %v8916_v31  ;;  %v9008_v30 = vld [vmem:[#allocation10 + $0x10c] ss:$16 sps:$4 sm:$0xff]   ;;  %v9003_v31 = vld [vmem:[#allocation10 + $0x100] ss:$16 sps:$4 sm:$0xff]  }
 0x1d2   :  { %1220 = vmatprep.subr.bf16.mxu0 %v8921_v32  ;;  %1306 = vmatprep.subr.bf16.mxu1 %v8924_v33  ;;  %v9006_v32 = vld [vmem:[#allocation10 + $0x108] ss:$16 sps:$4 sm:$0xff]   ;;  %v9011_v33 = vld [vmem:[#allocation10 + $0x124] ss:$16 sps:$4 sm:$0xff]  }
 0x1d5   :  { %1221 = vmatpush1.bf16.msra.mxu0 %v8919_v34  ;;  %1307 = vmatpush1.bf16.msra.mxu1 %v8922_v35  ;;  %v9014_v34 = vld [vmem:[#allocation10 + $0x12c] ss:$16 sps:$4 sm:$0xff]   ;;  %v9009_v35 = vld [vmem:[#allocation10 + $0x120] ss:$16 sps:$4 sm:$0xff]  }
 0x1d6   :  { %1222 = vmatprep.subr.bf16.mxu0 %v8927_v36  ;;  %1308 = vmatprep.subr.bf16.mxu1 %v8930_v37  ;;  %v9012_v36 = vld [vmem:[#allocation10 + $0x128] ss:$16 sps:$4 sm:$0xff]   ;;  %v9017_v37 = vld [vmem:[#allocation10 + $0x144] ss:$16 sps:$4 sm:$0xff]  }
 0x1d9   :  { %1223 = vmatpush1.bf16.msra.mxu0 %v8925_v38  ;;  %1309 = vmatpush1.bf16.msra.mxu1 %v8928_v39  ;;  %v9020_v38 = vld [vmem:[#allocation10 + $0x14c] ss:$16 sps:$4 sm:$0xff]   ;;  %v9015_v39 = vld [vmem:[#allocation10 + $0x140] ss:$16 sps:$4 sm:$0xff]  }
 0x1da   :  { %1224 = vmatprep.subr.bf16.mxu0 %v8933_v40  ;;  %1310 = vmatprep.subr.bf16.mxu1 %v8936_v41  ;;  %v9018_v40 = vld [vmem:[#allocation10 + $0x148] ss:$16 sps:$4 sm:$0xff]   ;;  %v9023_v41 = vld [vmem:[#allocation10 + $0x164] ss:$16 sps:$4 sm:$0xff]  }
 0x1dd   :  { %1225 = vmatpush1.bf16.msra.mxu0 %v8931_v42  ;;  %1311 = vmatpush1.bf16.msra.mxu1 %v8934_v43  ;;  %v9026_v42 = vld [vmem:[#allocation10 + $0x16c] ss:$16 sps:$4 sm:$0xff]   ;;  %v9021_v43 = vld [vmem:[#allocation10 + $0x160] ss:$16 sps:$4 sm:$0xff]  }
 0x1de   :  { %1226 = vmatprep.subr.bf16.mxu0 %v8939_v44  ;;  %1312 = vmatprep.subr.bf16.mxu1 %v8942_v45  ;;  %v9024_v44 = vld [vmem:[#allocation10 + $0x168] ss:$16 sps:$4 sm:$0xff]   ;;  %v9029_v45 = vld [vmem:[#allocation10 + $0x184] ss:$16 sps:$4 sm:$0xff]  }
 0x1e1   :  { %1227 = vmatpush1.bf16.msra.mxu0 %v8937_v46  ;;  %1313 = vmatpush1.bf16.msra.mxu1 %v8940_v47  ;;  %v9032_v46 = vld [vmem:[#allocation10 + $0x18c] ss:$16 sps:$4 sm:$0xff]   ;;  %v9027_v47 = vld [vmem:[#allocation10 + $0x180] ss:$16 sps:$4 sm:$0xff]  }
 0x1e2   :  { %1228 = vmatprep.subr.bf16.mxu0 %v8945_v48  ;;  %1314 = vmatprep.subr.bf16.mxu1 %v8948_v49  ;;  %v9030_v48 = vld [vmem:[#allocation10 + $0x188] ss:$16 sps:$4 sm:$0xff]   ;;  %v9035_v49 = vld [vmem:[#allocation10 + $0x1a4] ss:$16 sps:$4 sm:$0xff]  }
 0x1e5   :  { %1229 = vmatpush1.bf16.msra.mxu0 %v8943_v50  ;;  %1315 = vmatpush1.bf16.msra.mxu1 %v8946_v51  ;;  %v9038_v50 = vld [vmem:[#allocation10 + $0x1ac] ss:$16 sps:$4 sm:$0xff]   ;;  %v9033_v51 = vld [vmem:[#allocation10 + $0x1a0] ss:$16 sps:$4 sm:$0xff]  }
 0x1e6   :  { %1230 = vmatprep.subr.bf16.mxu0 %v8951_v52  ;;  %1316 = vmatprep.subr.bf16.mxu1 %v8954_v53  ;;  %v9036_v52 = vld [vmem:[#allocation10 + $0x1a8] ss:$16 sps:$4 sm:$0xff]   ;;  %v9041_v53 = vld [vmem:[#allocation10 + $0x1c4] ss:$16 sps:$4 sm:$0xff]  }
 0x1e9   :  { %1231 = vmatpush1.bf16.msra.mxu0 %v8949_v54  ;;  %1317 = vmatpush1.bf16.msra.mxu1 %v8952_v55  ;;  %v9044_v54 = vld [vmem:[#allocation10 + $0x1cc] ss:$16 sps:$4 sm:$0xff]   ;;  %v9039_v55 = vld [vmem:[#allocation10 + $0x1c0] ss:$16 sps:$4 sm:$0xff]  }
 0x1ea   :  { %2131 = vmatprep.subr.bf16.mxu0 %v8957_v56  ;;  %2217 = vmatprep.subr.bf16.mxu1 %v8960_v57  ;;  %v9042_v56 = vld [vmem:[#allocation10 + $0x1c8] ss:$16 sps:$4 sm:$0xff]   ;;  %v9047_v57 = vld [vmem:[#allocation10 + $0x1e4] ss:$16 sps:$4 sm:$0xff]  }
 0x1ec   :  { %1233 = vmatmul.mubr.bf16.vlgmr.msra.gmra.mrb[4].mxu0 %v10317_v59  ;;  %1319 = vmatmul.mubr.bf16.vlgmr.msra.gmra.mrb[4].mxu1 %v10317_v59  ;;  %v8981_v59 = vld [vmem:[#allocation10 + $0x84] ss:$16 sps:$4 sm:$0xff]  }
 0x1ed   :  { %2132 = vmatpush1.bf16.msra.mxu0 %v8955_v58  ;;  %2218 = vmatpush1.bf16.msra.mxu1 %v8958_v60  ;;  %v9050_v58 = vld [vmem:[#allocation10 + $0x1ec] ss:$16 sps:$4 sm:$0xff]   ;;  %v9045_v60 = vld [vmem:[#allocation10 + $0x1e0] ss:$16 sps:$4 sm:$0xff]  }
 0x1ee   :  { %2133 = vmatprep.subr.bf16.mxu0 %v8963_v61  ;;  %2219 = vmatprep.subr.bf16.mxu1 %v8966_v62  ;;  %v9048_v61 = vld [vmem:[#allocation10 + $0x1e8] ss:$16 sps:$4 sm:$0xff]   ;;  %v9053_v62 = vld [vmem:[#allocation10 + $0x204] ss:$16 sps:$4 sm:$0xff]  }
 0x1f1   :  { %2134 = vmatpush1.bf16.msra.mxu0 %v8961_v63  ;;  %2220 = vmatpush1.bf16.msra.mxu1 %v8964_v0  ;;  %v9056_v63 = vld [vmem:[#allocation10 + $0x20c] ss:$16 sps:$4 sm:$0xff]  }
 0x1f2   :  { %2135 = vmatprep.subr.bf16.mxu0 %v8969_v1  ;;  %2221 = vmatprep.subr.bf16.mxu1 %v8972_v2  ;;  %v495_v0 = vld [vmem:[#allocation8] sm:$0xf] }
 0x1f3   :  { %v500_v1 = vrot.slane %v495_v0, %v10302_v17  ;;  %v508_v2 = vrot.slane %v495_v0, %v10309_v20 }
 0x1f5   :  { %2136 = vmatpush1.bf16.msra.mxu0 %v8967_v3  ;;  %2222 = vmatpush1.bf16.msra.mxu1 %v8970_v4  ;;  %v504_v3 = vrot.slane %v495_v0, %v10305_v18  ;;  %v512_v4 = vrot.slane %v495_v0, %v10313_v22  ;;  %v9095_v0 = vld [vmem:[#allocation10 + $0x2e4] ss:$16 sps:$4 sm:$0xff]  }
 0x1f6   :  { %2137 = vmatprep.subr.bf16.mxu0 %v8975_v5  ;;  %2223 = vmatprep.subr.bf16.mxu1 %v8978_v6 }
 0x1f9   :  { %2138 = vmatpush1.bf16.msra.mxu0 %v8973_v7  ;;  %2224 = vmatpush1.bf16.msra.mxu1 %v8976_v8 }
 0x1fa   :  { %2139 = vmatprep.subr.bf16.mxu0 %v8981_v59  ;;  %2225 = vmatprep.subr.bf16.mxu1 %v8984_v9 }
 0x1fd   :  { %2140 = vmatpush1.bf16.msra.mxu0 %v8979_v10  ;;  %2226 = vmatpush1.bf16.msra.mxu1 %v8982_v11 }
 0x1fe   :  { %2141 = vmatprep.subr.bf16.mxu0 %v8987_v12  ;;  %2227 = vmatprep.subr.bf16.mxu1 %v8990_v13 }
 0x201   :  { %2142 = vmatpush1.bf16.msra.mxu0 %v8985_v14  ;;  %2228 = vmatpush1.bf16.msra.mxu1 %v8988_v16 }
 0x202   :  { %2143 = vmatprep.subr.bf16.mxu0 %v8993_v19  ;;  %2229 = vmatprep.subr.bf16.mxu1 %v8996_v21 }
 0x205   :  { %2144 = vmatpush1.bf16.msra.mxu0 %v8991_v23  ;;  %2230 = vmatpush1.bf16.msra.mxu1 %v8994_v24 }
 0x206   :  { %2145 = vmatprep.subr.bf16.mxu0 %v8999_v25  ;;  %2231 = vmatprep.subr.bf16.mxu1 %v9002_v26 }
 0x209   :  { %2146 = vmatpush1.bf16.msra.mxu0 %v8997_v27  ;;  %2232 = vmatpush1.bf16.msra.mxu1 %v9000_v28 }
 0x20a   :  { %2147 = vmatprep.subr.bf16.mxu0 %v9005_v29  ;;  %2233 = vmatprep.subr.bf16.mxu1 %v9008_v30 }
 0x20d   :  { %2148 = vmatpush1.bf16.msra.mxu0 %v9003_v31  ;;  %2234 = vmatpush1.bf16.msra.mxu1 %v9006_v32 }
 0x20e   :  { %2149 = vmatprep.subr.bf16.mxu0 %v9011_v33  ;;  %2235 = vmatprep.subr.bf16.mxu1 %v9014_v34 }
 0x211   :  { %2150 = vmatpush1.bf16.msra.mxu0 %v9009_v35  ;;  %2236 = vmatpush1.bf16.msra.mxu1 %v9012_v36 }
 0x212   :  { %2151 = vmatprep.subr.bf16.mxu0 %v9017_v37  ;;  %2237 = vmatprep.subr.bf16.mxu1 %v9020_v38  ;;  %v9051_v37 = vld [vmem:[#allocation10 + $0x200] ss:$16 sps:$4 sm:$0xff]   ;;  %v9054_v38 = vld [vmem:[#allocation10 + $0x208] ss:$16 sps:$4 sm:$0xff]  }
 0x215   :  { %2152 = vmatpush1.bf16.msra.mxu0 %v9015_v39  ;;  %2238 = vmatpush1.bf16.msra.mxu1 %v9018_v40  ;;  %v9059_v39 = vld [vmem:[#allocation10 + $0x224] ss:$16 sps:$4 sm:$0xff]   ;;  %v9062_v40 = vld [vmem:[#allocation10 + $0x22c] ss:$16 sps:$4 sm:$0xff]  }
 0x216   :  { %2153 = vmatprep.subr.bf16.mxu0 %v9023_v41  ;;  %2239 = vmatprep.subr.bf16.mxu1 %v9026_v42  ;;  %v9057_v41 = vld [vmem:[#allocation10 + $0x220] ss:$16 sps:$4 sm:$0xff]   ;;  %v9060_v42 = vld [vmem:[#allocation10 + $0x228] ss:$16 sps:$4 sm:$0xff]  }
 0x219   :  { %2154 = vmatpush1.bf16.msra.mxu0 %v9021_v43  ;;  %2240 = vmatpush1.bf16.msra.mxu1 %v9024_v44  ;;  %v9065_v43 = vld [vmem:[#allocation10 + $0x244] ss:$16 sps:$4 sm:$0xff]   ;;  %v9068_v44 = vld [vmem:[#allocation10 + $0x24c] ss:$16 sps:$4 sm:$0xff]  }
 0x21a   :  { %2155 = vmatprep.subr.bf16.mxu0 %v9029_v45  ;;  %2241 = vmatprep.subr.bf16.mxu1 %v9032_v46  ;;  %v9063_v45 = vld [vmem:[#allocation10 + $0x240] ss:$16 sps:$4 sm:$0xff]   ;;  %v9066_v46 = vld [vmem:[#allocation10 + $0x248] ss:$16 sps:$4 sm:$0xff]  }
 0x21d   :  { %2156 = vmatpush1.bf16.msra.mxu0 %v9027_v47  ;;  %2242 = vmatpush1.bf16.msra.mxu1 %v9030_v48  ;;  %v9071_v47 = vld [vmem:[#allocation10 + $0x264] ss:$16 sps:$4 sm:$0xff]   ;;  %v9074_v48 = vld [vmem:[#allocation10 + $0x26c] ss:$16 sps:$4 sm:$0xff]  }
 0x21e   :  { %2157 = vmatprep.subr.bf16.mxu0 %v9035_v49  ;;  %2243 = vmatprep.subr.bf16.mxu1 %v9038_v50  ;;  %v9069_v49 = vld [vmem:[#allocation10 + $0x260] ss:$16 sps:$4 sm:$0xff]   ;;  %v9072_v50 = vld [vmem:[#allocation10 + $0x268] ss:$16 sps:$4 sm:$0xff]  }
 0x221   :  { %2158 = vmatpush1.bf16.msra.mxu0 %v9033_v51  ;;  %2244 = vmatpush1.bf16.msra.mxu1 %v9036_v52  ;;  %v9077_v51 = vld [vmem:[#allocation10 + $0x284] ss:$16 sps:$4 sm:$0xff]   ;;  %v9080_v52 = vld [vmem:[#allocation10 + $0x28c] ss:$16 sps:$4 sm:$0xff]  }
 0x222   :  { %2159 = vmatprep.subr.bf16.mxu0 %v9041_v53  ;;  %2245 = vmatprep.subr.bf16.mxu1 %v9044_v54  ;;  %v9075_v53 = vld [vmem:[#allocation10 + $0x280] ss:$16 sps:$4 sm:$0xff]   ;;  %v9078_v54 = vld [vmem:[#allocation10 + $0x288] ss:$16 sps:$4 sm:$0xff]  }
 0x225   :  { %2160 = vmatpush1.bf16.msra.mxu0 %v9039_v55  ;;  %2246 = vmatpush1.bf16.msra.mxu1 %v9042_v56  ;;  %v9083_v55 = vld [vmem:[#allocation10 + $0x2a4] ss:$16 sps:$4 sm:$0xff]   ;;  %v9086_v56 = vld [vmem:[#allocation10 + $0x2ac] ss:$16 sps:$4 sm:$0xff]  }
 0x226   :  { %2161 = vmatprep.subr.bf16.mxu0 %v9047_v57  ;;  %2247 = vmatprep.subr.bf16.mxu1 %v9050_v58  ;;  %v9081_v57 = vld [vmem:[#allocation10 + $0x2a0] ss:$16 sps:$4 sm:$0xff]   ;;  %v9084_v58 = vld [vmem:[#allocation10 + $0x2a8] ss:$16 sps:$4 sm:$0xff]  }
 0x229   :  { %2162 = vmatpush1.bf16.msra.mxu0 %v9045_v60  ;;  %2248 = vmatpush1.bf16.msra.mxu1 %v9048_v61  ;;  %v9089_v60 = vld [vmem:[#allocation10 + $0x2c4] ss:$16 sps:$4 sm:$0xff]   ;;  %v9092_v61 = vld [vmem:[#allocation10 + $0x2cc] ss:$16 sps:$4 sm:$0xff]  }
 0x22a   :  { %2174 = vmatprep.subr.bf16.mxu0 %v9053_v62  ;;  %2260 = vmatprep.subr.bf16.mxu1 %v9056_v63  ;;  %v9087_v62 = vld [vmem:[#allocation10 + $0x2c0] ss:$16 sps:$4 sm:$0xff]   ;;  %v9090_v63 = vld [vmem:[#allocation10 + $0x2c8] ss:$16 sps:$4 sm:$0xff]  }
 0x2bf   :  { %v1234_v5 = vpop.f32.mrb[4].mxu0  ;;  %v1320_v6 = vpop.f32.mrb[4].mxu1 }
 0x2c0   :  { %v8619_v7 = vadd.f32 %v1234_v5, %v500_v1  ;;  %v8623_v8 = vadd.f32 %v1320_v6, %v508_v2  ;;  %v1236_v59 = vpop.f32.mrb[5].mxu0  ;;  %v1322_v9 = vpop.f32.mrb[5].mxu1  ;;  %v9104_v5 = vld [vmem:[#allocation10 + $0x30c] ss:$16 sps:$4 sm:$0xff]   ;;  %v9099_v6 = vld [vmem:[#allocation10 + $0x300] ss:$16 sps:$4 sm:$0xff]  }
 0x2c1   :  { %v8620_v10 = vadd.f32 %v1236_v59, %v504_v3  ;;  %v8624_v11 = vadd.f32 %v1322_v9, %v512_v4  ;;  %v1238_v12 = vpop.f32.mrb[6].mxu0  ;;  %v1324_v13 = vpop.f32.mrb[6].mxu1  ;;  %v9110_v59 = vld [vmem:[#allocation10 + $0x32c] ss:$16 sps:$4 sm:$0xff]   ;;  %v9105_v9 = vld [vmem:[#allocation10 + $0x320] ss:$16 sps:$4 sm:$0xff]  }
 0x2c2   :  { %v8621_v14 = vadd.f32 %v1238_v12, %v500_v1  ;;  %v8625_v16 = vadd.f32 %v1324_v13, %v508_v2  ;;  %v1240_v19 = vpop.f32.mrb[7].mxu0  ;;  %v1326_v21 = vpop.f32.mrb[7].mxu1  ;;  %v1329_v25 = vmax.f32 %v8619_v7, 0.0  ;;  %v1331_v26 = vmax.f32 %v8623_v8, 0.0  ;;  %v9098_v1 = vld [vmem:[#allocation10 + $0x2ec] ss:$16 sps:$4 sm:$0xff]  }
 0x2c3   :  { %v8622_v23 = vadd.f32 %v1240_v19, %v504_v3  ;;  %v8626_v24 = vadd.f32 %v1326_v21, %v512_v4  ;;  %v1330_v29 = vmax.f32 %v8620_v10, 0.0  ;;  %v1332_v30 = vmax.f32 %v8624_v11, 0.0  ;;  %v9093_v2 = vld [vmem:[#allocation10 + $0x2e0] ss:$16 sps:$4 sm:$0xff]   ;;  %v9096_v3 = vld [vmem:[#allocation10 + $0x2e8] ss:$16 sps:$4 sm:$0xff]  }
 0x2c4   :  { %v1333_v27 = vmax.f32 %v8621_v14, 0.0  ;;  %v1335_v28 = vmax.f32 %v8625_v16, 0.0  ;;  %v9101_v4 = vld [vmem:[#allocation10 + $0x304] ss:$16 sps:$4 sm:$0xff]   ;;  %v9102_v7 = vld [vmem:[#allocation10 + $0x308] ss:$16 sps:$4 sm:$0xff]  }
 0x2c5   :  { %v1334_v31 = vmax.f32 %v8622_v23, 0.0  ;;  %v1336_v32 = vmax.f32 %v8626_v24, 0.0  ;;  %v9107_v8 = vld [vmem:[#allocation10 + $0x324] ss:$16 sps:$4 sm:$0xff]   ;;  %v9108_v10 = vld [vmem:[#allocation10 + $0x328] ss:$16 sps:$4 sm:$0xff]  }
 0x2c6   :  { %v1337_v33 = vpack.c.bf16 %v1333_v27, %v1329_v25  ;;  %v10325_v34 = vpack.c.bf16 %v1335_v28, %v1331_v26  ;;  %v9113_v11 = vld [vmem:[#allocation10 + $0x344] ss:$16 sps:$4 sm:$0xff]   ;;  %v9116_v12 = vld [vmem:[#allocation10 + $0x34c] ss:$16 sps:$4 sm:$0xff]   ;;  %v9111_v13 = vld [vmem:[#allocation10 + $0x340] ss:$16 sps:$4 sm:$0xff]  }
 0x2c7   :  { %v1338_v35 = vpack.c.bf16 %v1334_v31, %v1330_v29  ;;  %v1340_v36 = vpack.c.bf16 %v1336_v32, %v1332_v30  ;;  %v9114_v14 = vld [vmem:[#allocation10 + $0x348] ss:$16 sps:$4 sm:$0xff]   ;;  %v9119_v16 = vld [vmem:[#allocation10 + $0x364] ss:$16 sps:$4 sm:$0xff]   ;;  %v9122_v19 = vld [vmem:[#allocation10 + $0x36c] ss:$16 sps:$4 sm:$0xff]  }
 0x2c8   :  { %v9117_v21 = vld [vmem:[#allocation10 + $0x360] ss:$16 sps:$4 sm:$0xff]   ;;  %v9120_v23 = vld [vmem:[#allocation10 + $0x368] ss:$16 sps:$4 sm:$0xff]   ;;  %v9125_v24 = vld [vmem:[#allocation10 + $0x384] ss:$16 sps:$4 sm:$0xff]  }
 0x2c9   :  { %2163 = vmatprep.mubr.bf16.mxu0 %v1338_v35  ;;  %2249 = vmatprep.mubr.bf16.mxu1 %v1338_v35  ;;  %v9128_v25 = vld [vmem:[#allocation10 + $0x38c] ss:$16 sps:$4 sm:$0xff]   ;;  %v9123_v26 = vld [vmem:[#allocation10 + $0x380] ss:$16 sps:$4 sm:$0xff]   ;;  %v9126_v27 = vld [vmem:[#allocation10 + $0x388] ss:$16 sps:$4 sm:$0xff]  }
 0x2ca   :  { %2164 = vmatmul.mubr.bf16.vlgmr.msra.gmra.mrb[8].mxu0 %v1337_v33  ;;  %2250 = vmatmul.mubr.bf16.vlgmr.msra.gmra.mrb[8].mxu1 %v1337_v33  ;;  %v9131_v28 = vld [vmem:[#allocation10 + $0x3a4] ss:$16 sps:$4 sm:$0xff]   ;;  %v9134_v29 = vld [vmem:[#allocation10 + $0x3ac] ss:$16 sps:$4 sm:$0xff]   ;;  %v9129_v30 = vld [vmem:[#allocation10 + $0x3a0] ss:$16 sps:$4 sm:$0xff]  }
 0x2cb   :  { %2175 = vmatpush1.bf16.msra.mxu0 %v9051_v37  ;;  %2261 = vmatpush1.bf16.msra.mxu1 %v9054_v38  ;;  %v9132_v31 = vld [vmem:[#allocation10 + $0x3a8] ss:$16 sps:$4 sm:$0xff]   ;;  %v9137_v32 = vld [vmem:[#allocation10 + $0x3c4] ss:$16 sps:$4 sm:$0xff]   ;;  %v9140_v33 = vld [vmem:[#allocation10 + $0x3cc] ss:$16 sps:$4 sm:$0xff]  }
 0x2cc   :  { %2206 = vmatprep.mubr.bf16.mxu0 %v1340_v36  ;;  %2292 = vmatprep.mubr.bf16.mxu1 %v1340_v36  ;;  %v9135_v35 = vld [vmem:[#allocation10 + $0x3c0] ss:$16 sps:$4 sm:$0xff]   ;;  %v9138_v36 = vld [vmem:[#allocation10 + $0x3c8] ss:$16 sps:$4 sm:$0xff]   ;;  %v9143_v37 = vld [vmem:[#allocation10 + $0x3e4] ss:$16 sps:$4 sm:$0xff]  }
 0x2cd   :  { %2176 = vmatprep.subr.bf16.mxu0 %v9059_v39  ;;  %2262 = vmatprep.subr.bf16.mxu1 %v9062_v40  ;;  %v9146_v38 = vld [vmem:[#allocation10 + $0x3ec] ss:$16 sps:$4 sm:$0xff]   ;;  %v9141_v39 = vld [vmem:[#allocation10 + $0x3e0] ss:$16 sps:$4 sm:$0xff]   ;;  %v9144_v40 = vld [vmem:[#allocation10 + $0x3e8] ss:$16 sps:$4 sm:$0xff]  }
 0x2cf   :  { %2177 = vmatpush1.bf16.msra.mxu0 %v9057_v41  ;;  %2263 = vmatpush1.bf16.msra.mxu1 %v9060_v42  ;;  %v9149_v41 = vld [vmem:[#allocation11 + $0x4] ss:$16 sps:$4 sm:$0xff]   ;;  %v9152_v42 = vld [vmem:[#allocation11 + $0xc] ss:$16 sps:$4 sm:$0xff]  }
 0x2d0   :  { %2178 = vmatprep.subr.bf16.mxu0 %v9065_v43  ;;  %2264 = vmatprep.subr.bf16.mxu1 %v9068_v44  ;;  %v9147_v43 = vld [vmem:[#allocation11] ss:$16 sps:$4 sm:$0xff]   ;;  %v9150_v44 = vld [vmem:[#allocation11 + $0x8] ss:$16 sps:$4 sm:$0xff]  }
 0x2d3   :  { %2179 = vmatpush1.bf16.msra.mxu0 %v9063_v45  ;;  %2265 = vmatpush1.bf16.msra.mxu1 %v9066_v46  ;;  %v9155_v45 = vld [vmem:[#allocation11 + $0x24] ss:$16 sps:$4 sm:$0xff]   ;;  %v9158_v46 = vld [vmem:[#allocation11 + $0x2c] ss:$16 sps:$4 sm:$0xff]  }
 0x2d4   :  { %2180 = vmatprep.subr.bf16.mxu0 %v9071_v47  ;;  %2266 = vmatprep.subr.bf16.mxu1 %v9074_v48  ;;  %v9153_v47 = vld [vmem:[#allocation11 + $0x20] ss:$16 sps:$4 sm:$0xff]   ;;  %v9156_v48 = vld [vmem:[#allocation11 + $0x28] ss:$16 sps:$4 sm:$0xff]  }
 0x2d7   :  { %2181 = vmatpush1.bf16.msra.mxu0 %v9069_v49  ;;  %2267 = vmatpush1.bf16.msra.mxu1 %v9072_v50  ;;  %v9161_v49 = vld [vmem:[#allocation11 + $0x44] ss:$16 sps:$4 sm:$0xff]   ;;  %v9164_v50 = vld [vmem:[#allocation11 + $0x4c] ss:$16 sps:$4 sm:$0xff]  }
 0x2d8   :  { %2182 = vmatprep.subr.bf16.mxu0 %v9077_v51  ;;  %2268 = vmatprep.subr.bf16.mxu1 %v9080_v52  ;;  %v9159_v51 = vld [vmem:[#allocation11 + $0x40] ss:$16 sps:$4 sm:$0xff]   ;;  %v9162_v52 = vld [vmem:[#allocation11 + $0x48] ss:$16 sps:$4 sm:$0xff]  }
 0x2db   :  { %2183 = vmatpush1.bf16.msra.mxu0 %v9075_v53  ;;  %2269 = vmatpush1.bf16.msra.mxu1 %v9078_v54  ;;  %v9167_v53 = vld [vmem:[#allocation11 + $0x64] ss:$16 sps:$4 sm:$0xff]   ;;  %v9170_v54 = vld [vmem:[#allocation11 + $0x6c] ss:$16 sps:$4 sm:$0xff]  }
 0x2dc   :  { %2184 = vmatprep.subr.bf16.mxu0 %v9083_v55  ;;  %2270 = vmatprep.subr.bf16.mxu1 %v9086_v56  ;;  %v9165_v55 = vld [vmem:[#allocation11 + $0x60] ss:$16 sps:$4 sm:$0xff]   ;;  %v9173_v56 = vld [vmem:[#allocation11 + $0x84] ss:$16 sps:$4 sm:$0xff]  }
 0x2df   :  { %2185 = vmatpush1.bf16.msra.mxu0 %v9081_v57  ;;  %2271 = vmatpush1.bf16.msra.mxu1 %v9084_v58  ;;  %v9176_v57 = vld [vmem:[#allocation11 + $0x8c] ss:$16 sps:$4 sm:$0xff]   ;;  %v9171_v58 = vld [vmem:[#allocation11 + $0x80] ss:$16 sps:$4 sm:$0xff]  }
 0x2e0   :  { %2186 = vmatprep.subr.bf16.mxu0 %v9089_v60  ;;  %2272 = vmatprep.subr.bf16.mxu1 %v9092_v61  ;;  %v9174_v60 = vld [vmem:[#allocation11 + $0x88] ss:$16 sps:$4 sm:$0xff]   ;;  %v9179_v61 = vld [vmem:[#allocation11 + $0xa4] ss:$16 sps:$4 sm:$0xff]  }
 0x2e3   :  { %2187 = vmatpush1.bf16.msra.mxu0 %v9087_v62  ;;  %2273 = vmatpush1.bf16.msra.mxu1 %v9090_v63  ;;  %v9182_v62 = vld [vmem:[#allocation11 + $0xac] ss:$16 sps:$4 sm:$0xff]   ;;  %v9177_v63 = vld [vmem:[#allocation11 + $0xa0] ss:$16 sps:$4 sm:$0xff]  }
 0x2e4   :  { %2188 = vmatprep.subr.bf16.mxu0 %v9095_v0  ;;  %2274 = vmatprep.subr.bf16.mxu1 %v9098_v1  ;;  %v9180_v0 = vld [vmem:[#allocation11 + $0xa8] ss:$16 sps:$4 sm:$0xff]   ;;  %v9185_v1 = vld [vmem:[#allocation11 + $0xc4] ss:$16 sps:$4 sm:$0xff]  }
 0x2e7   :  { %2189 = vmatpush1.bf16.msra.mxu0 %v9093_v2  ;;  %2275 = vmatpush1.bf16.msra.mxu1 %v9096_v3  ;;  %v9188_v2 = vld [vmem:[#allocation11 + $0xcc] ss:$16 sps:$4 sm:$0xff]   ;;  %v9183_v3 = vld [vmem:[#allocation11 + $0xc0] ss:$16 sps:$4 sm:$0xff]  }
 0x2e8   :  { %2190 = vmatprep.subr.bf16.mxu0 %v9101_v4  ;;  %2276 = vmatprep.subr.bf16.mxu1 %v9104_v5  ;;  %v9186_v4 = vld [vmem:[#allocation11 + $0xc8] ss:$16 sps:$4 sm:$0xff]   ;;  %v9191_v5 = vld [vmem:[#allocation11 + $0xe4] ss:$16 sps:$4 sm:$0xff]  }
 0x2eb   :  { %2191 = vmatpush1.bf16.msra.mxu0 %v9099_v6  ;;  %2277 = vmatpush1.bf16.msra.mxu1 %v9102_v7  ;;  %v9194_v6 = vld [vmem:[#allocation11 + $0xec] ss:$16 sps:$4 sm:$0xff]   ;;  %v9189_v7 = vld [vmem:[#allocation11 + $0xe0] ss:$16 sps:$4 sm:$0xff]  }
 0x2ec   :  { %2192 = vmatprep.subr.bf16.mxu0 %v9107_v8  ;;  %2278 = vmatprep.subr.bf16.mxu1 %v9110_v59  ;;  %v9192_v8 = vld [vmem:[#allocation11 + $0xe8] ss:$16 sps:$4 sm:$0xff]   ;;  %v9197_v59 = vld [vmem:[#allocation11 + $0x104] ss:$16 sps:$4 sm:$0xff]  }
 0x2ef   :  { %2193 = vmatpush1.bf16.msra.mxu0 %v9105_v9  ;;  %2279 = vmatpush1.bf16.msra.mxu1 %v9108_v10  ;;  %v9200_v9 = vld [vmem:[#allocation11 + $0x10c] ss:$16 sps:$4 sm:$0xff]   ;;  %v9195_v10 = vld [vmem:[#allocation11 + $0x100] ss:$16 sps:$4 sm:$0xff]  }
 0x2f0   :  { %2194 = vmatprep.subr.bf16.mxu0 %v9113_v11  ;;  %2280 = vmatprep.subr.bf16.mxu1 %v9116_v12  ;;  %v9198_v11 = vld [vmem:[#allocation11 + $0x108] ss:$16 sps:$4 sm:$0xff]   ;;  %v9203_v12 = vld [vmem:[#allocation11 + $0x124] ss:$16 sps:$4 sm:$0xff]  }
 0x2f3   :  { %2195 = vmatpush1.bf16.msra.mxu0 %v9111_v13  ;;  %2281 = vmatpush1.bf16.msra.mxu1 %v9114_v14  ;;  %v9206_v13 = vld [vmem:[#allocation11 + $0x12c] ss:$16 sps:$4 sm:$0xff]   ;;  %v9201_v14 = vld [vmem:[#allocation11 + $0x120] ss:$16 sps:$4 sm:$0xff]  }
 0x2f4   :  { %2196 = vmatprep.subr.bf16.mxu0 %v9119_v16  ;;  %2282 = vmatprep.subr.bf16.mxu1 %v9122_v19  ;;  %v9204_v16 = vld [vmem:[#allocation11 + $0x128] ss:$16 sps:$4 sm:$0xff]   ;;  %v9209_v19 = vld [vmem:[#allocation11 + $0x144] ss:$16 sps:$4 sm:$0xff]  }
 0x2f7   :  { %2197 = vmatpush1.bf16.msra.mxu0 %v9117_v21  ;;  %2283 = vmatpush1.bf16.msra.mxu1 %v9120_v23  ;;  %v9212_v21 = vld [vmem:[#allocation11 + $0x14c] ss:$16 sps:$4 sm:$0xff]   ;;  %v9207_v23 = vld [vmem:[#allocation11 + $0x140] ss:$16 sps:$4 sm:$0xff]  }
 0x2f8   :  { %2198 = vmatprep.subr.bf16.mxu0 %v9125_v24  ;;  %2284 = vmatprep.subr.bf16.mxu1 %v9128_v25  ;;  %v9210_v24 = vld [vmem:[#allocation11 + $0x148] ss:$16 sps:$4 sm:$0xff]   ;;  %v9215_v25 = vld [vmem:[#allocation11 + $0x164] ss:$16 sps:$4 sm:$0xff]  }
 0x2fb   :  { %2199 = vmatpush1.bf16.msra.mxu0 %v9123_v26  ;;  %2285 = vmatpush1.bf16.msra.mxu1 %v9126_v27  ;;  %v9218_v26 = vld [vmem:[#allocation11 + $0x16c] ss:$16 sps:$4 sm:$0xff]   ;;  %v9213_v27 = vld [vmem:[#allocation11 + $0x160] ss:$16 sps:$4 sm:$0xff]  }
 0x2fc   :  { %2200 = vmatprep.subr.bf16.mxu0 %v9131_v28  ;;  %2286 = vmatprep.subr.bf16.mxu1 %v9134_v29  ;;  %v9216_v28 = vld [vmem:[#allocation11 + $0x168] ss:$16 sps:$4 sm:$0xff]   ;;  %v9221_v29 = vld [vmem:[#allocation11 + $0x184] ss:$16 sps:$4 sm:$0xff]  }
 0x2ff   :  { %2201 = vmatpush1.bf16.msra.mxu0 %v9129_v30  ;;  %2287 = vmatpush1.bf16.msra.mxu1 %v9132_v31  ;;  %v9224_v30 = vld [vmem:[#allocation11 + $0x18c] ss:$16 sps:$4 sm:$0xff]   ;;  %v9219_v31 = vld [vmem:[#allocation11 + $0x180] ss:$16 sps:$4 sm:$0xff]  }
 0x300   :  { %2202 = vmatprep.subr.bf16.mxu0 %v9137_v32  ;;  %2288 = vmatprep.subr.bf16.mxu1 %v9140_v33  ;;  %v9222_v32 = vld [vmem:[#allocation11 + $0x188] ss:$16 sps:$4 sm:$0xff]   ;;  %v9227_v33 = vld [vmem:[#allocation11 + $0x1a4] ss:$16 sps:$4 sm:$0xff]  }
 0x303   :  { %2203 = vmatpush1.bf16.msra.mxu0 %v9135_v35  ;;  %2289 = vmatpush1.bf16.msra.mxu1 %v9138_v36  ;;  %v9230_v35 = vld [vmem:[#allocation11 + $0x1ac] ss:$16 sps:$4 sm:$0xff]   ;;  %v9225_v36 = vld [vmem:[#allocation11 + $0x1a0] ss:$16 sps:$4 sm:$0xff]  }
 0x304   :  { %2204 = vmatprep.subr.bf16.mxu0 %v9143_v37  ;;  %2290 = vmatprep.subr.bf16.mxu1 %v9146_v38  ;;  %v9228_v37 = vld [vmem:[#allocation11 + $0x1a8] ss:$16 sps:$4 sm:$0xff]   ;;  %v9233_v38 = vld [vmem:[#allocation11 + $0x1c4] ss:$16 sps:$4 sm:$0xff]  }
 0x307   :  { %2205 = vmatpush1.bf16.msra.mxu0 %v9141_v39  ;;  %2291 = vmatpush1.bf16.msra.mxu1 %v9144_v40  ;;  %v9236_v39 = vld [vmem:[#allocation11 + $0x1cc] ss:$16 sps:$4 sm:$0xff]   ;;  %v9231_v40 = vld [vmem:[#allocation11 + $0x1c0] ss:$16 sps:$4 sm:$0xff]  }
 0x308   :  { %3105 = vmatprep.subr.bf16.mxu0 %v9149_v41  ;;  %3191 = vmatprep.subr.bf16.mxu1 %v9152_v42  ;;  %v9234_v41 = vld [vmem:[#allocation11 + $0x1c8] ss:$16 sps:$4 sm:$0xff]   ;;  %v9239_v42 = vld [vmem:[#allocation11 + $0x1e4] ss:$16 sps:$4 sm:$0xff]  }
 0x30a   :  { %2207 = vmatmul.mubr.bf16.vlgmr.msra.gmra.mrb[8].mxu0 %v10325_v34  ;;  %2293 = vmatmul.mubr.bf16.vlgmr.msra.gmra.mrb[8].mxu1 %v10325_v34  ;;  %v9168_v34 = vld [vmem:[#allocation11 + $0x68] ss:$16 sps:$4 sm:$0xff]  }
 0x30b   :  { %3106 = vmatpush1.bf16.msra.mxu0 %v9147_v43  ;;  %3192 = vmatpush1.bf16.msra.mxu1 %v9150_v44  ;;  %v9242_v43 = vld [vmem:[#allocation11 + $0x1ec] ss:$16 sps:$4 sm:$0xff]   ;;  %v9237_v44 = vld [vmem:[#allocation11 + $0x1e0] ss:$16 sps:$4 sm:$0xff]  }
 0x30c   :  { %3107 = vmatprep.subr.bf16.mxu0 %v9155_v45  ;;  %3193 = vmatprep.subr.bf16.mxu1 %v9158_v46  ;;  %v9240_v45 = vld [vmem:[#allocation11 + $0x1e8] ss:$16 sps:$4 sm:$0xff]   ;;  %v9245_v46 = vld [vmem:[#allocation11 + $0x204] ss:$16 sps:$4 sm:$0xff]  }
 0x30f   :  { %3108 = vmatpush1.bf16.msra.mxu0 %v9153_v47  ;;  %3194 = vmatpush1.bf16.msra.mxu1 %v9156_v48  ;;  %v9248_v47 = vld [vmem:[#allocation11 + $0x20c] ss:$16 sps:$4 sm:$0xff]  }
 0x310   :  { %3109 = vmatprep.subr.bf16.mxu0 %v9161_v49  ;;  %3195 = vmatprep.subr.bf16.mxu1 %v9164_v50  ;;  %v1469_v48 = vld [vmem:[%s10438_s6] sm:$0xf] }
 0x311   :  { %v1474_v49 = vrot.slane %v1469_v48, %v10302_v17  ;;  %v1482_v50 = vrot.slane %v1469_v48, %v10309_v20 }
 0x313   :  { %3110 = vmatpush1.bf16.msra.mxu0 %v9159_v51  ;;  %3196 = vmatpush1.bf16.msra.mxu1 %v9162_v52  ;;  %v1478_v51 = vrot.slane %v1469_v48, %v10305_v18  ;;  %v1486_v52 = vrot.slane %v1469_v48, %v10313_v22  ;;  %v9287_v48 = vld [vmem:[#allocation11 + $0x2e4] ss:$16 sps:$4 sm:$0xff]  }
 0x314   :  { %3111 = vmatprep.subr.bf16.mxu0 %v9167_v53  ;;  %3197 = vmatprep.subr.bf16.mxu1 %v9170_v54 }
 0x317   :  { %3112 = vmatpush1.bf16.msra.mxu0 %v9165_v55  ;;  %3198 = vmatpush1.bf16.msra.mxu1 %v9168_v34 }
 0x318   :  { %3113 = vmatprep.subr.bf16.mxu0 %v9173_v56  ;;  %3199 = vmatprep.subr.bf16.mxu1 %v9176_v57 }
 0x31b   :  { %3114 = vmatpush1.bf16.msra.mxu0 %v9171_v58  ;;  %3200 = vmatpush1.bf16.msra.mxu1 %v9174_v60 }
 0x31c   :  { %3115 = vmatprep.subr.bf16.mxu0 %v9179_v61  ;;  %3201 = vmatprep.subr.bf16.mxu1 %v9182_v62 }
 0x31f   :  { %3116 = vmatpush1.bf16.msra.mxu0 %v9177_v63  ;;  %3202 = vmatpush1.bf16.msra.mxu1 %v9180_v0 }
 0x320   :  { %3117 = vmatprep.subr.bf16.mxu0 %v9185_v1  ;;  %3203 = vmatprep.subr.bf16.mxu1 %v9188_v2 }
 0x323   :  { %3118 = vmatpush1.bf16.msra.mxu0 %v9183_v3  ;;  %3204 = vmatpush1.bf16.msra.mxu1 %v9186_v4 }
 0x324   :  { %3119 = vmatprep.subr.bf16.mxu0 %v9191_v5  ;;  %3205 = vmatprep.subr.bf16.mxu1 %v9194_v6 }
 0x327   :  { %3120 = vmatpush1.bf16.msra.mxu0 %v9189_v7  ;;  %3206 = vmatpush1.bf16.msra.mxu1 %v9192_v8 }
 0x328   :  { %3121 = vmatprep.subr.bf16.mxu0 %v9197_v59  ;;  %3207 = vmatprep.subr.bf16.mxu1 %v9200_v9 }
 0x32b   :  { %3122 = vmatpush1.bf16.msra.mxu0 %v9195_v10  ;;  %3208 = vmatpush1.bf16.msra.mxu1 %v9198_v11 }
 0x32c   :  { %3123 = vmatprep.subr.bf16.mxu0 %v9203_v12  ;;  %3209 = vmatprep.subr.bf16.mxu1 %v9206_v13 }
 0x32f   :  { %3124 = vmatpush1.bf16.msra.mxu0 %v9201_v14  ;;  %3210 = vmatpush1.bf16.msra.mxu1 %v9204_v16 }
 0x330   :  { %3125 = vmatprep.subr.bf16.mxu0 %v9209_v19  ;;  %3211 = vmatprep.subr.bf16.mxu1 %v9212_v21  ;;  %v9243_v19 = vld [vmem:[#allocation11 + $0x200] ss:$16 sps:$4 sm:$0xff]   ;;  %v9246_v21 = vld [vmem:[#allocation11 + $0x208] ss:$16 sps:$4 sm:$0xff]  }
 0x333   :  { %3126 = vmatpush1.bf16.msra.mxu0 %v9207_v23  ;;  %3212 = vmatpush1.bf16.msra.mxu1 %v9210_v24  ;;  %v9251_v23 = vld [vmem:[#allocation11 + $0x224] ss:$16 sps:$4 sm:$0xff]   ;;  %v9254_v24 = vld [vmem:[#allocation11 + $0x22c] ss:$16 sps:$4 sm:$0xff]  }
 0x334   :  { %3127 = vmatprep.subr.bf16.mxu0 %v9215_v25  ;;  %3213 = vmatprep.subr.bf16.mxu1 %v9218_v26  ;;  %v9249_v25 = vld [vmem:[#allocation11 + $0x220] ss:$16 sps:$4 sm:$0xff]   ;;  %v9252_v26 = vld [vmem:[#allocation11 + $0x228] ss:$16 sps:$4 sm:$0xff]  }
 0x337   :  { %3128 = vmatpush1.bf16.msra.mxu0 %v9213_v27  ;;  %3214 = vmatpush1.bf16.msra.mxu1 %v9216_v28  ;;  %v9257_v27 = vld [vmem:[#allocation11 + $0x244] ss:$16 sps:$4 sm:$0xff]   ;;  %v9260_v28 = vld [vmem:[#allocation11 + $0x24c] ss:$16 sps:$4 sm:$0xff]  }
 0x338   :  { %3129 = vmatprep.subr.bf16.mxu0 %v9221_v29  ;;  %3215 = vmatprep.subr.bf16.mxu1 %v9224_v30  ;;  %v9255_v29 = vld [vmem:[#allocation11 + $0x240] ss:$16 sps:$4 sm:$0xff]   ;;  %v9258_v30 = vld [vmem:[#allocation11 + $0x248] ss:$16 sps:$4 sm:$0xff]  }
 0x33b   :  { %3130 = vmatpush1.bf16.msra.mxu0 %v9219_v31  ;;  %3216 = vmatpush1.bf16.msra.mxu1 %v9222_v32  ;;  %v9263_v31 = vld [vmem:[#allocation11 + $0x264] ss:$16 sps:$4 sm:$0xff]   ;;  %v9266_v32 = vld [vmem:[#allocation11 + $0x26c] ss:$16 sps:$4 sm:$0xff]  }
 0x33c   :  { %3131 = vmatprep.subr.bf16.mxu0 %v9227_v33  ;;  %3217 = vmatprep.subr.bf16.mxu1 %v9230_v35  ;;  %v9261_v33 = vld [vmem:[#allocation11 + $0x260] ss:$16 sps:$4 sm:$0xff]   ;;  %v9264_v35 = vld [vmem:[#allocation11 + $0x268] ss:$16 sps:$4 sm:$0xff]  }
 0x33f   :  { %3132 = vmatpush1.bf16.msra.mxu0 %v9225_v36  ;;  %3218 = vmatpush1.bf16.msra.mxu1 %v9228_v37  ;;  %v9269_v36 = vld [vmem:[#allocation11 + $0x284] ss:$16 sps:$4 sm:$0xff]   ;;  %v9272_v37 = vld [vmem:[#allocation11 + $0x28c] ss:$16 sps:$4 sm:$0xff]  }
 0x340   :  { %3133 = vmatprep.subr.bf16.mxu0 %v9233_v38  ;;  %3219 = vmatprep.subr.bf16.mxu1 %v9236_v39  ;;  %v9267_v38 = vld [vmem:[#allocation11 + $0x280] ss:$16 sps:$4 sm:$0xff]   ;;  %v9270_v39 = vld [vmem:[#allocation11 + $0x288] ss:$16 sps:$4 sm:$0xff]  }
 0x343   :  { %3134 = vmatpush1.bf16.msra.mxu0 %v9231_v40  ;;  %3220 = vmatpush1.bf16.msra.mxu1 %v9234_v41  ;;  %v9275_v40 = vld [vmem:[#allocation11 + $0x2a4] ss:$16 sps:$4 sm:$0xff]   ;;  %v9278_v41 = vld [vmem:[#allocation11 + $0x2ac] ss:$16 sps:$4 sm:$0xff]  }
 0x344   :  { %3135 = vmatprep.subr.bf16.mxu0 %v9239_v42  ;;  %3221 = vmatprep.subr.bf16.mxu1 %v9242_v43  ;;  %v9273_v42 = vld [vmem:[#allocation11 + $0x2a0] ss:$16 sps:$4 sm:$0xff]   ;;  %v9276_v43 = vld [vmem:[#allocation11 + $0x2a8] ss:$16 sps:$4 sm:$0xff]  }
 0x347   :  { %3136 = vmatpush1.bf16.msra.mxu0 %v9237_v44  ;;  %3222 = vmatpush1.bf16.msra.mxu1 %v9240_v45  ;;  %v9281_v44 = vld [vmem:[#allocation11 + $0x2c4] ss:$16 sps:$4 sm:$0xff]   ;;  %v9284_v45 = vld [vmem:[#allocation11 + $0x2cc] ss:$16 sps:$4 sm:$0xff]  }
 0x348   :  { %3148 = vmatprep.subr.bf16.mxu0 %v9245_v46  ;;  %3234 = vmatprep.subr.bf16.mxu1 %v9248_v47  ;;  %v9279_v46 = vld [vmem:[#allocation11 + $0x2c0] ss:$16 sps:$4 sm:$0xff]   ;;  %v9282_v47 = vld [vmem:[#allocation11 + $0x2c8] ss:$16 sps:$4 sm:$0xff]  }
 0x3dd   :  { %v2208_v53 = vpop.f32.mrb[8].mxu0  ;;  %v2294_v54 = vpop.f32.mrb[8].mxu1 }
 0x3de   :  { %v8627_v55 = vadd.f32 %v2208_v53, %v1474_v49  ;;  %v8631_v34 = vadd.f32 %v2294_v54, %v1482_v50  ;;  %v2210_v56 = vpop.f32.mrb[9].mxu0  ;;  %v2296_v57 = vpop.f32.mrb[9].mxu1  ;;  %v9296_v53 = vld [vmem:[#allocation11 + $0x30c] ss:$16 sps:$4 sm:$0xff]   ;;  %v9291_v54 = vld [vmem:[#allocation11 + $0x300] ss:$16 sps:$4 sm:$0xff]  }
 0x3df   :  { %v8628_v58 = vadd.f32 %v2210_v56, %v1478_v51  ;;  %v8632_v60 = vadd.f32 %v2296_v57, %v1486_v52  ;;  %v2212_v61 = vpop.f32.mrb[10].mxu0  ;;  %v2298_v62 = vpop.f32.mrb[10].mxu1  ;;  %v9302_v56 = vld [vmem:[#allocation11 + $0x32c] ss:$16 sps:$4 sm:$0xff]   ;;  %v9297_v57 = vld [vmem:[#allocation11 + $0x320] ss:$16 sps:$4 sm:$0xff]  }
 0x3e0   :  { %v8629_v63 = vadd.f32 %v2212_v61, %v1474_v49  ;;  %v8633_v0 = vadd.f32 %v2298_v62, %v1482_v50  ;;  %v2214_v1 = vpop.f32.mrb[11].mxu0  ;;  %v2300_v2 = vpop.f32.mrb[11].mxu1  ;;  %v2303_v5 = vmax.f32 %v8627_v55, 0.0  ;;  %v2305_v6 = vmax.f32 %v8631_v34, 0.0  ;;  %v9290_v49 = vld [vmem:[#allocation11 + $0x2ec] ss:$16 sps:$4 sm:$0xff]  }
 0x3e1   :  { %v8630_v3 = vadd.f32 %v2214_v1, %v1478_v51  ;;  %v8634_v4 = vadd.f32 %v2300_v2, %v1486_v52  ;;  %v2304_v59 = vmax.f32 %v8628_v58, 0.0  ;;  %v2306_v9 = vmax.f32 %v8632_v60, 0.0  ;;  %v9285_v50 = vld [vmem:[#allocation11 + $0x2e0] ss:$16 sps:$4 sm:$0xff]   ;;  %v9288_v51 = vld [vmem:[#allocation11 + $0x2e8] ss:$16 sps:$4 sm:$0xff]  }
 0x3e2   :  { %v2307_v7 = vmax.f32 %v8629_v63, 0.0  ;;  %v2309_v8 = vmax.f32 %v8633_v0, 0.0  ;;  %v9293_v52 = vld [vmem:[#allocation11 + $0x304] ss:$16 sps:$4 sm:$0xff]   ;;  %v9294_v55 = vld [vmem:[#allocation11 + $0x308] ss:$16 sps:$4 sm:$0xff]  }
 0x3e3   :  { %v2308_v10 = vmax.f32 %v8630_v3, 0.0  ;;  %v2310_v11 = vmax.f32 %v8634_v4, 0.0  ;;  %v9299_v34 = vld [vmem:[#allocation11 + $0x324] ss:$16 sps:$4 sm:$0xff]   ;;  %v9300_v58 = vld [vmem:[#allocation11 + $0x328] ss:$16 sps:$4 sm:$0xff]  }
 0x3e4   :  { %v2311_v12 = vpack.c.bf16 %v2307_v7, %v2303_v5  ;;  %v10336_v13 = vpack.c.bf16 %v2309_v8, %v2305_v6  ;;  %v9305_v60 = vld [vmem:[#allocation11 + $0x344] ss:$16 sps:$4 sm:$0xff]   ;;  %v9308_v61 = vld [vmem:[#allocation11 + $0x34c] ss:$16 sps:$4 sm:$0xff]   ;;  %v9303_v62 = vld [vmem:[#allocation11 + $0x340] ss:$16 sps:$4 sm:$0xff]  }
 0x3e5   :  { %v2312_v14 = vpack.c.bf16 %v2308_v10, %v2304_v59  ;;  %v2314_v16 = vpack.c.bf16 %v2310_v11, %v2306_v9  ;;  %v9306_v63 = vld [vmem:[#allocation11 + $0x348] ss:$16 sps:$4 sm:$0xff]   ;;  %v9311_v0 = vld [vmem:[#allocation11 + $0x364] ss:$16 sps:$4 sm:$0xff]   ;;  %v9314_v1 = vld [vmem:[#allocation11 + $0x36c] ss:$16 sps:$4 sm:$0xff]  }
 0x3e6   :  { %v9309_v2 = vld [vmem:[#allocation11 + $0x360] ss:$16 sps:$4 sm:$0xff]   ;;  %v9312_v3 = vld [vmem:[#allocation11 + $0x368] ss:$16 sps:$4 sm:$0xff]   ;;  %v9317_v4 = vld [vmem:[#allocation11 + $0x384] ss:$16 sps:$4 sm:$0xff]  }
 0x3e7   :  { %3137 = vmatprep.mubr.bf16.mxu0 %v2312_v14  ;;  %3223 = vmatprep.mubr.bf16.mxu1 %v2312_v14  ;;  %v9320_v5 = vld [vmem:[#allocation11 + $0x38c] ss:$16 sps:$4 sm:$0xff]   ;;  %v9315_v6 = vld [vmem:[#allocation11 + $0x380] ss:$16 sps:$4 sm:$0xff]   ;;  %v9318_v7 = vld [vmem:[#allocation11 + $0x388] ss:$16 sps:$4 sm:$0xff]  }
 0x3e8   :  { %3138 = vmatmul.mubr.bf16.vlgmr.msra.gmra.mrb[12].mxu0 %v2311_v12  ;;  %3224 = vmatmul.mubr.bf16.vlgmr.msra.gmra.mrb[12].mxu1 %v2311_v12  ;;  %v9323_v8 = vld [vmem:[#allocation11 + $0x3a4] ss:$16 sps:$4 sm:$0xff]   ;;  %v9326_v59 = vld [vmem:[#allocation11 + $0x3ac] ss:$16 sps:$4 sm:$0xff]   ;;  %v9321_v9 = vld [vmem:[#allocation11 + $0x3a0] ss:$16 sps:$4 sm:$0xff]  }
 0x3e9   :  { %3149 = vmatpush1.bf16.msra.mxu0 %v9243_v19  ;;  %3235 = vmatpush1.bf16.msra.mxu1 %v9246_v21  ;;  %v9324_v10 = vld [vmem:[#allocation11 + $0x3a8] ss:$16 sps:$4 sm:$0xff]   ;;  %v9329_v11 = vld [vmem:[#allocation11 + $0x3c4] ss:$16 sps:$4 sm:$0xff]   ;;  %v9332_v12 = vld [vmem:[#allocation11 + $0x3cc] ss:$16 sps:$4 sm:$0xff]  }
 0x3ea   :  { %3180 = vmatprep.mubr.bf16.mxu0 %v2314_v16  ;;  %3266 = vmatprep.mubr.bf16.mxu1 %v2314_v16  ;;  %v9327_v14 = vld [vmem:[#allocation11 + $0x3c0] ss:$16 sps:$4 sm:$0xff]   ;;  %v9330_v16 = vld [vmem:[#allocation11 + $0x3c8] ss:$16 sps:$4 sm:$0xff]   ;;  %v9335_v19 = vld [vmem:[#allocation11 + $0x3e4] ss:$16 sps:$4 sm:$0xff]  }
 0x3eb   :  { %3150 = vmatprep.subr.bf16.mxu0 %v9251_v23  ;;  %3236 = vmatprep.subr.bf16.mxu1 %v9254_v24  ;;  %v9338_v21 = vld [vmem:[#allocation11 + $0x3ec] ss:$16 sps:$4 sm:$0xff]   ;;  %v9333_v23 = vld [vmem:[#allocation11 + $0x3e0] ss:$16 sps:$4 sm:$0xff]   ;;  %v9336_v24 = vld [vmem:[#allocation11 + $0x3e8] ss:$16 sps:$4 sm:$0xff]  }
 0x3ed   :  { %3151 = vmatpush1.bf16.msra.mxu0 %v9249_v25  ;;  %3237 = vmatpush1.bf16.msra.mxu1 %v9252_v26  ;;  %v9341_v25 = vld [vmem:[#allocation13 + $0x4] ss:$16 sps:$4 sm:$0xff]   ;;  %v9344_v26 = vld [vmem:[#allocation13 + $0xc] ss:$16 sps:$4 sm:$0xff]  }
 0x3ee   :  { %3152 = vmatprep.subr.bf16.mxu0 %v9257_v27  ;;  %3238 = vmatprep.subr.bf16.mxu1 %v9260_v28  ;;  %v9339_v27 = vld [vmem:[#allocation13] ss:$16 sps:$4 sm:$0xff]   ;;  %v9342_v28 = vld [vmem:[#allocation13 + $0x8] ss:$16 sps:$4 sm:$0xff]  }
 0x3f1   :  { %3153 = vmatpush1.bf16.msra.mxu0 %v9255_v29  ;;  %3239 = vmatpush1.bf16.msra.mxu1 %v9258_v30  ;;  %v9347_v29 = vld [vmem:[#allocation13 + $0x24] ss:$16 sps:$4 sm:$0xff]   ;;  %v9350_v30 = vld [vmem:[#allocation13 + $0x2c] ss:$16 sps:$4 sm:$0xff]  }
 0x3f2   :  { %3154 = vmatprep.subr.bf16.mxu0 %v9263_v31  ;;  %3240 = vmatprep.subr.bf16.mxu1 %v9266_v32  ;;  %v9345_v31 = vld [vmem:[#allocation13 + $0x20] ss:$16 sps:$4 sm:$0xff]   ;;  %v9348_v32 = vld [vmem:[#allocation13 + $0x28] ss:$16 sps:$4 sm:$0xff]  }
 0x3f5   :  { %3155 = vmatpush1.bf16.msra.mxu0 %v9261_v33  ;;  %3241 = vmatpush1.bf16.msra.mxu1 %v9264_v35  ;;  %v9353_v33 = vld [vmem:[#allocation13 + $0x44] ss:$16 sps:$4 sm:$0xff]   ;;  %v9356_v35 = vld [vmem:[#allocation13 + $0x4c] ss:$16 sps:$4 sm:$0xff]  }
 0x3f6   :  { %3156 = vmatprep.subr.bf16.mxu0 %v9269_v36  ;;  %3242 = vmatprep.subr.bf16.mxu1 %v9272_v37  ;;  %v9351_v36 = vld [vmem:[#allocation13 + $0x40] ss:$16 sps:$4 sm:$0xff]   ;;  %v9354_v37 = vld [vmem:[#allocation13 + $0x48] ss:$16 sps:$4 sm:$0xff]  }
 0x3f9   :  { %3157 = vmatpush1.bf16.msra.mxu0 %v9267_v38  ;;  %3243 = vmatpush1.bf16.msra.mxu1 %v9270_v39  ;;  %v9359_v38 = vld [vmem:[#allocation13 + $0x64] ss:$16 sps:$4 sm:$0xff]   ;;  %v9362_v39 = vld [vmem:[#allocation13 + $0x6c] ss:$16 sps:$4 sm:$0xff]  }
 0x3fa   :  { %3158 = vmatprep.subr.bf16.mxu0 %v9275_v40  ;;  %3244 = vmatprep.subr.bf16.mxu1 %v9278_v41  ;;  %v9357_v40 = vld [vmem:[#allocation13 + $0x60] ss:$16 sps:$4 sm:$0xff]   ;;  %v9365_v41 = vld [vmem:[#allocation13 + $0x84] ss:$16 sps:$4 sm:$0xff]  }
 0x3fd   :  { %3159 = vmatpush1.bf16.msra.mxu0 %v9273_v42  ;;  %3245 = vmatpush1.bf16.msra.mxu1 %v9276_v43  ;;  %v9368_v42 = vld [vmem:[#allocation13 + $0x8c] ss:$16 sps:$4 sm:$0xff]   ;;  %v9363_v43 = vld [vmem:[#allocation13 + $0x80] ss:$16 sps:$4 sm:$0xff]  }
 0x3fe   :  { %3160 = vmatprep.subr.bf16.mxu0 %v9281_v44  ;;  %3246 = vmatprep.subr.bf16.mxu1 %v9284_v45  ;;  %v9366_v44 = vld [vmem:[#allocation13 + $0x88] ss:$16 sps:$4 sm:$0xff]   ;;  %v9371_v45 = vld [vmem:[#allocation13 + $0xa4] ss:$16 sps:$4 sm:$0xff]  }
 0x401   :  { %3161 = vmatpush1.bf16.msra.mxu0 %v9279_v46  ;;  %3247 = vmatpush1.bf16.msra.mxu1 %v9282_v47  ;;  %v9374_v46 = vld [vmem:[#allocation13 + $0xac] ss:$16 sps:$4 sm:$0xff]   ;;  %v9369_v47 = vld [vmem:[#allocation13 + $0xa0] ss:$16 sps:$4 sm:$0xff]  }
 0x402   :  { %3162 = vmatprep.subr.bf16.mxu0 %v9287_v48  ;;  %3248 = vmatprep.subr.bf16.mxu1 %v9290_v49  ;;  %v9372_v48 = vld [vmem:[#allocation13 + $0xa8] ss:$16 sps:$4 sm:$0xff]   ;;  %v9377_v49 = vld [vmem:[#allocation13 + $0xc4] ss:$16 sps:$4 sm:$0xff]  }
 0x405   :  { %3163 = vmatpush1.bf16.msra.mxu0 %v9285_v50  ;;  %3249 = vmatpush1.bf16.msra.mxu1 %v9288_v51  ;;  %v9380_v50 = vld [vmem:[#allocation13 + $0xcc] ss:$16 sps:$4 sm:$0xff]   ;;  %v9375_v51 = vld [vmem:[#allocation13 + $0xc0] ss:$16 sps:$4 sm:$0xff]  }
 0x406   :  { %3164 = vmatprep.subr.bf16.mxu0 %v9293_v52  ;;  %3250 = vmatprep.subr.bf16.mxu1 %v9296_v53  ;;  %v9378_v52 = vld [vmem:[#allocation13 + $0xc8] ss:$16 sps:$4 sm:$0xff]   ;;  %v9383_v53 = vld [vmem:[#allocation13 + $0xe4] ss:$16 sps:$4 sm:$0xff]  }
 0x409   :  { %3165 = vmatpush1.bf16.msra.mxu0 %v9291_v54  ;;  %3251 = vmatpush1.bf16.msra.mxu1 %v9294_v55  ;;  %v9386_v54 = vld [vmem:[#allocation13 + $0xec] ss:$16 sps:$4 sm:$0xff]   ;;  %v9381_v55 = vld [vmem:[#allocation13 + $0xe0] ss:$16 sps:$4 sm:$0xff]  }
 0x40a   :  { %3166 = vmatprep.subr.bf16.mxu0 %v9299_v34  ;;  %3252 = vmatprep.subr.bf16.mxu1 %v9302_v56  ;;  %v9384_v34 = vld [vmem:[#allocation13 + $0xe8] ss:$16 sps:$4 sm:$0xff]   ;;  %v9389_v56 = vld [vmem:[#allocation13 + $0x104] ss:$16 sps:$4 sm:$0xff]  }
 0x40d   :  { %3167 = vmatpush1.bf16.msra.mxu0 %v9297_v57  ;;  %3253 = vmatpush1.bf16.msra.mxu1 %v9300_v58  ;;  %v9392_v57 = vld [vmem:[#allocation13 + $0x10c] ss:$16 sps:$4 sm:$0xff]   ;;  %v9387_v58 = vld [vmem:[#allocation13 + $0x100] ss:$16 sps:$4 sm:$0xff]  }
 0x40e   :  { %3168 = vmatprep.subr.bf16.mxu0 %v9305_v60  ;;  %3254 = vmatprep.subr.bf16.mxu1 %v9308_v61  ;;  %v9390_v60 = vld [vmem:[#allocation13 + $0x108] ss:$16 sps:$4 sm:$0xff]   ;;  %v9395_v61 = vld [vmem:[#allocation13 + $0x124] ss:$16 sps:$4 sm:$0xff]  }
 0x411   :  { %3169 = vmatpush1.bf16.msra.mxu0 %v9303_v62  ;;  %3255 = vmatpush1.bf16.msra.mxu1 %v9306_v63  ;;  %v9398_v62 = vld [vmem:[#allocation13 + $0x12c] ss:$16 sps:$4 sm:$0xff]   ;;  %v9393_v63 = vld [vmem:[#allocation13 + $0x120] ss:$16 sps:$4 sm:$0xff]  }
 0x412   :  { %3170 = vmatprep.subr.bf16.mxu0 %v9311_v0  ;;  %3256 = vmatprep.subr.bf16.mxu1 %v9314_v1  ;;  %v9396_v0 = vld [vmem:[#allocation13 + $0x128] ss:$16 sps:$4 sm:$0xff]   ;;  %v9401_v1 = vld [vmem:[#allocation13 + $0x144] ss:$16 sps:$4 sm:$0xff]  }
 0x415   :  { %3171 = vmatpush1.bf16.msra.mxu0 %v9309_v2  ;;  %3257 = vmatpush1.bf16.msra.mxu1 %v9312_v3  ;;  %v9404_v2 = vld [vmem:[#allocation13 + $0x14c] ss:$16 sps:$4 sm:$0xff]   ;;  %v9399_v3 = vld [vmem:[#allocation13 + $0x140] ss:$16 sps:$4 sm:$0xff]  }
 0x416   :  { %3172 = vmatprep.subr.bf16.mxu0 %v9317_v4  ;;  %3258 = vmatprep.subr.bf16.mxu1 %v9320_v5  ;;  %v9402_v4 = vld [vmem:[#allocation13 + $0x148] ss:$16 sps:$4 sm:$0xff]   ;;  %v9407_v5 = vld [vmem:[#allocation13 + $0x164] ss:$16 sps:$4 sm:$0xff]  }
 0x419   :  { %3173 = vmatpush1.bf16.msra.mxu0 %v9315_v6  ;;  %3259 = vmatpush1.bf16.msra.mxu1 %v9318_v7  ;;  %v9410_v6 = vld [vmem:[#allocation13 + $0x16c] ss:$16 sps:$4 sm:$0xff]   ;;  %v9405_v7 = vld [vmem:[#allocation13 + $0x160] ss:$16 sps:$4 sm:$0xff]  }
 0x41a   :  { %3174 = vmatprep.subr.bf16.mxu0 %v9323_v8  ;;  %3260 = vmatprep.subr.bf16.mxu1 %v9326_v59  ;;  %v9408_v8 = vld [vmem:[#allocation13 + $0x168] ss:$16 sps:$4 sm:$0xff]   ;;  %v9413_v59 = vld [vmem:[#allocation13 + $0x184] ss:$16 sps:$4 sm:$0xff]  }
 0x41d   :  { %3175 = vmatpush1.bf16.msra.mxu0 %v9321_v9  ;;  %3261 = vmatpush1.bf16.msra.mxu1 %v9324_v10  ;;  %v9416_v9 = vld [vmem:[#allocation13 + $0x18c] ss:$16 sps:$4 sm:$0xff]   ;;  %v9411_v10 = vld [vmem:[#allocation13 + $0x180] ss:$16 sps:$4 sm:$0xff]  }
 0x41e   :  { %3176 = vmatprep.subr.bf16.mxu0 %v9329_v11  ;;  %3262 = vmatprep.subr.bf16.mxu1 %v9332_v12  ;;  %v9414_v11 = vld [vmem:[#allocation13 + $0x188] ss:$16 sps:$4 sm:$0xff]   ;;  %v9419_v12 = vld [vmem:[#allocation13 + $0x1a4] ss:$16 sps:$4 sm:$0xff]  }
 0x421   :  { %3177 = vmatpush1.bf16.msra.mxu0 %v9327_v14  ;;  %3263 = vmatpush1.bf16.msra.mxu1 %v9330_v16  ;;  %v9422_v14 = vld [vmem:[#allocation13 + $0x1ac] ss:$16 sps:$4 sm:$0xff]   ;;  %v9417_v16 = vld [vmem:[#allocation13 + $0x1a0] ss:$16 sps:$4 sm:$0xff]  }
 0x422   :  { %3178 = vmatprep.subr.bf16.mxu0 %v9335_v19  ;;  %3264 = vmatprep.subr.bf16.mxu1 %v9338_v21  ;;  %v9420_v19 = vld [vmem:[#allocation13 + $0x1a8] ss:$16 sps:$4 sm:$0xff]   ;;  %v9425_v21 = vld [vmem:[#allocation13 + $0x1c4] ss:$16 sps:$4 sm:$0xff]  }
 0x425   :  { %3179 = vmatpush1.bf16.msra.mxu0 %v9333_v23  ;;  %3265 = vmatpush1.bf16.msra.mxu1 %v9336_v24  ;;  %v9428_v23 = vld [vmem:[#allocation13 + $0x1cc] ss:$16 sps:$4 sm:$0xff]   ;;  %v9423_v24 = vld [vmem:[#allocation13 + $0x1c0] ss:$16 sps:$4 sm:$0xff]  }
 0x426   :  { %4079 = vmatprep.subr.bf16.mxu0 %v9341_v25  ;;  %4165 = vmatprep.subr.bf16.mxu1 %v9344_v26  ;;  %v9426_v25 = vld [vmem:[#allocation13 + $0x1c8] ss:$16 sps:$4 sm:$0xff]   ;;  %v9431_v26 = vld [vmem:[#allocation13 + $0x1e4] ss:$16 sps:$4 sm:$0xff]  }
 0x428   :  { %3181 = vmatmul.mubr.bf16.vlgmr.msra.gmra.mrb[12].mxu0 %v10336_v13  ;;  %3267 = vmatmul.mubr.bf16.vlgmr.msra.gmra.mrb[12].mxu1 %v10336_v13  ;;  %v9360_v13 = vld [vmem:[#allocation13 + $0x68] ss:$16 sps:$4 sm:$0xff]  }
 0x429   :  { %4080 = vmatpush1.bf16.msra.mxu0 %v9339_v27  ;;  %4166 = vmatpush1.bf16.msra.mxu1 %v9342_v28  ;;  %v9434_v27 = vld [vmem:[#allocation13 + $0x1ec] ss:$16 sps:$4 sm:$0xff]   ;;  %v9429_v28 = vld [vmem:[#allocation13 + $0x1e0] ss:$16 sps:$4 sm:$0xff]  }
 0x42a   :  { %4081 = vmatprep.subr.bf16.mxu0 %v9347_v29  ;;  %4167 = vmatprep.subr.bf16.mxu1 %v9350_v30  ;;  %v9432_v29 = vld [vmem:[#allocation13 + $0x1e8] ss:$16 sps:$4 sm:$0xff]   ;;  %v9437_v30 = vld [vmem:[#allocation13 + $0x204] ss:$16 sps:$4 sm:$0xff]  }
 0x42d   :  { %4082 = vmatpush1.bf16.msra.mxu0 %v9345_v31  ;;  %4168 = vmatpush1.bf16.msra.mxu1 %v9348_v32  ;;  %v9440_v31 = vld [vmem:[#allocation13 + $0x20c] ss:$16 sps:$4 sm:$0xff]  }
 0x42e   :  { %4083 = vmatprep.subr.bf16.mxu0 %v9353_v33  ;;  %4169 = vmatprep.subr.bf16.mxu1 %v9356_v35  ;;  %v2443_v32 = vld [vmem:[%s10440_s8] sm:$0xf] }
 0x42f   :  { %v2448_v33 = vrot.slane %v2443_v32, %v10302_v17  ;;  %v2456_v35 = vrot.slane %v2443_v32, %v10309_v20 }
 0x431   :  { %4084 = vmatpush1.bf16.msra.mxu0 %v9351_v36  ;;  %4170 = vmatpush1.bf16.msra.mxu1 %v9354_v37  ;;  %v2452_v36 = vrot.slane %v2443_v32, %v10305_v18  ;;  %v2460_v37 = vrot.slane %v2443_v32, %v10313_v22  ;;  %v9479_v32 = vld [vmem:[#allocation13 + $0x2e4] ss:$16 sps:$4 sm:$0xff]  }
 0x432   :  { %4085 = vmatprep.subr.bf16.mxu0 %v9359_v38  ;;  %4171 = vmatprep.subr.bf16.mxu1 %v9362_v39 }
 0x435   :  { %4086 = vmatpush1.bf16.msra.mxu0 %v9357_v40  ;;  %4172 = vmatpush1.bf16.msra.mxu1 %v9360_v13 }
 0x436   :  { %4087 = vmatprep.subr.bf16.mxu0 %v9365_v41  ;;  %4173 = vmatprep.subr.bf16.mxu1 %v9368_v42 }
 0x439   :  { %4088 = vmatpush1.bf16.msra.mxu0 %v9363_v43  ;;  %4174 = vmatpush1.bf16.msra.mxu1 %v9366_v44 }
 0x43a   :  { %4089 = vmatprep.subr.bf16.mxu0 %v9371_v45  ;;  %4175 = vmatprep.subr.bf16.mxu1 %v9374_v46 }
 0x43d   :  { %4090 = vmatpush1.bf16.msra.mxu0 %v9369_v47  ;;  %4176 = vmatpush1.bf16.msra.mxu1 %v9372_v48 }
 0x43e   :  { %4091 = vmatprep.subr.bf16.mxu0 %v9377_v49  ;;  %4177 = vmatprep.subr.bf16.mxu1 %v9380_v50 }
 0x441   :  { %4092 = vmatpush1.bf16.msra.mxu0 %v9375_v51  ;;  %4178 = vmatpush1.bf16.msra.mxu1 %v9378_v52 }
 0x442   :  { %4093 = vmatprep.subr.bf16.mxu0 %v9383_v53  ;;  %4179 = vmatprep.subr.bf16.mxu1 %v9386_v54 }
 0x445   :  { %4094 = vmatpush1.bf16.msra.mxu0 %v9381_v55  ;;  %4180 = vmatpush1.bf16.msra.mxu1 %v9384_v34 }
 0x446   :  { %4095 = vmatprep.subr.bf16.mxu0 %v9389_v56  ;;  %4181 = vmatprep.subr.bf16.mxu1 %v9392_v57 }
 0x449   :  { %4096 = vmatpush1.bf16.msra.mxu0 %v9387_v58  ;;  %4182 = vmatpush1.bf16.msra.mxu1 %v9390_v60 }
 0x44a   :  { %4097 = vmatprep.subr.bf16.mxu0 %v9395_v61  ;;  %4183 = vmatprep.subr.bf16.mxu1 %v9398_v62 }
 0x44d   :  { %4098 = vmatpush1.bf16.msra.mxu0 %v9393_v63  ;;  %4184 = vmatpush1.bf16.msra.mxu1 %v9396_v0 }
 0x44e   :  { %4099 = vmatprep.subr.bf16.mxu0 %v9401_v1  ;;  %4185 = vmatprep.subr.bf16.mxu1 %v9404_v2  ;;  %v9435_v1 = vld [vmem:[#allocation13 + $0x200] ss:$16 sps:$4 sm:$0xff]   ;;  %v9438_v2 = vld [vmem:[#allocation13 + $0x208] ss:$16 sps:$4 sm:$0xff]  }
 0x451   :  { %4100 = vmatpush1.bf16.msra.mxu0 %v9399_v3  ;;  %4186 = vmatpush1.bf16.msra.mxu1 %v9402_v4  ;;  %v9443_v3 = vld [vmem:[#allocation13 + $0x224] ss:$16 sps:$4 sm:$0xff]   ;;  %v9446_v4 = vld [vmem:[#allocation13 + $0x22c] ss:$16 sps:$4 sm:$0xff]  }
 0x452   :  { %4101 = vmatprep.subr.bf16.mxu0 %v9407_v5  ;;  %4187 = vmatprep.subr.bf16.mxu1 %v9410_v6  ;;  %v9441_v5 = vld [vmem:[#allocation13 + $0x220] ss:$16 sps:$4 sm:$0xff]   ;;  %v9444_v6 = vld [vmem:[#allocation13 + $0x228] ss:$16 sps:$4 sm:$0xff]  }
 0x455   :  { %4102 = vmatpush1.bf16.msra.mxu0 %v9405_v7  ;;  %4188 = vmatpush1.bf16.msra.mxu1 %v9408_v8  ;;  %v9449_v7 = vld [vmem:[#allocation13 + $0x244] ss:$16 sps:$4 sm:$0xff]   ;;  %v9452_v8 = vld [vmem:[#allocation13 + $0x24c] ss:$16 sps:$4 sm:$0xff]  }
 0x456   :  { %4103 = vmatprep.subr.bf16.mxu0 %v9413_v59  ;;  %4189 = vmatprep.subr.bf16.mxu1 %v9416_v9  ;;  %v9447_v59 = vld [vmem:[#allocation13 + $0x240] ss:$16 sps:$4 sm:$0xff]   ;;  %v9450_v9 = vld [vmem:[#allocation13 + $0x248] ss:$16 sps:$4 sm:$0xff]  }
 0x459   :  { %4104 = vmatpush1.bf16.msra.mxu0 %v9411_v10  ;;  %4190 = vmatpush1.bf16.msra.mxu1 %v9414_v11  ;;  %v9455_v10 = vld [vmem:[#allocation13 + $0x264] ss:$16 sps:$4 sm:$0xff]   ;;  %v9458_v11 = vld [vmem:[#allocation13 + $0x26c] ss:$16 sps:$4 sm:$0xff]  }
 0x45a   :  { %4105 = vmatprep.subr.bf16.mxu0 %v9419_v12  ;;  %4191 = vmatprep.subr.bf16.mxu1 %v9422_v14  ;;  %v9453_v12 = vld [vmem:[#allocation13 + $0x260] ss:$16 sps:$4 sm:$0xff]   ;;  %v9456_v14 = vld [vmem:[#allocation13 + $0x268] ss:$16 sps:$4 sm:$0xff]  }
 0x45d   :  { %4106 = vmatpush1.bf16.msra.mxu0 %v9417_v16  ;;  %4192 = vmatpush1.bf16.msra.mxu1 %v9420_v19  ;;  %v9461_v16 = vld [vmem:[#allocation13 + $0x284] ss:$16 sps:$4 sm:$0xff]   ;;  %v9464_v19 = vld [vmem:[#allocation13 + $0x28c] ss:$16 sps:$4 sm:$0xff]  }
 0x45e   :  { %4107 = vmatprep.subr.bf16.mxu0 %v9425_v21  ;;  %4193 = vmatprep.subr.bf16.mxu1 %v9428_v23  ;;  %v9459_v21 = vld [vmem:[#allocation13 + $0x280] ss:$16 sps:$4 sm:$0xff]   ;;  %v9462_v23 = vld [vmem:[#allocation13 + $0x288] ss:$16 sps:$4 sm:$0xff]  }
 0x461   :  { %4108 = vmatpush1.bf16.msra.mxu0 %v9423_v24  ;;  %4194 = vmatpush1.bf16.msra.mxu1 %v9426_v25  ;;  %v9467_v24 = vld [vmem:[#allocation13 + $0x2a4] ss:$16 sps:$4 sm:$0xff]   ;;  %v9470_v25 = vld [vmem:[#allocation13 + $0x2ac] ss:$16 sps:$4 sm:$0xff]  }
 0x462   :  { %4109 = vmatprep.subr.bf16.mxu0 %v9431_v26  ;;  %4195 = vmatprep.subr.bf16.mxu1 %v9434_v27  ;;  %v9465_v26 = vld [vmem:[#allocation13 + $0x2a0] ss:$16 sps:$4 sm:$0xff]   ;;  %v9468_v27 = vld [vmem:[#allocation13 + $0x2a8] ss:$16 sps:$4 sm:$0xff]  }
 0x465   :  { %4110 = vmatpush1.bf16.msra.mxu0 %v9429_v28  ;;  %4196 = vmatpush1.bf16.msra.mxu1 %v9432_v29  ;;  %v9473_v28 = vld [vmem:[#allocation13 + $0x2c4] ss:$16 sps:$4 sm:$0xff]   ;;  %v9476_v29 = vld [vmem:[#allocation13 + $0x2cc] ss:$16 sps:$4 sm:$0xff]  }
 0x466   :  { %4122 = vmatprep.subr.bf16.mxu0 %v9437_v30  ;;  %4208 = vmatprep.subr.bf16.mxu1 %v9440_v31  ;;  %v9471_v30 = vld [vmem:[#allocation13 + $0x2c0] ss:$16 sps:$4 sm:$0xff]   ;;  %v9474_v31 = vld [vmem:[#allocation13 + $0x2c8] ss:$16 sps:$4 sm:$0xff]  }
 0x4fb   :  { %v3182_v38 = vpop.f32.mrb[12].mxu0  ;;  %v3268_v39 = vpop.f32.mrb[12].mxu1 }
 0x4fc   :  { %v8635_v40 = vadd.f32 %v3182_v38, %v2448_v33  ;;  %v8639_v13 = vadd.f32 %v3268_v39, %v2456_v35  ;;  %v3184_v41 = vpop.f32.mrb[13].mxu0  ;;  %v3270_v42 = vpop.f32.mrb[13].mxu1  ;;  %v9488_v38 = vld [vmem:[#allocation13 + $0x30c] ss:$16 sps:$4 sm:$0xff]   ;;  %v9483_v39 = vld [vmem:[#allocation13 + $0x300] ss:$16 sps:$4 sm:$0xff]  }
 0x4fd   :  { %v8636_v43 = vadd.f32 %v3184_v41, %v2452_v36  ;;  %v8640_v44 = vadd.f32 %v3270_v42, %v2460_v37  ;;  %v3186_v45 = vpop.f32.mrb[14].mxu0  ;;  %v3272_v46 = vpop.f32.mrb[14].mxu1  ;;  %v9494_v41 = vld [vmem:[#allocation13 + $0x32c] ss:$16 sps:$4 sm:$0xff]   ;;  %v9489_v42 = vld [vmem:[#allocation13 + $0x320] ss:$16 sps:$4 sm:$0xff]  }
 0x4fe   :  { %v8637_v47 = vadd.f32 %v3186_v45, %v2448_v33  ;;  %v8641_v48 = vadd.f32 %v3272_v46, %v2456_v35  ;;  %v3188_v49 = vpop.f32.mrb[15].mxu0  ;;  %v3274_v50 = vpop.f32.mrb[15].mxu1  ;;  %v3277_v53 = vmax.f32 %v8635_v40, 0.0  ;;  %v3279_v54 = vmax.f32 %v8639_v13, 0.0  ;;  %v9482_v33 = vld [vmem:[#allocation13 + $0x2ec] ss:$16 sps:$4 sm:$0xff]  }
 0x4ff   :  { %v8638_v51 = vadd.f32 %v3188_v49, %v2452_v36  ;;  %v8642_v52 = vadd.f32 %v3274_v50, %v2460_v37  ;;  %v3278_v56 = vmax.f32 %v8636_v43, 0.0  ;;  %v3280_v57 = vmax.f32 %v8640_v44, 0.0  ;;  %v9477_v35 = vld [vmem:[#allocation13 + $0x2e0] ss:$16 sps:$4 sm:$0xff]   ;;  %v9480_v36 = vld [vmem:[#allocation13 + $0x2e8] ss:$16 sps:$4 sm:$0xff]  }
 0x500   :  { %v3281_v55 = vmax.f32 %v8637_v47, 0.0  ;;  %v3283_v34 = vmax.f32 %v8641_v48, 0.0  ;;  %v9485_v37 = vld [vmem:[#allocation13 + $0x304] ss:$16 sps:$4 sm:$0xff]   ;;  %v9486_v40 = vld [vmem:[#allocation13 + $0x308] ss:$16 sps:$4 sm:$0xff]  }
 0x501   :  { %v3282_v58 = vmax.f32 %v8638_v51, 0.0  ;;  %v3284_v60 = vmax.f32 %v8642_v52, 0.0  ;;  %v9491_v13 = vld [vmem:[#allocation13 + $0x324] ss:$16 sps:$4 sm:$0xff]   ;;  %v9492_v43 = vld [vmem:[#allocation13 + $0x328] ss:$16 sps:$4 sm:$0xff]  }
 0x502   :  { %v3285_v61 = vpack.c.bf16 %v3281_v55, %v3277_v53  ;;  %v10347_v62 = vpack.c.bf16 %v3283_v34, %v3279_v54  ;;  %v9497_v44 = vld [vmem:[#allocation13 + $0x344] ss:$16 sps:$4 sm:$0xff]   ;;  %v9500_v45 = vld [vmem:[#allocation13 + $0x34c] ss:$16 sps:$4 sm:$0xff]   ;;  %v9495_v46 = vld [vmem:[#allocation13 + $0x340] ss:$16 sps:$4 sm:$0xff]  }
 0x503   :  { %v3286_v63 = vpack.c.bf16 %v3282_v58, %v3278_v56  ;;  %v3288_v0 = vpack.c.bf16 %v3284_v60, %v3280_v57  ;;  %v9498_v47 = vld [vmem:[#allocation13 + $0x348] ss:$16 sps:$4 sm:$0xff]   ;;  %v9503_v48 = vld [vmem:[#allocation13 + $0x364] ss:$16 sps:$4 sm:$0xff]   ;;  %v9506_v49 = vld [vmem:[#allocation13 + $0x36c] ss:$16 sps:$4 sm:$0xff]  }
 0x504   :  { %v9501_v50 = vld [vmem:[#allocation13 + $0x360] ss:$16 sps:$4 sm:$0xff]   ;;  %v9504_v51 = vld [vmem:[#allocation13 + $0x368] ss:$16 sps:$4 sm:$0xff]   ;;  %v9509_v52 = vld [vmem:[#allocation13 + $0x384] ss:$16 sps:$4 sm:$0xff]  }
 0x505   :  { %4111 = vmatprep.mubr.bf16.mxu0 %v3286_v63  ;;  %4197 = vmatprep.mubr.bf16.mxu1 %v3286_v63  ;;  %v9512_v53 = vld [vmem:[#allocation13 + $0x38c] ss:$16 sps:$4 sm:$0xff]   ;;  %v9507_v54 = vld [vmem:[#allocation13 + $0x380] ss:$16 sps:$4 sm:$0xff]   ;;  %v9510_v55 = vld [vmem:[#allocation13 + $0x388] ss:$16 sps:$4 sm:$0xff]  }
 0x506   :  { %4112 = vmatmul.mubr.bf16.vlgmr.msra.gmra.mrb[16].mxu0 %v3285_v61  ;;  %4198 = vmatmul.mubr.bf16.vlgmr.msra.gmra.mrb[16].mxu1 %v3285_v61  ;;  %v9515_v34 = vld [vmem:[#allocation13 + $0x3a4] ss:$16 sps:$4 sm:$0xff]   ;;  %v9518_v56 = vld [vmem:[#allocation13 + $0x3ac] ss:$16 sps:$4 sm:$0xff]   ;;  %v9513_v57 = vld [vmem:[#allocation13 + $0x3a0] ss:$16 sps:$4 sm:$0xff]  }
 0x507   :  { %4123 = vmatpush1.bf16.msra.mxu0 %v9435_v1  ;;  %4209 = vmatpush1.bf16.msra.mxu1 %v9438_v2  ;;  %v9516_v58 = vld [vmem:[#allocation13 + $0x3a8] ss:$16 sps:$4 sm:$0xff]   ;;  %v9521_v60 = vld [vmem:[#allocation13 + $0x3c4] ss:$16 sps:$4 sm:$0xff]   ;;  %v9524_v61 = vld [vmem:[#allocation13 + $0x3cc] ss:$16 sps:$4 sm:$0xff]  }
 0x508   :  { %4154 = vmatprep.mubr.bf16.mxu0 %v3288_v0  ;;  %4240 = vmatprep.mubr.bf16.mxu1 %v3288_v0  ;;  %v9519_v63 = vld [vmem:[#allocation13 + $0x3c0] ss:$16 sps:$4 sm:$0xff]   ;;  %v9522_v0 = vld [vmem:[#allocation13 + $0x3c8] ss:$16 sps:$4 sm:$0xff]   ;;  %v9527_v1 = vld [vmem:[#allocation13 + $0x3e4] ss:$16 sps:$4 sm:$0xff]  }
 0x509   :  { %4124 = vmatprep.subr.bf16.mxu0 %v9443_v3  ;;  %4210 = vmatprep.subr.bf16.mxu1 %v9446_v4  ;;  %v9530_v2 = vld [vmem:[#allocation13 + $0x3ec] ss:$16 sps:$4 sm:$0xff]   ;;  %v4263_v3 = vld [vmem:[#allocation14] sm:$0xff] }
 0x50a   :  { %v4267_v4 = vld [vmem:[#allocation14 + $0x20] sm:$0xff] }
 0x50b   :  { %4125 = vmatpush1.bf16.msra.mxu0 %v9441_v5  ;;  %4211 = vmatpush1.bf16.msra.mxu1 %v9444_v6  ;;  %v4264_v5 = vld [vmem:[#allocation14 + $0x8] sm:$0xff] }
 0x50c   :  { %4126 = vmatprep.subr.bf16.mxu0 %v9449_v7  ;;  %4212 = vmatprep.subr.bf16.mxu1 %v9452_v8  ;;  %v4268_v6 = vld [vmem:[#allocation14 + $0x28] sm:$0xff]  ;;  %v9525_v7 = vld [vmem:[#allocation13 + $0x3e0] ss:$16 sps:$4 sm:$0xff]  }
 0x50d   :  { %v9528_v8 = vld [vmem:[#allocation13 + $0x3e8] ss:$16 sps:$4 sm:$0xff]  }
 0x50f   :  { %4127 = vmatpush1.bf16.msra.mxu0 %v9447_v59  ;;  %4213 = vmatpush1.bf16.msra.mxu1 %v9450_v9  ;;  %v8159_v59 = vcombine.high %v4263_v3, %v4267_v4  ;;  %v8161_v9 = vcombine.high %v4264_v5, %v4268_v6 }
 0x510   :  { %4128 = vmatprep.subr.bf16.mxu0 %v9455_v10  ;;  %4214 = vmatprep.subr.bf16.mxu1 %v9458_v11  ;;  %v4271_v10 = vld [vmem:[#allocation14 + $0x40] sm:$0xff] }
 0x511   :  { %v4275_v11 = vld [vmem:[#allocation14 + $0x60] sm:$0xff] }
 0x513   :  { %4129 = vmatpush1.bf16.msra.mxu0 %v9453_v12  ;;  %4215 = vmatpush1.bf16.msra.mxu1 %v9456_v14  ;;  %v4272_v12 = vld [vmem:[#allocation14 + $0x48] sm:$0xff] }
 0x514   :  { %4130 = vmatprep.subr.bf16.mxu0 %v9461_v16  ;;  %4216 = vmatprep.subr.bf16.mxu1 %v9464_v19  ;;  %v4276_v14 = vld [vmem:[#allocation14 + $0x68] sm:$0xff]  ;;  %v8158_v16 = vcombine.low %v4263_v3, %v4267_v4  ;;  %v8160_v19 = vcombine.low %v4264_v5, %v4268_v6 }
 0x515   :  { %v4324_v3 = vld [vmem:[#allocation14 + $0x1e8] sm:$0xff] }
 0x517   :  { %4131 = vmatpush1.bf16.msra.mxu0 %v9459_v21  ;;  %4217 = vmatpush1.bf16.msra.mxu1 %v9462_v23  ;;  %v8167_v21 = vcombine.high %v4271_v10, %v4275_v11  ;;  %v8169_v23 = vcombine.high %v4272_v12, %v4276_v14 }
 0x518   :  { %4132 = vmatprep.subr.bf16.mxu0 %v9467_v24  ;;  %4218 = vmatprep.subr.bf16.mxu1 %v9470_v25  ;;  %v4279_v24 = vld [vmem:[#allocation14 + $0x80] sm:$0xff] }
 0x519   :  { %v4283_v25 = vld [vmem:[#allocation14 + $0xa0] sm:$0xff] }
 0x51b   :  { %4133 = vmatpush1.bf16.msra.mxu0 %v9465_v26  ;;  %4219 = vmatpush1.bf16.msra.mxu1 %v9468_v27  ;;  %v4280_v26 = vld [vmem:[#allocation14 + $0x88] sm:$0xff] }
 0x51c   :  { %4134 = vmatprep.subr.bf16.mxu0 %v9473_v28  ;;  %4220 = vmatprep.subr.bf16.mxu1 %v9476_v29  ;;  %v4284_v27 = vld [vmem:[#allocation14 + $0xa8] sm:$0xff]  ;;  %v8166_v28 = vcombine.low %v4271_v10, %v4275_v11  ;;  %v8168_v29 = vcombine.low %v4272_v12, %v4276_v14 }
 0x51d   :  { %v4332_v10 = vld [vmem:[#allocation14 + $0x228] sm:$0xff] }
 0x51f   :  { %4135 = vmatpush1.bf16.msra.mxu0 %v9471_v30  ;;  %4221 = vmatpush1.bf16.msra.mxu1 %v9474_v31  ;;  %v8175_v30 = vcombine.high %v4279_v24, %v4283_v25  ;;  %v8177_v31 = vcombine.high %v4280_v26, %v4284_v27 }
 0x520   :  { %4136 = vmatprep.subr.bf16.mxu0 %v9479_v32  ;;  %4222 = vmatprep.subr.bf16.mxu1 %v9482_v33  ;;  %v4287_v32 = vld [vmem:[#allocation14 + $0xc0] sm:$0xff] }
 0x521   :  { %v4291_v33 = vld [vmem:[#allocation14 + $0xe0] sm:$0xff] }
 0x523   :  { %4137 = vmatpush1.bf16.msra.mxu0 %v9477_v35  ;;  %4223 = vmatpush1.bf16.msra.mxu1 %v9480_v36  ;;  %v4288_v35 = vld [vmem:[#allocation14 + $0xc8] sm:$0xff] }
 0x524   :  { %4138 = vmatprep.subr.bf16.mxu0 %v9485_v37  ;;  %4224 = vmatprep.subr.bf16.mxu1 %v9488_v38  ;;  %v4292_v36 = vld [vmem:[#allocation14 + $0xe8] sm:$0xff]  ;;  %v8174_v37 = vcombine.low %v4279_v24, %v4283_v25  ;;  %v8176_v38 = vcombine.low %v4280_v26, %v4284_v27 }
 0x525   :  { %v4340_v24 = vld [vmem:[#allocation14 + $0x268] sm:$0xff] }
 0x527   :  { %4139 = vmatpush1.bf16.msra.mxu0 %v9483_v39  ;;  %4225 = vmatpush1.bf16.msra.mxu1 %v9486_v40  ;;  %v8183_v39 = vcombine.high %v4287_v32, %v4291_v33  ;;  %v4295_v40 = vld [vmem:[#allocation14 + $0x100] sm:$0xff] }
 0x528   :  { %4140 = vmatprep.subr.bf16.mxu0 %v9491_v13  ;;  %4226 = vmatprep.subr.bf16.mxu1 %v9494_v41  ;;  %v4299_v13 = vld [vmem:[#allocation14 + $0x120] sm:$0xff]  ;;  %v4296_v41 = vld [vmem:[#allocation14 + $0x108] sm:$0xff] }
 0x52b   :  { %4141 = vmatpush1.bf16.msra.mxu0 %v9489_v42  ;;  %4227 = vmatpush1.bf16.msra.mxu1 %v9492_v43  ;;  %v4300_v42 = vld [vmem:[#allocation14 + $0x128] sm:$0xff]  ;;  %v8182_v43 = vcombine.low %v4287_v32, %v4291_v33 }
 0x52c   :  { %4142 = vmatprep.subr.bf16.mxu0 %v9497_v44  ;;  %4228 = vmatprep.subr.bf16.mxu1 %v9500_v45  ;;  %v8184_v44 = vcombine.low %v4288_v35, %v4292_v36  ;;  %v8191_v45 = vcombine.high %v4295_v40, %v4299_v13  ;;  %v4348_v32 = vld [vmem:[#allocation14 + $0x2a8] sm:$0xff] }
 0x52f   :  { %4143 = vmatpush1.bf16.msra.mxu0 %v9495_v46  ;;  %4229 = vmatpush1.bf16.msra.mxu1 %v9498_v47  ;;  %v8193_v46 = vcombine.high %v4296_v41, %v4300_v42  ;;  %v4303_v47 = vld [vmem:[#allocation14 + $0x140] sm:$0xff] }
 0x530   :  { %4144 = vmatprep.subr.bf16.mxu0 %v9503_v48  ;;  %4230 = vmatprep.subr.bf16.mxu1 %v9506_v49  ;;  %v4307_v48 = vld [vmem:[#allocation14 + $0x160] sm:$0xff]  ;;  %v4304_v49 = vld [vmem:[#allocation14 + $0x148] sm:$0xff] }
 0x533   :  { %4145 = vmatpush1.bf16.msra.mxu0 %v9501_v50  ;;  %4231 = vmatpush1.bf16.msra.mxu1 %v9504_v51  ;;  %v4308_v50 = vld [vmem:[#allocation14 + $0x168] sm:$0xff]  ;;  %v8190_v51 = vcombine.low %v4295_v40, %v4299_v13 }
 0x534   :  { %4146 = vmatprep.subr.bf16.mxu0 %v9509_v52  ;;  %4232 = vmatprep.subr.bf16.mxu1 %v9512_v53  ;;  %v8192_v52 = vcombine.low %v4296_v41, %v4300_v42  ;;  %v8199_v53 = vcombine.high %v4303_v47, %v4307_v48  ;;  %v4356_v40 = vld [vmem:[#allocation14 + $0x2e8] sm:$0xff] }
 0x537   :  { %4147 = vmatpush1.bf16.msra.mxu0 %v9507_v54  ;;  %4233 = vmatpush1.bf16.msra.mxu1 %v9510_v55  ;;  %v8201_v54 = vcombine.high %v4304_v49, %v4308_v50  ;;  %v4311_v55 = vld [vmem:[#allocation14 + $0x180] sm:$0xff] }
 0x538   :  { %4148 = vmatprep.subr.bf16.mxu0 %v9515_v34  ;;  %4234 = vmatprep.subr.bf16.mxu1 %v9518_v56  ;;  %v4315_v34 = vld [vmem:[#allocation14 + $0x1a0] sm:$0xff]  ;;  %v4312_v56 = vld [vmem:[#allocation14 + $0x188] sm:$0xff] }
 0x539   :  { %v8206_v4 = vcombine.low %v4311_v55, %v4315_v34 }
 0x53b   :  { %4149 = vmatpush1.bf16.msra.mxu0 %v9513_v57  ;;  %4235 = vmatpush1.bf16.msra.mxu1 %v9516_v58  ;;  %v4316_v57 = vld [vmem:[#allocation14 + $0x1a8] sm:$0xff]  ;;  %v8198_v58 = vcombine.low %v4303_v47, %v4307_v48 }
 0x53c   :  { %4150 = vmatprep.subr.bf16.mxu0 %v9521_v60  ;;  %4236 = vmatprep.subr.bf16.mxu1 %v9524_v61  ;;  %v8200_v60 = vcombine.low %v4304_v49, %v4308_v50  ;;  %v8207_v61 = vcombine.high %v4311_v55, %v4315_v34  ;;  %v8208_v5 = vcombine.low %v4312_v56, %v4316_v57  ;;  %v4364_v47 = vld [vmem:[#allocation14 + $0x328] sm:$0xff] }
 0x53d   :  { %v4372_v55 = vld [vmem:[#allocation14 + $0x368] sm:$0xff] }
 0x53f   :  { %4151 = vmatpush1.bf16.msra.mxu0 %v9519_v63  ;;  %4237 = vmatpush1.bf16.msra.mxu1 %v9522_v0  ;;  %v8209_v63 = vcombine.high %v4312_v56, %v4316_v57  ;;  %v4319_v0 = vld [vmem:[#allocation14 + $0x1c0] sm:$0xff] }
 0x540   :  { %4152 = vmatprep.subr.bf16.mxu0 %v9527_v1  ;;  %4238 = vmatprep.subr.bf16.mxu1 %v9530_v2  ;;  %v4323_v1 = vld [vmem:[#allocation14 + $0x1e0] sm:$0xff]  ;;  %v4320_v2 = vld [vmem:[#allocation14 + $0x1c8] sm:$0xff] }
 0x541   :  { %v8215_v6 = vcombine.high %v4319_v0, %v4323_v1  ;;  %v8214_v11 = vcombine.low %v4319_v0, %v4323_v1  ;;  %v8216_v12 = vcombine.low %v4320_v2, %v4324_v3  ;;  %v4379_v0 = vld [vmem:[#allocation14 + $0x3a0] sm:$0xff]  ;;  %v4376_v1 = vld [vmem:[#allocation14 + $0x388] sm:$0xff] }
 0x543   :  { %4153 = vmatpush1.bf16.msra.mxu0 %v9525_v7  ;;  %4239 = vmatpush1.bf16.msra.mxu1 %v9528_v8  ;;  %v8217_v7 = vcombine.high %v4320_v2, %v4324_v3  ;;  %v4327_v8 = vld [vmem:[#allocation14 + $0x200] sm:$0xff]  ;;  %v4380_v3 = vld [vmem:[#allocation14 + $0x3a8] sm:$0xff] }
 0x544   :  { %5841 = vmatprep.subr.bf16.mxu0 %v8159_v59  ;;  %5927 = vmatprep.subr.bf16.mxu1 %v8161_v9  ;;  %v4331_v59 = vld [vmem:[#allocation14 + $0x220] sm:$0xff]  ;;  %v4328_v9 = vld [vmem:[#allocation14 + $0x208] sm:$0xff] }
 0x545   :  { %v8223_v14 = vcombine.high %v4327_v8, %v4331_v59  ;;  %v8222_v25 = vcombine.low %v4327_v8, %v4331_v59  ;;  %v8224_v26 = vcombine.low %v4328_v9, %v4332_v10  ;;  %v4387_v8 = vld [vmem:[#allocation14 + $0x3e0] sm:$0xff]  ;;  %v4384_v59 = vld [vmem:[#allocation14 + $0x3c8] sm:$0xff] }
 0x546   :  { %4155 = vmatmul.mubr.bf16.vlgmr.msra.gmra.mrb[16].mxu0 %v10347_v62  ;;  %4241 = vmatmul.mubr.bf16.vlgmr.msra.gmra.mrb[16].mxu1 %v10347_v62  ;;  %v8185_v62 = vcombine.high %v4288_v35, %v4292_v36 }
 0x547   :  { %5842 = vmatpush1.bf16.msra.mxu0 %v8158_v16  ;;  %5928 = vmatpush1.bf16.msra.mxu1 %v8160_v19  ;;  %v8225_v16 = vcombine.high %v4328_v9, %v4332_v10  ;;  %v4335_v19 = vld [vmem:[#allocation14 + $0x240] sm:$0xff]  ;;  %v4388_v10 = vld [vmem:[#allocation14 + $0x3e8] sm:$0xff] }
 0x548   :  { %5843 = vmatprep.subr.bf16.mxu0 %v8167_v21  ;;  %5929 = vmatprep.subr.bf16.mxu1 %v8169_v23  ;;  %v4339_v21 = vld [vmem:[#allocation14 + $0x260] sm:$0xff]  ;;  %v4336_v23 = vld [vmem:[#allocation14 + $0x248] sm:$0xff] }
 0x549   :  { %v8231_v27 = vcombine.high %v4335_v19, %v4339_v21  ;;  %v8230_v33 = vcombine.low %v4335_v19, %v4339_v21  ;;  %v8232_v35 = vcombine.low %v4336_v23, %v4340_v24  ;;  %v4395_v19 = vld [vmem:[#allocation14 + $0x420] sm:$0xff]  ;;  %v4392_v21 = vld [vmem:[#allocation14 + $0x408] sm:$0xff] }
 0x54b   :  { %5844 = vmatpush1.bf16.msra.mxu0 %v8166_v28  ;;  %5930 = vmatpush1.bf16.msra.mxu1 %v8168_v29  ;;  %v8233_v28 = vcombine.high %v4336_v23, %v4340_v24  ;;  %v4343_v29 = vld [vmem:[#allocation14 + $0x280] sm:$0xff]  ;;  %v4396_v24 = vld [vmem:[#allocation14 + $0x428] sm:$0xff] }
 0x54c   :  { %5845 = vmatprep.subr.bf16.mxu0 %v8175_v30  ;;  %5931 = vmatprep.subr.bf16.mxu1 %v8177_v31  ;;  %v4347_v30 = vld [vmem:[#allocation14 + $0x2a0] sm:$0xff]  ;;  %v4344_v31 = vld [vmem:[#allocation14 + $0x288] sm:$0xff] }
 0x54d   :  { %v8239_v36 = vcombine.high %v4343_v29, %v4347_v30  ;;  %v8238_v13 = vcombine.low %v4343_v29, %v4347_v30  ;;  %v8240_v41 = vcombine.low %v4344_v31, %v4348_v32 }
 0x54f   :  { %5846 = vmatpush1.bf16.msra.mxu0 %v8174_v37  ;;  %5932 = vmatpush1.bf16.msra.mxu1 %v8176_v38  ;;  %v8241_v37 = vcombine.high %v4344_v31, %v4348_v32  ;;  %v4351_v38 = vld [vmem:[#allocation14 + $0x2c0] sm:$0xff] }
 0x550   :  { %5847 = vmatprep.subr.bf16.mxu0 %v8183_v39  ;;  %5933 = vmatprep.subr.bf16.mxu1 %v8185_v62  ;;  %v4355_v39 = vld [vmem:[#allocation14 + $0x2e0] sm:$0xff]  ;;  %v4352_v62 = vld [vmem:[#allocation14 + $0x2c8] sm:$0xff] }
 0x551   :  { %v8247_v42 = vcombine.high %v4351_v38, %v4355_v39  ;;  %v8246_v48 = vcombine.low %v4351_v38, %v4355_v39  ;;  %v8248_v49 = vcombine.low %v4352_v62, %v4356_v40 }
 0x553   :  { %5848 = vmatpush1.bf16.msra.mxu0 %v8182_v43  ;;  %5934 = vmatpush1.bf16.msra.mxu1 %v8184_v44  ;;  %v8249_v43 = vcombine.high %v4352_v62, %v4356_v40  ;;  %v4359_v44 = vld [vmem:[#allocation14 + $0x300] sm:$0xff] }
 0x554   :  { %5849 = vmatprep.subr.bf16.mxu0 %v8191_v45  ;;  %5935 = vmatprep.subr.bf16.mxu1 %v8193_v46  ;;  %v4363_v45 = vld [vmem:[#allocation14 + $0x320] sm:$0xff]  ;;  %v4360_v46 = vld [vmem:[#allocation14 + $0x308] sm:$0xff] }
 0x555   :  { %v8255_v50 = vcombine.high %v4359_v44, %v4363_v45  ;;  %v8254_v34 = vcombine.low %v4359_v44, %v4363_v45  ;;  %v8256_v56 = vcombine.low %v4360_v46, %v4364_v47 }
 0x557   :  { %5850 = vmatpush1.bf16.msra.mxu0 %v8190_v51  ;;  %5936 = vmatpush1.bf16.msra.mxu1 %v8192_v52  ;;  %v8257_v51 = vcombine.high %v4360_v46, %v4364_v47  ;;  %v4367_v52 = vld [vmem:[#allocation14 + $0x340] sm:$0xff] }
 0x558   :  { %5851 = vmatprep.subr.bf16.mxu0 %v8199_v53  ;;  %5937 = vmatprep.subr.bf16.mxu1 %v8201_v54  ;;  %v4371_v53 = vld [vmem:[#allocation14 + $0x360] sm:$0xff]  ;;  %v4368_v54 = vld [vmem:[#allocation14 + $0x348] sm:$0xff] }
 0x559   :  { %v8263_v57 = vcombine.high %v4367_v52, %v4371_v53 }
 0x55b   :  { %5852 = vmatpush1.bf16.msra.mxu0 %v8198_v58  ;;  %5938 = vmatpush1.bf16.msra.mxu1 %v8200_v60  ;;  %v8265_v58 = vcombine.high %v4368_v54, %v4372_v55  ;;  %v8262_v60 = vcombine.low %v4367_v52, %v4371_v53 }
 0x55c   :  { %5853 = vmatprep.subr.bf16.mxu0 %v8207_v61  ;;  %5939 = vmatprep.subr.bf16.mxu1 %v8209_v63  ;;  %v8264_v61 = vcombine.low %v4368_v54, %v4372_v55  ;;  %v4375_v63 = vld [vmem:[#allocation14 + $0x380] sm:$0xff] }
 0x55d   :  { %v8271_v2 = vcombine.high %v4375_v63, %v4379_v0 }
 0x55f   :  { %5854 = vmatpush1.bf16.msra.mxu0 %v8206_v4  ;;  %5940 = vmatpush1.bf16.msra.mxu1 %v8208_v5  ;;  %v8270_v4 = vcombine.low %v4375_v63, %v4379_v0  ;;  %v8272_v5 = vcombine.low %v4376_v1, %v4380_v3 }
 0x560   :  { %5855 = vmatprep.subr.bf16.mxu0 %v8215_v6  ;;  %5941 = vmatprep.subr.bf16.mxu1 %v8217_v7  ;;  %v8273_v6 = vcombine.high %v4376_v1, %v4380_v3  ;;  %v4383_v7 = vld [vmem:[#allocation14 + $0x3c0] sm:$0xff] }
 0x561   :  { %v8279_v9 = vcombine.high %v4383_v7, %v4387_v8  ;;  %v4407_v1 = vld [vmem:[#allocation14 + $0x480] sm:$0xff] }
 0x563   :  { %5856 = vmatpush1.bf16.msra.mxu0 %v8214_v11  ;;  %5942 = vmatpush1.bf16.msra.mxu1 %v8216_v12  ;;  %v8278_v11 = vcombine.low %v4383_v7, %v4387_v8  ;;  %v8280_v12 = vcombine.low %v4384_v59, %v4388_v10 }
 0x564   :  { %5857 = vmatprep.subr.bf16.mxu0 %v8223_v14  ;;  %5943 = vmatprep.subr.bf16.mxu1 %v8225_v16  ;;  %v8281_v14 = vcombine.high %v4384_v59, %v4388_v10  ;;  %v4391_v16 = vld [vmem:[#allocation14 + $0x400] sm:$0xff] }
 0x565   :  { %v8287_v23 = vcombine.high %v4391_v16, %v4395_v19  ;;  %v4415_v10 = vld [vmem:[#allocation14 + $0x4c0] sm:$0xff] }
 0x567   :  { %5858 = vmatpush1.bf16.msra.mxu0 %v8222_v25  ;;  %5944 = vmatpush1.bf16.msra.mxu1 %v8224_v26  ;;  %v8286_v25 = vcombine.low %v4391_v16, %v4395_v19  ;;  %v8288_v26 = vcombine.low %v4392_v21, %v4396_v24 }
 0x568   :  { %5859 = vmatprep.subr.bf16.mxu0 %v8231_v27  ;;  %5945 = vmatprep.subr.bf16.mxu1 %v8233_v28  ;;  %v8289_v27 = vcombine.high %v4392_v21, %v4396_v24  ;;  %v3417_v28 = vld [vmem:[%s10442_s10] sm:$0xf]  ;;  %v4423_v24 = vld [vmem:[#allocation14 + $0x500] sm:$0xff] }
 0x569   :  { %v3422_v29 = vrot.slane %v3417_v28, %v10302_v17  ;;  %v3430_v30 = vrot.slane %v3417_v28, %v10309_v20  ;;  %v3426_v31 = vrot.slane %v3417_v28, %v10305_v18  ;;  %v3434_v32 = vrot.slane %v3417_v28, %v10313_v22 }
 0x56b   :  { %5860 = vmatpush1.bf16.msra.mxu0 %v8230_v33  ;;  %5946 = vmatpush1.bf16.msra.mxu1 %v8232_v35 }
 0x56c   :  { %5861 = vmatprep.subr.bf16.mxu0 %v8239_v36  ;;  %5947 = vmatprep.subr.bf16.mxu1 %v8241_v37 }
 0x56f   :  { %5862 = vmatpush1.bf16.msra.mxu0 %v8238_v13  ;;  %5948 = vmatpush1.bf16.msra.mxu1 %v8240_v41 }
 0x570   :  { %5863 = vmatprep.subr.bf16.mxu0 %v8247_v42  ;;  %5949 = vmatprep.subr.bf16.mxu1 %v8249_v43 }
 0x573   :  { %5864 = vmatpush1.bf16.msra.mxu0 %v8246_v48  ;;  %5950 = vmatpush1.bf16.msra.mxu1 %v8248_v49 }
 0x574   :  { %5865 = vmatprep.subr.bf16.mxu0 %v8255_v50  ;;  %5951 = vmatprep.subr.bf16.mxu1 %v8257_v51 }
 0x577   :  { %5866 = vmatpush1.bf16.msra.mxu0 %v8254_v34  ;;  %5952 = vmatpush1.bf16.msra.mxu1 %v8256_v56  ;;  %v4399_v34 = vld [vmem:[#allocation14 + $0x440] sm:$0xff] }
 0x578   :  { %5867 = vmatprep.subr.bf16.mxu0 %v8263_v57  ;;  %5953 = vmatprep.subr.bf16.mxu1 %v8265_v58  ;;  %v4403_v58 = vld [vmem:[#allocation14 + $0x460] sm:$0xff] }
 0x579   :  { %v8294_v7 = vcombine.low %v4399_v34, %v4403_v58 }
 0x57b   :  { %5868 = vmatpush1.bf16.msra.mxu0 %v8262_v60  ;;  %5954 = vmatpush1.bf16.msra.mxu1 %v8264_v61  ;;  %v4400_v60 = vld [vmem:[#allocation14 + $0x448] sm:$0xff] }
 0x57c   :  { %5869 = vmatprep.subr.bf16.mxu0 %v8271_v2  ;;  %5955 = vmatprep.subr.bf16.mxu1 %v8273_v6  ;;  %v4404_v61 = vld [vmem:[#allocation14 + $0x468] sm:$0xff]  ;;  %v8295_v2 = vcombine.high %v4399_v34, %v4403_v58  ;;  %v4459_v34 = vld [vmem:[#allocation14 + $0x620] sm:$0xff] }
 0x57d   :  { %v8297_v3 = vcombine.high %v4400_v60, %v4404_v61  ;;  %v4412_v6 = vld [vmem:[#allocation14 + $0x4a8] sm:$0xff]  ;;  %v8296_v8 = vcombine.low %v4400_v60, %v4404_v61 }
 0x57e   :  { %v4456_v58 = vld [vmem:[#allocation14 + $0x608] sm:$0xff] }
 0x57f   :  { %5870 = vmatpush1.bf16.msra.mxu0 %v8270_v4  ;;  %5956 = vmatpush1.bf16.msra.mxu1 %v8272_v5  ;;  %v4411_v4 = vld [vmem:[#allocation14 + $0x4a0] sm:$0xff]  ;;  %v4408_v5 = vld [vmem:[#allocation14 + $0x488] sm:$0xff] }
 0x580   :  { %5871 = vmatprep.subr.bf16.mxu0 %v8279_v9  ;;  %5957 = vmatprep.subr.bf16.mxu1 %v8281_v14  ;;  %v8303_v59 = vcombine.high %v4407_v1, %v4411_v4  ;;  %v8305_v9 = vcombine.high %v4408_v5, %v4412_v6  ;;  %v4420_v14 = vld [vmem:[#allocation14 + $0x4e8] sm:$0xff]  ;;  %v8302_v16 = vcombine.low %v4407_v1, %v4411_v4  ;;  %v4463_v4 = vld [vmem:[#allocation14 + $0x640] sm:$0xff] }
 0x581   :  { %v8304_v19 = vcombine.low %v4408_v5, %v4412_v6  ;;  %v4460_v60 = vld [vmem:[#allocation14 + $0x628] sm:$0xff]  ;;  %v4467_v5 = vld [vmem:[#allocation14 + $0x660] sm:$0xff] }
 0x582   :  { %v4464_v6 = vld [vmem:[#allocation14 + $0x648] sm:$0xff] }
 0x583   :  { %5872 = vmatpush1.bf16.msra.mxu0 %v8278_v11  ;;  %5958 = vmatpush1.bf16.msra.mxu1 %v8280_v12  ;;  %v4419_v11 = vld [vmem:[#allocation14 + $0x4e0] sm:$0xff]  ;;  %v4416_v12 = vld [vmem:[#allocation14 + $0x4c8] sm:$0xff] }
 0x584   :  { %5884 = vmatprep.subr.bf16.mxu0 %v8287_v23  ;;  %5970 = vmatprep.subr.bf16.mxu1 %v8289_v27  ;;  %v8311_v21 = vcombine.high %v4415_v10, %v4419_v11  ;;  %v8313_v23 = vcombine.high %v4416_v12, %v4420_v14  ;;  %v4428_v27 = vld [vmem:[#allocation14 + $0x528] sm:$0xff]  ;;  %v8310_v28 = vcombine.low %v4415_v10, %v4419_v11  ;;  %v4471_v11 = vld [vmem:[#allocation14 + $0x680] sm:$0xff] }
 0x619   :  { %v4156_v33 = vpop.f32.mrb[16].mxu0  ;;  %v4242_v35 = vpop.f32.mrb[16].mxu1 }
 0x61a   :  { %v8643_v36 = vadd.f32 %v4156_v33, %v3422_v29  ;;  %v8647_v37 = vadd.f32 %v4242_v35, %v3430_v30  ;;  %v4158_v38 = vpop.f32.mrb[17].mxu0  ;;  %v4244_v39 = vpop.f32.mrb[17].mxu1  ;;  %v4435_v33 = vld [vmem:[#allocation14 + $0x560] sm:$0xff]  ;;  %v4432_v35 = vld [vmem:[#allocation14 + $0x548] sm:$0xff] }
 0x61b   :  { %v8644_v62 = vadd.f32 %v4158_v38, %v3426_v31  ;;  %v8648_v40 = vadd.f32 %v4244_v39, %v3434_v32  ;;  %v4160_v13 = vpop.f32.mrb[18].mxu0  ;;  %v4246_v41 = vpop.f32.mrb[18].mxu1 }
 0x61c   :  { %v8645_v42 = vadd.f32 %v4160_v13, %v3422_v29  ;;  %v8649_v43 = vadd.f32 %v4246_v41, %v3430_v30  ;;  %v4162_v44 = vpop.f32.mrb[19].mxu0  ;;  %v4248_v45 = vpop.f32.mrb[19].mxu1  ;;  %v4251_v48 = vmax.f32 %v8643_v36, 0.0  ;;  %v4253_v49 = vmax.f32 %v8647_v37, 0.0  ;;  %v4436_v36 = vld [vmem:[#allocation14 + $0x568] sm:$0xff]  ;;  %v4443_v13 = vld [vmem:[#allocation14 + $0x5a0] sm:$0xff] }
 0x61d   :  { %v8646_v46 = vadd.f32 %v4162_v44, %v3426_v31  ;;  %v8650_v47 = vadd.f32 %v4248_v45, %v3434_v32  ;;  %v4252_v52 = vmax.f32 %v8644_v62, 0.0  ;;  %v4254_v53 = vmax.f32 %v8648_v40, 0.0  ;;  %v4431_v32 = vld [vmem:[#allocation14 + $0x540] sm:$0xff]  ;;  %v4440_v41 = vld [vmem:[#allocation14 + $0x588] sm:$0xff] }
 0x61e   :  { %v4255_v50 = vmax.f32 %v8645_v42, 0.0  ;;  %v4257_v51 = vmax.f32 %v8649_v43, 0.0  ;;  %v8312_v29 = vcombine.low %v4416_v12, %v4420_v14  ;;  %v8327_v39 = vcombine.high %v4431_v32, %v4435_v33  ;;  %v4439_v40 = vld [vmem:[#allocation14 + $0x580] sm:$0xff]  ;;  %v4444_v42 = vld [vmem:[#allocation14 + $0x5a8] sm:$0xff] }
 0x61f   :  { %v4256_v54 = vmax.f32 %v8646_v46, 0.0  ;;  %v4258_v55 = vmax.f32 %v8650_v47, 0.0  ;;  %v8329_v62 = vcombine.high %v4432_v35, %v4436_v36  ;;  %v8326_v43 = vcombine.low %v4431_v32, %v4435_v33  ;;  %v4447_v47 = vld [vmem:[#allocation14 + $0x5c0] sm:$0xff]  ;;  %v4472_v14 = vld [vmem:[#allocation14 + $0x688] sm:$0xff] }
 0x620   :  { %v10358_v56 = vpack.c.bf16 %v4255_v50, %v4251_v48  ;;  %v10360_v57 = vpack.c.bf16 %v4257_v51, %v4253_v49  ;;  %v8328_v44 = vcombine.low %v4432_v35, %v4436_v36  ;;  %v8335_v45 = vcombine.high %v4439_v40, %v4443_v13  ;;  %v4451_v48 = vld [vmem:[#allocation14 + $0x5e0] sm:$0xff]  ;;  %v4448_v49 = vld [vmem:[#allocation14 + $0x5c8] sm:$0xff] }
 0x621   :  { %v10362_v63 = vpack.c.bf16 %v4256_v54, %v4252_v52  ;;  %v10364_v0 = vpack.c.bf16 %v4258_v55, %v4254_v53  ;;  %v8337_v46 = vcombine.high %v4440_v41, %v4444_v42  ;;  %v4452_v50 = vld [vmem:[#allocation14 + $0x5e8] sm:$0xff]  ;;  %v8334_v51 = vcombine.low %v4439_v40, %v4443_v13  ;;  %v4455_v55 = vld [vmem:[#allocation14 + $0x600] sm:$0xff] }
 0x622   :  { %v8336_v52 = vcombine.low %v4440_v41, %v4444_v42  ;;  %v8343_v53 = vcombine.high %v4447_v47, %v4451_v48  ;;  %v8345_v54 = vcombine.high %v4448_v49, %v4452_v50  ;;  %v8342_v61 = vcombine.low %v4447_v47, %v4451_v48  ;;  %v4475_v12 = vld [vmem:[#allocation14 + $0x6a0] sm:$0xff]  ;;  %v4488_v36 = vld [vmem:[#allocation14 + $0x708] sm:$0xff] }
 0x623   :  { %5873 = vmatprep.mubr.bf16.mxu0 %v10362_v63  ;;  %5959 = vmatprep.mubr.bf16.mxu1 %v10362_v63  ;;  %v8344_v1 = vcombine.low %v4448_v49, %v4452_v50  ;;  %v4487_v33 = vld [vmem:[#allocation14 + $0x700] sm:$0xff]  ;;  %v4496_v42 = vld [vmem:[#allocation14 + $0x748] sm:$0xff] }
 0x624   :  { %5874 = vmatmul.mubr.bf16.vlgmr.msra.gmra.mrb[20].mxu0 %v10358_v56  ;;  %5960 = vmatmul.mubr.bf16.vlgmr.msra.gmra.mrb[20].mxu1 %v10358_v56  ;;  %v4491_v35 = vld [vmem:[#allocation14 + $0x720] sm:$0xff]  ;;  %v4504_v50 = vld [vmem:[#allocation14 + $0x788] sm:$0xff] }
 0x625   :  { %5885 = vmatpush1.bf16.msra.mxu0 %v8286_v25  ;;  %5971 = vmatpush1.bf16.msra.mxu1 %v8288_v26  ;;  %v4427_v25 = vld [vmem:[#allocation14 + $0x520] sm:$0xff]  ;;  %v4424_v26 = vld [vmem:[#allocation14 + $0x508] sm:$0xff] }
 0x626   :  { %5916 = vmatprep.mubr.bf16.mxu0 %v10364_v0  ;;  %6002 = vmatprep.mubr.bf16.mxu1 %v10364_v0  ;;  %v8319_v30 = vcombine.high %v4423_v24, %v4427_v25  ;;  %v8321_v31 = vcombine.high %v4424_v26, %v4428_v27  ;;  %v8318_v37 = vcombine.low %v4423_v24, %v4427_v25  ;;  %v4479_v25 = vld [vmem:[#allocation14 + $0x6c0] sm:$0xff] }
 0x627   :  { %5886 = vmatprep.subr.bf16.mxu0 %v8295_v2  ;;  %5972 = vmatprep.subr.bf16.mxu1 %v8297_v3  ;;  %v8320_v38 = vcombine.low %v4424_v26, %v4428_v27  ;;  %v8351_v2 = vcombine.high %v4455_v55, %v4459_v34  ;;  %v8353_v3 = vcombine.high %v4456_v58, %v4460_v60  ;;  %v4483_v26 = vld [vmem:[#allocation14 + $0x6e0] sm:$0xff]  ;;  %v4480_v27 = vld [vmem:[#allocation14 + $0x6c8] sm:$0xff] }
 0x628   :  { %v4495_v13 = vld [vmem:[#allocation14 + $0x740] sm:$0xff] }
 0x629   :  { %5887 = vmatpush1.bf16.msra.mxu0 %v8294_v7  ;;  %5973 = vmatpush1.bf16.msra.mxu1 %v8296_v8  ;;  %v4468_v7 = vld [vmem:[#allocation14 + $0x668] sm:$0xff]  ;;  %v8350_v8 = vcombine.low %v4455_v55, %v4459_v34  ;;  %v4499_v41 = vld [vmem:[#allocation14 + $0x760] sm:$0xff] }
 0x62a   :  { %5888 = vmatprep.subr.bf16.mxu0 %v8303_v59  ;;  %5974 = vmatprep.subr.bf16.mxu1 %v8305_v9  ;;  %v8352_v59 = vcombine.low %v4456_v58, %v4460_v60  ;;  %v8359_v9 = vcombine.high %v4463_v4, %v4467_v5  ;;  %v8361_v10 = vcombine.high %v4464_v6, %v4468_v7  ;;  %v4503_v48 = vld [vmem:[#allocation14 + $0x780] sm:$0xff]  ;;  %v4512_v60 = vld [vmem:[#allocation14 + $0x7c8] sm:$0xff] }
 0x62b   :  { %v4507_v49 = vld [vmem:[#allocation14 + $0x7a0] sm:$0xff] }
 0x62c   :  { %v4511_v34 = vld [vmem:[#allocation14 + $0x7c0] sm:$0xff] }
 0x62d   :  { %5889 = vmatpush1.bf16.msra.mxu0 %v8302_v16  ;;  %5975 = vmatpush1.bf16.msra.mxu1 %v8304_v19  ;;  %v4476_v16 = vld [vmem:[#allocation14 + $0x6a8] sm:$0xff]  ;;  %v8358_v19 = vcombine.low %v4463_v4, %v4467_v5  ;;  %v4515_v58 = vld [vmem:[#allocation14 + $0x7e0] sm:$0xff]  ;;  %v4265_v5 = vld [vmem:[#allocation14 + $0x10] sm:$0xff] }
 0x62e   :  { %5890 = vmatprep.subr.bf16.mxu0 %v8311_v21  ;;  %5976 = vmatprep.subr.bf16.mxu1 %v8313_v23  ;;  %v8360_v21 = vcombine.low %v4464_v6, %v4468_v7  ;;  %v8367_v23 = vcombine.high %v4471_v11, %v4475_v12  ;;  %v8369_v24 = vcombine.high %v4472_v14, %v4476_v16  ;;  %v4269_v6 = vld [vmem:[#allocation14 + $0x30] sm:$0xff]  ;;  %v4266_v7 = vld [vmem:[#allocation14 + $0x18] sm:$0xff] }
 0x631   :  { %5891 = vmatpush1.bf16.msra.mxu0 %v8310_v28  ;;  %5977 = vmatpush1.bf16.msra.mxu1 %v8312_v29  ;;  %v4484_v28 = vld [vmem:[#allocation14 + $0x6e8] sm:$0xff]  ;;  %v8366_v29 = vcombine.low %v4471_v11, %v4475_v12  ;;  %v4273_v12 = vld [vmem:[#allocation14 + $0x50] sm:$0xff] }
 0x632   :  { %5892 = vmatprep.subr.bf16.mxu0 %v8319_v30  ;;  %5978 = vmatprep.subr.bf16.mxu1 %v8321_v31  ;;  %v8368_v30 = vcombine.low %v4472_v14, %v4476_v16  ;;  %v8375_v31 = vcombine.high %v4479_v25, %v4483_v26  ;;  %v8377_v32 = vcombine.high %v4480_v27, %v4484_v28  ;;  %v4277_v14 = vld [vmem:[#allocation14 + $0x70] sm:$0xff]  ;;  %v4274_v16 = vld [vmem:[#allocation14 + $0x58] sm:$0xff] }
 0x635   :  { %5893 = vmatpush1.bf16.msra.mxu0 %v8318_v37  ;;  %5979 = vmatpush1.bf16.msra.mxu1 %v8320_v38  ;;  %v4492_v37 = vld [vmem:[#allocation14 + $0x728] sm:$0xff]  ;;  %v8374_v38 = vcombine.low %v4479_v25, %v4483_v26  ;;  %v4281_v26 = vld [vmem:[#allocation14 + $0x90] sm:$0xff] }
 0x636   :  { %5894 = vmatprep.subr.bf16.mxu0 %v8327_v39  ;;  %5980 = vmatprep.subr.bf16.mxu1 %v8329_v62  ;;  %v8376_v39 = vcombine.low %v4480_v27, %v4484_v28  ;;  %v8383_v62 = vcombine.high %v4487_v33, %v4491_v35  ;;  %v8385_v40 = vcombine.high %v4488_v36, %v4492_v37  ;;  %v4285_v27 = vld [vmem:[#allocation14 + $0xb0] sm:$0xff]  ;;  %v4282_v28 = vld [vmem:[#allocation14 + $0x98] sm:$0xff] }
 0x639   :  { %5895 = vmatpush1.bf16.msra.mxu0 %v8326_v43  ;;  %5981 = vmatpush1.bf16.msra.mxu1 %v8328_v44  ;;  %v4500_v43 = vld [vmem:[#allocation14 + $0x768] sm:$0xff]  ;;  %v8382_v44 = vcombine.low %v4487_v33, %v4491_v35  ;;  %v4289_v35 = vld [vmem:[#allocation14 + $0xd0] sm:$0xff] }
 0x63a   :  { %5896 = vmatprep.subr.bf16.mxu0 %v8335_v45  ;;  %5982 = vmatprep.subr.bf16.mxu1 %v8337_v46  ;;  %v8384_v45 = vcombine.low %v4488_v36, %v4492_v37  ;;  %v8391_v46 = vcombine.high %v4495_v13, %v4499_v41  ;;  %v8393_v47 = vcombine.high %v4496_v42, %v4500_v43  ;;  %v4293_v36 = vld [vmem:[#allocation14 + $0xf0] sm:$0xff]  ;;  %v4290_v37 = vld [vmem:[#allocation14 + $0xd8] sm:$0xff] }
 0x63d   :  { %5897 = vmatpush1.bf16.msra.mxu0 %v8334_v51  ;;  %5983 = vmatpush1.bf16.msra.mxu1 %v8336_v52  ;;  %v4508_v51 = vld [vmem:[#allocation14 + $0x7a8] sm:$0xff]  ;;  %v8390_v52 = vcombine.low %v4495_v13, %v4499_v41  ;;  %v4297_v41 = vld [vmem:[#allocation14 + $0x110] sm:$0xff] }
 0x63e   :  { %5898 = vmatprep.subr.bf16.mxu0 %v8343_v53  ;;  %5984 = vmatprep.subr.bf16.mxu1 %v8345_v54  ;;  %v8392_v53 = vcombine.low %v4496_v42, %v4500_v43  ;;  %v8399_v54 = vcombine.high %v4503_v48, %v4507_v49  ;;  %v8401_v55 = vcombine.high %v4504_v50, %v4508_v51  ;;  %v4301_v42 = vld [vmem:[#allocation14 + $0x130] sm:$0xff]  ;;  %v4302_v43 = vld [vmem:[#allocation14 + $0x138] sm:$0xff] }
 0x641   :  { %5899 = vmatpush1.bf16.msra.mxu0 %v8342_v61  ;;  %5985 = vmatpush1.bf16.msra.mxu1 %v8344_v1  ;;  %v4516_v61 = vld [vmem:[#allocation14 + $0x7e8] sm:$0xff]  ;;  %v8398_v1 = vcombine.low %v4503_v48, %v4507_v49  ;;  %v4305_v48 = vld [vmem:[#allocation14 + $0x150] sm:$0xff] }
 0x642   :  { %5900 = vmatprep.subr.bf16.mxu0 %v8351_v2  ;;  %5986 = vmatprep.subr.bf16.mxu1 %v8353_v3  ;;  %v8400_v2 = vcombine.low %v4504_v50, %v4508_v51  ;;  %v8407_v3 = vcombine.high %v4511_v34, %v4515_v58  ;;  %v8409_v4 = vcombine.high %v4512_v60, %v4516_v61  ;;  %v4309_v49 = vld [vmem:[#allocation14 + $0x170] sm:$0xff]  ;;  %v4306_v50 = vld [vmem:[#allocation14 + $0x158] sm:$0xff] }
 0x643   :  { %v4310_v51 = vld [vmem:[#allocation14 + $0x178] sm:$0xff] }
 0x645   :  { %5901 = vmatpush1.bf16.msra.mxu0 %v8350_v8  ;;  %5987 = vmatpush1.bf16.msra.mxu1 %v8352_v59  ;;  %v4270_v8 = vld [vmem:[#allocation14 + $0x38] sm:$0xff]  ;;  %v8406_v59 = vcombine.low %v4511_v34, %v4515_v58  ;;  %v4313_v34 = vld [vmem:[#allocation14 + $0x190] sm:$0xff] }
 0x646   :  { %5902 = vmatprep.subr.bf16.mxu0 %v8359_v9  ;;  %5988 = vmatprep.subr.bf16.mxu1 %v8361_v10  ;;  %v8408_v9 = vcombine.low %v4512_v60, %v4516_v61  ;;  %v8163_v10 = vcombine.high %v4265_v5, %v4269_v6  ;;  %v8165_v11 = vcombine.high %v4266_v7, %v4270_v8  ;;  %v4317_v58 = vld [vmem:[#allocation14 + $0x1b0] sm:$0xff]  ;;  %v4314_v60 = vld [vmem:[#allocation14 + $0x198] sm:$0xff] }
 0x647   :  { %v4318_v61 = vld [vmem:[#allocation14 + $0x1b8] sm:$0xff] }
 0x649   :  { %5903 = vmatpush1.bf16.msra.mxu0 %v8358_v19  ;;  %5989 = vmatpush1.bf16.msra.mxu1 %v8360_v21  ;;  %v4278_v19 = vld [vmem:[#allocation14 + $0x78] sm:$0xff]  ;;  %v8162_v21 = vcombine.low %v4265_v5, %v4269_v6  ;;  %v4321_v5 = vld [vmem:[#allocation14 + $0x1d0] sm:$0xff] }
 0x64a   :  { %5904 = vmatprep.subr.bf16.mxu0 %v8367_v23  ;;  %5990 = vmatprep.subr.bf16.mxu1 %v8369_v24  ;;  %v8164_v23 = vcombine.low %v4266_v7, %v4270_v8  ;;  %v8171_v24 = vcombine.high %v4273_v12, %v4277_v14  ;;  %v8173_v25 = vcombine.high %v4274_v16, %v4278_v19  ;;  %v4325_v6 = vld [vmem:[#allocation14 + $0x1f0] sm:$0xff]  ;;  %v4322_v7 = vld [vmem:[#allocation14 + $0x1d8] sm:$0xff] }
 0x64b   :  { %v4326_v8 = vld [vmem:[#allocation14 + $0x1f8] sm:$0xff] }
 0x64d   :  { %5905 = vmatpush1.bf16.msra.mxu0 %v8366_v29  ;;  %5991 = vmatpush1.bf16.msra.mxu1 %v8368_v30  ;;  %v4286_v29 = vld [vmem:[#allocation14 + $0xb8] sm:$0xff]  ;;  %v8170_v30 = vcombine.low %v4273_v12, %v4277_v14  ;;  %v4329_v12 = vld [vmem:[#allocation14 + $0x210] sm:$0xff] }
 0x64e   :  { %5906 = vmatprep.subr.bf16.mxu0 %v8375_v31  ;;  %5992 = vmatprep.subr.bf16.mxu1 %v8377_v32  ;;  %v8172_v31 = vcombine.low %v4274_v16, %v4278_v19  ;;  %v8179_v32 = vcombine.high %v4281_v26, %v4285_v27  ;;  %v8181_v33 = vcombine.high %v4282_v28, %v4286_v29  ;;  %v4333_v14 = vld [vmem:[#allocation14 + $0x230] sm:$0xff]  ;;  %v4330_v16 = vld [vmem:[#allocation14 + $0x218] sm:$0xff] }
 0x64f   :  { %v4334_v19 = vld [vmem:[#allocation14 + $0x238] sm:$0xff] }
 0x651   :  { %5907 = vmatpush1.bf16.msra.mxu0 %v8374_v38  ;;  %5993 = vmatpush1.bf16.msra.mxu1 %v8376_v39  ;;  %v4294_v38 = vld [vmem:[#allocation14 + $0xf8] sm:$0xff]  ;;  %v8178_v39 = vcombine.low %v4281_v26, %v4285_v27  ;;  %v4337_v26 = vld [vmem:[#allocation14 + $0x250] sm:$0xff] }
 0x652   :  { %5908 = vmatprep.subr.bf16.mxu0 %v8383_v62  ;;  %5994 = vmatprep.subr.bf16.mxu1 %v8385_v40  ;;  %v8180_v62 = vcombine.low %v4282_v28, %v4286_v29  ;;  %v8187_v40 = vcombine.high %v4289_v35, %v4293_v36  ;;  %v8189_v13 = vcombine.high %v4290_v37, %v4294_v38  ;;  %v4341_v27 = vld [vmem:[#allocation14 + $0x270] sm:$0xff]  ;;  %v4338_v28 = vld [vmem:[#allocation14 + $0x258] sm:$0xff] }
 0x653   :  { %v4342_v29 = vld [vmem:[#allocation14 + $0x278] sm:$0xff] }
 0x655   :  { %5909 = vmatpush1.bf16.msra.mxu0 %v8382_v44  ;;  %5995 = vmatpush1.bf16.msra.mxu1 %v8384_v45  ;;  %v8186_v44 = vcombine.low %v4289_v35, %v4293_v36  ;;  %v8188_v45 = vcombine.low %v4290_v37, %v4294_v38  ;;  %v4345_v35 = vld [vmem:[#allocation14 + $0x290] sm:$0xff]  ;;  %v4346_v37 = vld [vmem:[#allocation14 + $0x298] sm:$0xff] }
 0x656   :  { %5910 = vmatprep.subr.bf16.mxu0 %v8391_v46  ;;  %5996 = vmatprep.subr.bf16.mxu1 %v8393_v47  ;;  %v8195_v46 = vcombine.high %v4297_v41, %v4301_v42  ;;  %v4349_v36 = vld [vmem:[#allocation14 + $0x2b0] sm:$0xff]  ;;  %v4350_v38 = vld [vmem:[#allocation14 + $0x2b8] sm:$0xff] }
 0x659   :  { %5911 = vmatpush1.bf16.msra.mxu0 %v8390_v52  ;;  %5997 = vmatpush1.bf16.msra.mxu1 %v8392_v53  ;;  %v8194_v52 = vcombine.low %v4297_v41, %v4301_v42  ;;  %v4353_v41 = vld [vmem:[#allocation14 + $0x2d0] sm:$0xff] }
 0x65a   :  { %5912 = vmatprep.subr.bf16.mxu0 %v8399_v54  ;;  %5998 = vmatprep.subr.bf16.mxu1 %v8401_v55  ;;  %v8203_v54 = vcombine.high %v4305_v48, %v4309_v49  ;;  %v8205_v55 = vcombine.high %v4306_v50, %v4310_v51  ;;  %v4357_v42 = vld [vmem:[#allocation14 + $0x2f0] sm:$0xff] }
 0x65d   :  { %5913 = vmatpush1.bf16.msra.mxu0 %v8398_v1  ;;  %5999 = vmatpush1.bf16.msra.mxu1 %v8400_v2  ;;  %v8202_v1 = vcombine.low %v4305_v48, %v4309_v49  ;;  %v8204_v2 = vcombine.low %v4306_v50, %v4310_v51  ;;  %v4361_v48 = vld [vmem:[#allocation14 + $0x310] sm:$0xff]  ;;  %v4362_v50 = vld [vmem:[#allocation14 + $0x318] sm:$0xff] }
 0x65e   :  { %5914 = vmatprep.subr.bf16.mxu0 %v8407_v3  ;;  %6000 = vmatprep.subr.bf16.mxu1 %v8409_v4  ;;  %v8211_v3 = vcombine.high %v4313_v34, %v4317_v58  ;;  %v8213_v4 = vcombine.high %v4314_v60, %v4318_v61  ;;  %v4365_v49 = vld [vmem:[#allocation14 + $0x330] sm:$0xff]  ;;  %v4366_v51 = vld [vmem:[#allocation14 + $0x338] sm:$0xff] }
 0x661   :  { %5915 = vmatpush1.bf16.msra.mxu0 %v8406_v59  ;;  %6001 = vmatpush1.bf16.msra.mxu1 %v8408_v9  ;;  %v8210_v59 = vcombine.low %v4313_v34, %v4317_v58  ;;  %v8212_v9 = vcombine.low %v4314_v60, %v4318_v61  ;;  %v4369_v34 = vld [vmem:[#allocation14 + $0x350] sm:$0xff]  ;;  %v4370_v60 = vld [vmem:[#allocation14 + $0x358] sm:$0xff] }
 0x662   :  { %6013 = vmatprep.subr.bf16.mxu0 %v8163_v10  ;;  %6099 = vmatprep.subr.bf16.mxu1 %v8165_v11  ;;  %v8219_v10 = vcombine.high %v4321_v5, %v4325_v6  ;;  %v8221_v11 = vcombine.high %v4322_v7, %v4326_v8  ;;  %v4373_v58 = vld [vmem:[#allocation14 + $0x370] sm:$0xff]  ;;  %v4374_v61 = vld [vmem:[#allocation14 + $0x378] sm:$0xff] }
 0x664   :  { %5917 = vmatmul.mubr.bf16.vlgmr.msra.gmra.mrb[20].mxu0 %v10360_v57  ;;  %6003 = vmatmul.mubr.bf16.vlgmr.msra.gmra.mrb[20].mxu1 %v10360_v57 }
 0x665   :  { %6014 = vmatpush1.bf16.msra.mxu0 %v8162_v21  ;;  %6045 = vmatprep.mubr.bf16.mxu0 %v10362_v63  ;;  %v8218_v21 = vcombine.low %v4321_v5, %v4325_v6  ;;  %v4377_v5 = vld [vmem:[#allocation14 + $0x390] sm:$0xff] }
 0x666   :  { %6100 = vmatpush1.bf16.msra.mxu1 %v8164_v23  ;;  %6131 = vmatprep.mubr.bf16.mxu1 %v10362_v63  ;;  %v4298_v63 = vld [vmem:[#allocation14 + $0x118] sm:$0xff]  ;;  %v8220_v23 = vcombine.low %v4322_v7, %v4326_v8  ;;  %v4381_v6 = vld [vmem:[#allocation14 + $0x3b0] sm:$0xff] }
 0x667   :  { %6015 = vmatprep.subr.bf16.mxu0 %v8171_v24  ;;  %6101 = vmatprep.subr.bf16.mxu1 %v8173_v25  ;;  %v8197_v47 = vcombine.high %v4298_v63, %v4302_v43  ;;  %v8196_v53 = vcombine.low %v4298_v63, %v4302_v43  ;;  %v8227_v24 = vcombine.high %v4329_v12, %v4333_v14  ;;  %v4354_v63 = vld [vmem:[#allocation14 + $0x2d8] sm:$0xff] }
 0x668   :  { %v8229_v25 = vcombine.high %v4330_v16, %v4334_v19  ;;  %v4358_v43 = vld [vmem:[#allocation14 + $0x2f8] sm:$0xff] }
 0x669   :  { %6016 = vmatpush1.bf16.msra.mxu0 %v8170_v30  ;;  %v8226_v30 = vcombine.low %v4329_v12, %v4333_v14  ;;  %v4378_v7 = vld [vmem:[#allocation14 + $0x398] sm:$0xff]  ;;  %v4385_v12 = vld [vmem:[#allocation14 + $0x3d0] sm:$0xff] }
 0x66a   :  { %6102 = vmatpush1.bf16.msra.mxu1 %v8172_v31  ;;  %6017 = vmatprep.subr.bf16.mxu0 %v8179_v32  ;;  %v8228_v31 = vcombine.low %v4330_v16, %v4334_v19  ;;  %v8235_v32 = vcombine.high %v4337_v26, %v4341_v27  ;;  %v4382_v8 = vld [vmem:[#allocation14 + $0x3b8] sm:$0xff]  ;;  %v4389_v14 = vld [vmem:[#allocation14 + $0x3f0] sm:$0xff] }
 0x66b   :  { %6103 = vmatprep.subr.bf16.mxu1 %v8181_v33  ;;  %v8237_v33 = vcombine.high %v4338_v28, %v4342_v29  ;;  %v4386_v16 = vld [vmem:[#allocation14 + $0x3d8] sm:$0xff] }
 0x66c   :  { %v4390_v19 = vld [vmem:[#allocation14 + $0x3f8] sm:$0xff] }
 0x66d   :  { %6018 = vmatpush1.bf16.msra.mxu0 %v8178_v39  ;;  %v8234_v39 = vcombine.low %v4337_v26, %v4341_v27  ;;  %v4393_v26 = vld [vmem:[#allocation14 + $0x410] sm:$0xff] }
 0x66e   :  { %6104 = vmatpush1.bf16.msra.mxu1 %v8180_v62  ;;  %6019 = vmatprep.subr.bf16.mxu0 %v8187_v40  ;;  %v8236_v62 = vcombine.low %v4338_v28, %v4342_v29  ;;  %v8243_v40 = vcombine.high %v4345_v35, %v4349_v36  ;;  %v4397_v27 = vld [vmem:[#allocation14 + $0x430] sm:$0xff]  ;;  %v4394_v28 = vld [vmem:[#allocation14 + $0x418] sm:$0xff] }
 0x66f   :  { %6105 = vmatprep.subr.bf16.mxu1 %v8189_v13  ;;  %v8245_v13 = vcombine.high %v4346_v37, %v4350_v38  ;;  %v4398_v29 = vld [vmem:[#allocation14 + $0x438] sm:$0xff] }
 0x671   :  { %6020 = vmatpush1.bf16.msra.mxu0 %v8186_v44  ;;  %v8242_v44 = vcombine.low %v4345_v35, %v4349_v36  ;;  %v4401_v35 = vld [vmem:[#allocation14 + $0x450] sm:$0xff] }
 0x672   :  { %6106 = vmatpush1.bf16.msra.mxu1 %v8188_v45  ;;  %6021 = vmatprep.subr.bf16.mxu0 %v8195_v46  ;;  %v8244_v45 = vcombine.low %v4346_v37, %v4350_v38  ;;  %v8251_v46 = vcombine.high %v4353_v41, %v4357_v42  ;;  %v4405_v36 = vld [vmem:[#allocation14 + $0x470] sm:$0xff]  ;;  %v8290_v37 = vcombine.low %v4393_v26, %v4397_v27  ;;  %v4402_v38 = vld [vmem:[#allocation14 + $0x458] sm:$0xff] }
 0x673   :  { %6107 = vmatprep.subr.bf16.mxu1 %v8197_v47  ;;  %v8253_v47 = vcombine.high %v4354_v63, %v4358_v43 }
 0x675   :  { %6022 = vmatpush1.bf16.msra.mxu0 %v8194_v52  ;;  %v8250_v52 = vcombine.low %v4353_v41, %v4357_v42  ;;  %v4413_v41 = vld [vmem:[#allocation14 + $0x4b0] sm:$0xff] }
 0x676   :  { %6108 = vmatpush1.bf16.msra.mxu1 %v8196_v53  ;;  %6023 = vmatprep.subr.bf16.mxu0 %v8203_v54  ;;  %v8252_v53 = vcombine.low %v4354_v63, %v4358_v43  ;;  %v8259_v54 = vcombine.high %v4361_v48, %v4365_v49  ;;  %v4410_v63 = vld [vmem:[#allocation14 + $0x498] sm:$0xff] }
 0x677   :  { %6109 = vmatprep.subr.bf16.mxu1 %v8205_v55  ;;  %v8261_v55 = vcombine.high %v4362_v50, %v4366_v51  ;;  %v4414_v43 = vld [vmem:[#allocation14 + $0x4b8] sm:$0xff] }
 0x679   :  { %6024 = vmatpush1.bf16.msra.mxu0 %v8202_v1  ;;  %v8258_v1 = vcombine.low %v4361_v48, %v4365_v49  ;;  %v4417_v48 = vld [vmem:[#allocation14 + $0x4d0] sm:$0xff] }
 0x67a   :  { %6110 = vmatpush1.bf16.msra.mxu1 %v8204_v2  ;;  %6025 = vmatprep.subr.bf16.mxu0 %v8211_v3  ;;  %v8260_v2 = vcombine.low %v4362_v50, %v4366_v51  ;;  %v8267_v3 = vcombine.high %v4369_v34, %v4373_v58  ;;  %v4421_v49 = vld [vmem:[#allocation14 + $0x4f0] sm:$0xff]  ;;  %v4418_v50 = vld [vmem:[#allocation14 + $0x4d8] sm:$0xff] }
 0x67b   :  { %6111 = vmatprep.subr.bf16.mxu1 %v8213_v4  ;;  %v8269_v4 = vcombine.high %v4370_v60, %v4374_v61  ;;  %v4422_v51 = vld [vmem:[#allocation14 + $0x4f8] sm:$0xff] }
 0x67d   :  { %6026 = vmatpush1.bf16.msra.mxu0 %v8210_v59  ;;  %v8266_v59 = vcombine.low %v4369_v34, %v4373_v58  ;;  %v4429_v34 = vld [vmem:[#allocation14 + $0x530] sm:$0xff]  ;;  %v4426_v58 = vld [vmem:[#allocation14 + $0x518] sm:$0xff] }
 0x67e   :  { %6112 = vmatpush1.bf16.msra.mxu1 %v8212_v9  ;;  %6027 = vmatprep.subr.bf16.mxu0 %v8219_v10  ;;  %v8268_v9 = vcombine.low %v4370_v60, %v4374_v61  ;;  %v8275_v10 = vcombine.high %v4377_v5, %v4381_v6  ;;  %v4430_v60 = vld [vmem:[#allocation14 + $0x538] sm:$0xff]  ;;  %v8316_v61 = vcombine.low %v4418_v50, %v4422_v51 }
 0x67f   :  { %6113 = vmatprep.subr.bf16.mxu1 %v8221_v11  ;;  %v8277_v11 = vcombine.high %v4378_v7, %v4382_v8 }
 0x681   :  { %6028 = vmatpush1.bf16.msra.mxu0 %v8218_v21  ;;  %v8274_v21 = vcombine.low %v4377_v5, %v4381_v6  ;;  %v4434_v5 = vld [vmem:[#allocation14 + $0x558] sm:$0xff] }
 0x682   :  { %6114 = vmatpush1.bf16.msra.mxu1 %v8220_v23  ;;  %6029 = vmatprep.subr.bf16.mxu0 %v8227_v24  ;;  %v8276_v23 = vcombine.low %v4378_v7, %v4382_v8  ;;  %v8283_v24 = vcombine.high %v4385_v12, %v4389_v14  ;;  %v4438_v6 = vld [vmem:[#allocation14 + $0x578] sm:$0xff]  ;;  %v8324_v8 = vcombine.low %v4426_v58, %v4430_v60 }
 0x683   :  { %6115 = vmatprep.subr.bf16.mxu1 %v8229_v25  ;;  %v8285_v25 = vcombine.high %v4386_v16, %v4390_v19 }
 0x685   :  { %6030 = vmatpush1.bf16.msra.mxu0 %v8226_v30  ;;  %v8282_v30 = vcombine.low %v4385_v12, %v4389_v14  ;;  %v4442_v12 = vld [vmem:[#allocation14 + $0x598] sm:$0xff] }
 0x686   :  { %6116 = vmatpush1.bf16.msra.mxu1 %v8228_v31  ;;  %6031 = vmatprep.subr.bf16.mxu0 %v8235_v32  ;;  %v8284_v31 = vcombine.low %v4386_v16, %v4390_v19  ;;  %v8291_v32 = vcombine.high %v4393_v26, %v4397_v27  ;;  %v4446_v14 = vld [vmem:[#allocation14 + $0x5b8] sm:$0xff]  ;;  %v8332_v19 = vcombine.low %v4434_v5, %v4438_v6 }
 0x687   :  { %6117 = vmatprep.subr.bf16.mxu1 %v8237_v33  ;;  %v8293_v33 = vcombine.high %v4394_v28, %v4398_v29  ;;  %v4450_v26 = vld [vmem:[#allocation14 + $0x5d8] sm:$0xff] }
 0x688   :  { %v4454_v27 = vld [vmem:[#allocation14 + $0x5f8] sm:$0xff] }
 0x689   :  { %6032 = vmatpush1.bf16.msra.mxu0 %v8234_v39  ;;  %v4406_v39 = vld [vmem:[#allocation14 + $0x478] sm:$0xff] }
 0x68a   :  { %6118 = vmatpush1.bf16.msra.mxu1 %v8236_v62  ;;  %6033 = vmatprep.subr.bf16.mxu0 %v8243_v40  ;;  %v8292_v62 = vcombine.low %v4394_v28, %v4398_v29  ;;  %v8299_v40 = vcombine.high %v4401_v35, %v4405_v36  ;;  %v8301_v42 = vcombine.high %v4402_v38, %v4406_v39 }
 0x68b   :  { %6119 = vmatprep.subr.bf16.mxu1 %v8245_v13  ;;  %v4409_v13 = vld [vmem:[#allocation14 + $0x490] sm:$0xff]  ;;  %v8340_v29 = vcombine.low %v4442_v12, %v4446_v14 }
 0x68d   :  { %6034 = vmatpush1.bf16.msra.mxu0 %v8242_v44  ;;  %v8298_v44 = vcombine.low %v4401_v35, %v4405_v36  ;;  %v4458_v35 = vld [vmem:[#allocation14 + $0x618] sm:$0xff] }
 0x68e   :  { %6120 = vmatpush1.bf16.msra.mxu1 %v8244_v45  ;;  %6035 = vmatprep.subr.bf16.mxu0 %v8251_v46  ;;  %v8300_v45 = vcombine.low %v4402_v38, %v4406_v39  ;;  %v8307_v46 = vcombine.high %v4409_v13, %v4413_v41  ;;  %v4462_v36 = vld [vmem:[#allocation14 + $0x638] sm:$0xff]  ;;  %v8348_v38 = vcombine.low %v4450_v26, %v4454_v27 }
 0x68f   :  { %6121 = vmatprep.subr.bf16.mxu1 %v8253_v47  ;;  %v8309_v47 = vcombine.high %v4410_v63, %v4414_v43 }
 0x691   :  { %6036 = vmatpush1.bf16.msra.mxu0 %v8250_v52  ;;  %v8306_v52 = vcombine.low %v4409_v13, %v4413_v41  ;;  %v4469_v13 = vld [vmem:[#allocation14 + $0x670] sm:$0xff]  ;;  %v4466_v41 = vld [vmem:[#allocation14 + $0x658] sm:$0xff] }
 0x692   :  { %6122 = vmatpush1.bf16.msra.mxu1 %v8252_v53  ;;  %6037 = vmatprep.subr.bf16.mxu0 %v8259_v54  ;;  %v8315_v53 = vcombine.high %v4417_v48, %v4421_v49  ;;  %v8317_v54 = vcombine.high %v4418_v50, %v4422_v51 }
 0x693   :  { %6123 = vmatprep.subr.bf16.mxu1 %v8261_v55  ;;  %v4425_v55 = vld [vmem:[#allocation14 + $0x510] sm:$0xff] }
 0x694   :  { %v8322_v7 = vcombine.low %v4425_v55, %v4429_v34 }
 0x695   :  { %6038 = vmatpush1.bf16.msra.mxu0 %v8258_v1  ;;  %v8323_v1 = vcombine.high %v4425_v55, %v4429_v34  ;;  %v4482_v55 = vld [vmem:[#allocation14 + $0x6d8] sm:$0xff] }
 0x696   :  { %6124 = vmatpush1.bf16.msra.mxu1 %v8260_v2  ;;  %6039 = vmatprep.subr.bf16.mxu0 %v8267_v3  ;;  %v8325_v2 = vcombine.high %v4426_v58, %v4430_v60  ;;  %v4433_v3 = vld [vmem:[#allocation14 + $0x550] sm:$0xff]  ;;  %v4486_v34 = vld [vmem:[#allocation14 + $0x6f8] sm:$0xff] }
 0x697   :  { %6125 = vmatprep.subr.bf16.mxu1 %v8269_v4  ;;  %v4437_v4 = vld [vmem:[#allocation14 + $0x570] sm:$0xff] }
 0x698   :  { %v8330_v16 = vcombine.low %v4433_v3, %v4437_v4 }
 0x699   :  { %6040 = vmatpush1.bf16.msra.mxu0 %v8266_v59  ;;  %v8331_v59 = vcombine.high %v4433_v3, %v4437_v4  ;;  %v4490_v3 = vld [vmem:[#allocation14 + $0x718] sm:$0xff] }
 0x69a   :  { %6126 = vmatpush1.bf16.msra.mxu1 %v8268_v9  ;;  %6041 = vmatprep.subr.bf16.mxu0 %v8275_v10  ;;  %v8333_v9 = vcombine.high %v4434_v5, %v4438_v6  ;;  %v4441_v10 = vld [vmem:[#allocation14 + $0x590] sm:$0xff]  ;;  %v4494_v4 = vld [vmem:[#allocation14 + $0x738] sm:$0xff]  ;;  %v8380_v6 = vcombine.low %v4482_v55, %v4486_v34 }
 0x69b   :  { %6127 = vmatprep.subr.bf16.mxu1 %v8277_v11  ;;  %v4445_v11 = vld [vmem:[#allocation14 + $0x5b0] sm:$0xff] }
 0x69c   :  { %v8338_v28 = vcombine.low %v4441_v10, %v4445_v11 }
 0x69d   :  { %6042 = vmatpush1.bf16.msra.mxu0 %v8274_v21  ;;  %v8339_v21 = vcombine.high %v4441_v10, %v4445_v11  ;;  %v4498_v10 = vld [vmem:[#allocation14 + $0x758] sm:$0xff] }
 0x69e   :  { %6128 = vmatpush1.bf16.msra.mxu1 %v8276_v23  ;;  %6043 = vmatprep.subr.bf16.mxu0 %v8283_v24  ;;  %v8341_v23 = vcombine.high %v4442_v12, %v4446_v14  ;;  %v4449_v24 = vld [vmem:[#allocation14 + $0x5d0] sm:$0xff]  ;;  %v4502_v11 = vld [vmem:[#allocation14 + $0x778] sm:$0xff]  ;;  %v8388_v14 = vcombine.low %v4490_v3, %v4494_v4 }
 0x69f   :  { %6129 = vmatprep.subr.bf16.mxu1 %v8285_v25  ;;  %v4453_v25 = vld [vmem:[#allocation14 + $0x5f0] sm:$0xff] }
 0x6a1   :  { %6044 = vmatpush1.bf16.msra.mxu0 %v8282_v30  ;;  %v8347_v30 = vcombine.high %v4449_v24, %v4453_v25 }
 0x6a2   :  { %6130 = vmatpush1.bf16.msra.mxu1 %v8284_v31  ;;  %6056 = vmatprep.subr.bf16.mxu0 %v8291_v32  ;;  %v8349_v31 = vcombine.high %v4450_v26, %v4454_v27  ;;  %v4457_v32 = vld [vmem:[#allocation14 + $0x610] sm:$0xff]  ;;  %v8396_v27 = vcombine.low %v4498_v10, %v4502_v11 }
 0x6a3   :  { %6142 = vmatprep.subr.bf16.mxu1 %v8293_v33  ;;  %v4461_v33 = vld [vmem:[#allocation14 + $0x630] sm:$0xff] }
 0x6a4   :  { %6046 = vmatmul.mubr.bf16.vlgmr.msra.gmra.mrb[24].mxu0 %v10358_v56  ;;  %v8355_v39 = vcombine.high %v4457_v32, %v4461_v33 }
 0x6a5   :  { %6132 = vmatmul.mubr.bf16.vlgmr.msra.gmra.mrb[24].mxu1 %v10358_v56  ;;  %6057 = vmatpush1.bf16.msra.mxu0 %v8290_v37  ;;  %v8308_v56 = vcombine.low %v4410_v63, %v4414_v43  ;;  %v8346_v37 = vcombine.low %v4449_v24, %v4453_v25  ;;  %v8354_v63 = vcombine.low %v4457_v32, %v4461_v33  ;;  %v4506_v24 = vld [vmem:[#allocation14 + $0x798] sm:$0xff] }
 0x6a6   :  { %6088 = vmatprep.mubr.bf16.mxu0 %v10364_v0  ;;  %6143 = vmatpush1.bf16.msra.mxu1 %v8292_v62  ;;  %v8357_v62 = vcombine.high %v4458_v35, %v4462_v36  ;;  %v8356_v43 = vcombine.low %v4458_v35, %v4462_v36  ;;  %v4510_v25 = vld [vmem:[#allocation14 + $0x7b8] sm:$0xff] }
 0x6a7   :  { %6174 = vmatprep.mubr.bf16.mxu1 %v10364_v0  ;;  %6058 = vmatprep.subr.bf16.mxu0 %v8299_v40  ;;  %v8314_v0 = vcombine.low %v4417_v48, %v4421_v49  ;;  %v4465_v40 = vld [vmem:[#allocation14 + $0x650] sm:$0xff]  ;;  %v4474_v48 = vld [vmem:[#allocation14 + $0x698] sm:$0xff]  ;;  %v8404_v36 = vcombine.low %v4506_v24, %v4510_v25 }
 0x6a8   :  { %6144 = vmatprep.subr.bf16.mxu1 %v8301_v42  ;;  %v4470_v42 = vld [vmem:[#allocation14 + $0x678] sm:$0xff]  ;;  %v8362_v50 = vcombine.low %v4465_v40, %v4469_v13 }
 0x6a9   :  { %6059 = vmatpush1.bf16.msra.mxu0 %v8298_v44  ;;  %v8363_v44 = vcombine.high %v4465_v40, %v4469_v13  ;;  %v4478_v49 = vld [vmem:[#allocation14 + $0x6b8] sm:$0xff]  ;;  %v8364_v51 = vcombine.low %v4466_v41, %v4470_v42  ;;  %v9531_v40 = vld [vmem:[#allocation16 + $0x40] sm:$0xff]  }
 0x6aa   :  { %6145 = vmatpush1.bf16.msra.mxu1 %v8300_v45  ;;  %6060 = vmatprep.subr.bf16.mxu0 %v8307_v46  ;;  %v8365_v45 = vcombine.high %v4466_v41, %v4470_v42  ;;  %v4473_v46 = vld [vmem:[#allocation14 + $0x690] sm:$0xff]  ;;  %v8372_v60 = vcombine.low %v4474_v48, %v4478_v49  ;;  %v4514_v32 = vld [vmem:[#allocation14 + $0x7d8] sm:$0xff]  ;;  %v9532_v13 = vld [vmem:[#allocation16 + $0xc0] sm:$0xff]  }
 0x6ab   :  { %6146 = vmatprep.subr.bf16.mxu1 %v8309_v47  ;;  %v4477_v47 = vld [vmem:[#allocation14 + $0x6b0] sm:$0xff]  ;;  %v4518_v33 = vld [vmem:[#allocation14 + $0x7f8] sm:$0xff]  ;;  %v9533_v41 = vld [vmem:[#allocation16] sm:$0xff]  }
 0x6ac   :  { %v8370_v58 = vcombine.low %v4473_v46, %v4477_v47  ;;  %v9534_v42 = vld [vmem:[#allocation16 + $0x80] sm:$0xff]  }
 0x6ad   :  { %6061 = vmatpush1.bf16.msra.mxu0 %v8306_v52  ;;  %v8371_v52 = vcombine.high %v4473_v46, %v4477_v47  ;;  %v9539_v46 = vld [vmem:[#allocation16 + $0x50] sm:$0xff]  }
 0x6ae   :  { %6147 = vmatpush1.bf16.msra.mxu1 %v8308_v56  ;;  %6062 = vmatprep.subr.bf16.mxu0 %v8315_v53  ;;  %v8373_v56 = vcombine.high %v4474_v48, %v4478_v49  ;;  %v4481_v53 = vld [vmem:[#allocation14 + $0x6d0] sm:$0xff] }
 0x6af   :  { %6148 = vmatprep.subr.bf16.mxu1 %v8317_v54  ;;  %v4485_v54 = vld [vmem:[#allocation14 + $0x6f0] sm:$0xff] }
 0x6b0   :  { %v8378_v5 = vcombine.low %v4481_v53, %v4485_v54  ;;  %v9540_v47 = vld [vmem:[#allocation16 + $0xd0] sm:$0xff]  }
 0x6b1   :  { %6063 = vmatpush1.bf16.msra.mxu0 %v8314_v0  ;;  %v8379_v0 = vcombine.high %v4481_v53, %v4485_v54  ;;  %v9541_v48 = vld [vmem:[#allocation16 + $0x10] sm:$0xff]   ;;  %v9548_v53 = vld [vmem:[#allocation16 + $0xe0] sm:$0xff]  }
 0x6b2   :  { %6149 = vmatpush1.bf16.msra.mxu1 %v8316_v61  ;;  %6064 = vmatprep.subr.bf16.mxu0 %v8323_v1  ;;  %v8381_v61 = vcombine.high %v4482_v55, %v4486_v34  ;;  %v4489_v1 = vld [vmem:[#allocation14 + $0x710] sm:$0xff]  ;;  %v9549_v54 = vld [vmem:[#allocation16 + $0x20] sm:$0xff]   ;;  %v9551_v34 = vld [vmem:[#allocation16 + $0x68] sm:$0xff]  }
 0x6b3   :  { %6150 = vmatprep.subr.bf16.mxu1 %v8325_v2  ;;  %v4493_v2 = vld [vmem:[#allocation14 + $0x730] sm:$0xff]  ;;  %v9550_v55 = vld [vmem:[#allocation16 + $0xa0] sm:$0xff]  }
 0x6b4   :  { %v8386_v12 = vcombine.low %v4489_v1, %v4493_v2  ;;  %v9542_v49 = vld [vmem:[#allocation16 + $0x90] sm:$0xff]  }
 0x6b5   :  { %6065 = vmatpush1.bf16.msra.mxu0 %v8322_v7  ;;  %v8387_v7 = vcombine.high %v4489_v1, %v4493_v2  ;;  %v9556_v1 = vld [vmem:[#allocation16 + $0xf0] sm:$0xff]  }
 0x6b6   :  { %6151 = vmatpush1.bf16.msra.mxu1 %v8324_v8  ;;  %6066 = vmatprep.subr.bf16.mxu0 %v8331_v59  ;;  %v8389_v8 = vcombine.high %v4490_v3, %v4494_v4  ;;  %v4497_v59 = vld [vmem:[#allocation14 + $0x750] sm:$0xff]  ;;  %v9559_v4 = vld [vmem:[#allocation16 + $0x78] sm:$0xff]  }
 0x6b7   :  { %6152 = vmatprep.subr.bf16.mxu1 %v8333_v9  ;;  %v4501_v9 = vld [vmem:[#allocation14 + $0x770] sm:$0xff] }
 0x6b8   :  { %v8394_v26 = vcombine.low %v4497_v59, %v4501_v9  ;;  %v9557_v2 = vld [vmem:[#allocation16 + $0x30] sm:$0xff]  }
 0x6b9   :  { %6067 = vmatpush1.bf16.msra.mxu0 %v8330_v16  ;;  %v8395_v16 = vcombine.high %v4497_v59, %v4501_v9  ;;  %v9558_v3 = vld [vmem:[#allocation16 + $0xb0] sm:$0xff]   ;;  %v9568_v59 = vld [vmem:[#allocation17 + $0xc] ss:$16 sps:$4 sm:$0xff]  }
 0x6ba   :  { %6153 = vmatpush1.bf16.msra.mxu1 %v8332_v19  ;;  %6068 = vmatprep.subr.bf16.mxu0 %v8339_v21  ;;  %v8397_v19 = vcombine.high %v4498_v10, %v4502_v11  ;;  %v4505_v21 = vld [vmem:[#allocation14 + $0x790] sm:$0xff] }
 0x6bb   :  { %6154 = vmatprep.subr.bf16.mxu1 %v8341_v23  ;;  %v4509_v23 = vld [vmem:[#allocation14 + $0x7b0] sm:$0xff] }
 0x6bc   :  { %v8402_v35 = vcombine.low %v4505_v21, %v4509_v23  ;;  %v10385_v9 = vld [vmem:[%s10444_s12] sm:$0xff] }
 0x6bd   :  { %6069 = vmatpush1.bf16.msra.mxu0 %v8338_v28  ;;  %v8403_v28 = vcombine.high %v4505_v21, %v4509_v23  ;;  %v4524_v10 = vrot.slane %v10385_v9, %v10302_v17  ;;  %v4532_v11 = vrot.slane %v10385_v9, %v10309_v20 }
 0x6be   :  { %6155 = vmatpush1.bf16.msra.mxu1 %v8340_v29  ;;  %6070 = vmatprep.subr.bf16.mxu0 %v8347_v30  ;;  %v8405_v29 = vcombine.high %v4506_v24, %v4510_v25  ;;  %v4513_v30 = vld [vmem:[#allocation14 + $0x7d0] sm:$0xff] }
 0x6bf   :  { %6156 = vmatprep.subr.bf16.mxu1 %v8349_v31  ;;  %v4517_v31 = vld [vmem:[#allocation14 + $0x7f0] sm:$0xff] }
 0x6c1   :  { %6071 = vmatpush1.bf16.msra.mxu0 %v8346_v37  ;;  %v8411_v37 = vcombine.high %v4513_v30, %v4517_v31 }
 0x6c2   :  { %6157 = vmatpush1.bf16.msra.mxu1 %v8348_v38  ;;  %6072 = vmatprep.subr.bf16.mxu0 %v8355_v39  ;;  %v8413_v38 = vcombine.high %v4514_v32, %v4518_v33  ;;  %v8410_v39 = vcombine.low %v4513_v30, %v4517_v31 }
 0x6c3   :  { %6158 = vmatprep.subr.bf16.mxu1 %v8357_v62  ;;  %v8412_v62 = vcombine.low %v4514_v32, %v4518_v33 }
 0x6c5   :  { %6073 = vmatpush1.bf16.msra.mxu0 %v8354_v63  ;;  %v9535_v63 = vld [vmem:[#allocation16 + $0x48] sm:$0xff]  }
 0x6c6   :  { %6159 = vmatpush1.bf16.msra.mxu1 %v8356_v43  ;;  %6074 = vmatprep.subr.bf16.mxu0 %v8363_v44  ;;  %v9536_v43 = vld [vmem:[#allocation16 + $0xc8] sm:$0xff]  }
 0x6c7   :  { %6160 = vmatprep.subr.bf16.mxu1 %v8365_v45  ;;  %v9537_v44 = vld [vmem:[#allocation16 + $0x8] sm:$0xff]  }
 0x6c8   :  { %v9538_v45 = vld [vmem:[#allocation16 + $0x88] sm:$0xff]  }
 0x6c9   :  { %6075 = vmatpush1.bf16.msra.mxu0 %v8362_v50  ;;  %v9543_v50 = vld [vmem:[#allocation16 + $0x58] sm:$0xff]  }
 0x6ca   :  { %6161 = vmatpush1.bf16.msra.mxu1 %v8364_v51  ;;  %6076 = vmatprep.subr.bf16.mxu0 %v8371_v52  ;;  %v9544_v51 = vld [vmem:[#allocation16 + $0xd8] sm:$0xff]  }
 0x6cb   :  { %6162 = vmatprep.subr.bf16.mxu1 %v8373_v56  ;;  %v9545_v52 = vld [vmem:[#allocation16 + $0x18] sm:$0xff]   ;;  %v9547_v56 = vld [vmem:[#allocation16 + $0x60] sm:$0xff]  }
 0x6cd   :  { %6077 = vmatpush1.bf16.msra.mxu0 %v8370_v58  ;;  %v9552_v58 = vld [vmem:[#allocation16 + $0xe8] sm:$0xff]  }
 0x6ce   :  { %6163 = vmatpush1.bf16.msra.mxu1 %v8372_v60  ;;  %6078 = vmatprep.subr.bf16.mxu0 %v8379_v0  ;;  %v9553_v60 = vld [vmem:[#allocation16 + $0x28] sm:$0xff]  }
 0x6cf   :  { %6164 = vmatprep.subr.bf16.mxu1 %v8381_v61  ;;  %v9554_v0 = vld [vmem:[#allocation16 + $0xa8] sm:$0xff]   ;;  %v9555_v61 = vld [vmem:[#allocation16 + $0x70] sm:$0xff]  }
 0x6d1   :  { %6079 = vmatpush1.bf16.msra.mxu0 %v8378_v5  ;;  %v9560_v5 = vld [vmem:[#allocation16 + $0xf8] sm:$0xff]  }
 0x6d2   :  { %6165 = vmatpush1.bf16.msra.mxu1 %v8380_v6  ;;  %6080 = vmatprep.subr.bf16.mxu0 %v8387_v7  ;;  %v9561_v6 = vld [vmem:[#allocation16 + $0x38] sm:$0xff]  }
 0x6d3   :  { %6166 = vmatprep.subr.bf16.mxu1 %v8389_v8  ;;  %v9562_v7 = vld [vmem:[#allocation16 + $0xb8] sm:$0xff]   ;;  %v9565_v8 = vld [vmem:[#allocation17 + $0x4] ss:$16 sps:$4 sm:$0xff]  }
 0x6d5   :  { %6081 = vmatpush1.bf16.msra.mxu0 %v8386_v12  ;;  %v4528_v12 = vrot.slane %v10385_v9, %v10305_v18 }
 0x6d6   :  { %6167 = vmatpush1.bf16.msra.mxu1 %v8388_v14  ;;  %6082 = vmatprep.subr.bf16.mxu0 %v8395_v16  ;;  %v4536_v14 = vrot.slane %v10385_v9, %v10313_v22 }
 0x6d7   :  { %6168 = vmatprep.subr.bf16.mxu1 %v8397_v19 }
 0x6d9   :  { %6083 = vmatpush1.bf16.msra.mxu0 %v8394_v26 }
 0x6da   :  { %6169 = vmatpush1.bf16.msra.mxu1 %v8396_v27  ;;  %6084 = vmatprep.subr.bf16.mxu0 %v8403_v28 }
 0x6db   :  { %6170 = vmatprep.subr.bf16.mxu1 %v8405_v29 }
 0x6dd   :  { %6085 = vmatpush1.bf16.msra.mxu0 %v8402_v35 }
 0x6de   :  { %6171 = vmatpush1.bf16.msra.mxu1 %v8404_v36  ;;  %6086 = vmatprep.subr.bf16.mxu0 %v8411_v37 }
 0x6df   :  { %6172 = vmatprep.subr.bf16.mxu1 %v8413_v38 }
 0x6e1   :  { %6087 = vmatpush1.bf16.msra.mxu0 %v8410_v39 }
 0x6e2   :  { %6173 = vmatpush1.bf16.msra.mxu1 %v8412_v62  ;;  %8575 = vmatprep.subr.bf16.mxu0 %v9531_v40 }
 0x6e3   :  { %8597 = vmatprep.subr.bf16.mxu1 %v9532_v13 }
 0x6e4   :  { %6089 = vmatmul.mubr.bf16.vlgmr.msra.gmra.mrb[24].mxu0 %v10360_v57 }
 0x6e5   :  { %6175 = vmatmul.mubr.bf16.vlgmr.msra.gmra.mrb[24].mxu1 %v10360_v57  ;;  %8576 = vmatpush3.bf16.msra.mxu0 %v9533_v41  ;;  %v9546_v57 = vld [vmem:[#allocation16 + $0x98] sm:$0xff]  }
 0x6e6   :  { %8598 = vmatpush3.bf16.msra.mxu1 %v9534_v42  ;;  %8577 = vmatprep.subr.bf16.mxu0 %v9535_v63 }
 0x6e7   :  { %8599 = vmatprep.subr.bf16.mxu1 %v9536_v43 }
 0x6e9   :  { %8578 = vmatpush3.bf16.msra.mxu0 %v9537_v44 }
 0x6ea   :  { %8600 = vmatpush3.bf16.msra.mxu1 %v9538_v45  ;;  %8579 = vmatprep.subr.bf16.mxu0 %v9539_v46  ;;  %v9563_v46 = vld [vmem:[#allocation17] ss:$16 sps:$4 sm:$0xff]  }
 0x6eb   :  { %8601 = vmatprep.subr.bf16.mxu1 %v9540_v47  ;;  %v9566_v47 = vld [vmem:[#allocation17 + $0x8] ss:$16 sps:$4 sm:$0xff]  }
 0x6ed   :  { %8580 = vmatpush3.bf16.msra.mxu0 %v9541_v48  ;;  %v9571_v48 = vld [vmem:[#allocation17 + $0x24] ss:$16 sps:$4 sm:$0xff]  }
 0x6ee   :  { %8602 = vmatpush3.bf16.msra.mxu1 %v9542_v49  ;;  %8581 = vmatprep.subr.bf16.mxu0 %v9543_v50  ;;  %v9574_v49 = vld [vmem:[#allocation17 + $0x2c] ss:$16 sps:$4 sm:$0xff]   ;;  %v9569_v50 = vld [vmem:[#allocation17 + $0x20] ss:$16 sps:$4 sm:$0xff]  }
 0x6ef   :  { %8603 = vmatprep.subr.bf16.mxu1 %v9544_v51  ;;  %v9572_v51 = vld [vmem:[#allocation17 + $0x28] ss:$16 sps:$4 sm:$0xff]  }
 0x6f1   :  { %8582 = vmatpush3.bf16.msra.mxu0 %v9545_v52  ;;  %v9577_v52 = vld [vmem:[#allocation17 + $0x44] ss:$16 sps:$4 sm:$0xff]  }
 0x6f2   :  { %8604 = vmatpush3.bf16.msra.mxu1 %v9546_v57  ;;  %8583 = vmatprep.subr.bf16.mxu0 %v9547_v56  ;;  %v9580_v57 = vld [vmem:[#allocation17 + $0x4c] ss:$16 sps:$4 sm:$0xff]   ;;  %v9575_v56 = vld [vmem:[#allocation17 + $0x40] ss:$16 sps:$4 sm:$0xff]  }
 0x6f3   :  { %8605 = vmatprep.subr.bf16.mxu1 %v9548_v53  ;;  %v9578_v53 = vld [vmem:[#allocation17 + $0x48] ss:$16 sps:$4 sm:$0xff]  }
 0x6f5   :  { %8584 = vmatpush3.bf16.msra.mxu0 %v9549_v54  ;;  %v9583_v54 = vld [vmem:[#allocation17 + $0x64] ss:$16 sps:$4 sm:$0xff]  }
 0x6f6   :  { %8606 = vmatpush3.bf16.msra.mxu1 %v9550_v55  ;;  %8585 = vmatprep.subr.bf16.mxu0 %v9551_v34  ;;  %v9586_v55 = vld [vmem:[#allocation17 + $0x6c] ss:$16 sps:$4 sm:$0xff]   ;;  %v9581_v34 = vld [vmem:[#allocation17 + $0x60] ss:$16 sps:$4 sm:$0xff]  }
 0x6f7   :  { %8607 = vmatprep.subr.bf16.mxu1 %v9552_v58  ;;  %v9584_v58 = vld [vmem:[#allocation17 + $0x68] ss:$16 sps:$4 sm:$0xff]  }
 0x6f9   :  { %8586 = vmatpush3.bf16.msra.mxu0 %v9553_v60  ;;  %v9589_v60 = vld [vmem:[#allocation17 + $0x84] ss:$16 sps:$4 sm:$0xff]  }
 0x6fa   :  { %8608 = vmatpush3.bf16.msra.mxu1 %v9554_v0  ;;  %8587 = vmatprep.subr.bf16.mxu0 %v9555_v61  ;;  %v9592_v0 = vld [vmem:[#allocation17 + $0x8c] ss:$16 sps:$4 sm:$0xff]   ;;  %v9587_v61 = vld [vmem:[#allocation17 + $0x80] ss:$16 sps:$4 sm:$0xff]  }
 0x6fb   :  { %8609 = vmatprep.subr.bf16.mxu1 %v9556_v1  ;;  %v9590_v1 = vld [vmem:[#allocation17 + $0x88] ss:$16 sps:$4 sm:$0xff]  }
 0x6fd   :  { %8588 = vmatpush3.bf16.msra.mxu0 %v9557_v2  ;;  %v9595_v2 = vld [vmem:[#allocation17 + $0xa4] ss:$16 sps:$4 sm:$0xff]  }
 0x6fe   :  { %8610 = vmatpush3.bf16.msra.mxu1 %v9558_v3  ;;  %8589 = vmatprep.subr.bf16.mxu0 %v9559_v4  ;;  %v9598_v3 = vld [vmem:[#allocation17 + $0xac] ss:$16 sps:$4 sm:$0xff]   ;;  %v9593_v4 = vld [vmem:[#allocation17 + $0xa0] ss:$16 sps:$4 sm:$0xff]  }
 0x6ff   :  { %8611 = vmatprep.subr.bf16.mxu1 %v9560_v5  ;;  %v9596_v5 = vld [vmem:[#allocation17 + $0xa8] ss:$16 sps:$4 sm:$0xff]  }
 0x701   :  { %8590 = vmatpush3.bf16.msra.mxu0 %v9561_v6  ;;  %v9601_v6 = vld [vmem:[#allocation17 + $0xc4] ss:$16 sps:$4 sm:$0xff]  }
 0x702   :  { %8612 = vmatpush3.bf16.msra.mxu1 %v9562_v7  ;;  %7344 = vmatprep.subr.bf16.mxu0 %v9565_v8  ;;  %v9604_v7 = vld [vmem:[#allocation17 + $0xcc] ss:$16 sps:$4 sm:$0xff]   ;;  %v9599_v8 = vld [vmem:[#allocation17 + $0xc0] ss:$16 sps:$4 sm:$0xff]  }
 0x703   :  { %7430 = vmatprep.subr.bf16.mxu1 %v9568_v59  ;;  %v9602_v59 = vld [vmem:[#allocation17 + $0xc8] ss:$16 sps:$4 sm:$0xff]  }
 0x737   :  { %v5918_v16 = vpop.f32.mrb[20].mxu0  ;;  %v6004_v19 = vpop.f32.mrb[20].mxu1 }
 0x738   :  { %v8651_v21 = vadd.f32 %v5918_v16, %v4524_v10  ;;  %v8655_v23 = vadd.f32 %v6004_v19, %v4532_v11  ;;  %v5920_v24 = vpop.f32.mrb[21].mxu0  ;;  %v6006_v25 = vpop.f32.mrb[21].mxu1  ;;  %v9613_v16 = vld [vmem:[#allocation17 + $0x104] ss:$16 sps:$4 sm:$0xff]   ;;  %v9616_v19 = vld [vmem:[#allocation17 + $0x10c] ss:$16 sps:$4 sm:$0xff]  }
 0x739   :  { %v8652_v26 = vadd.f32 %v5920_v24, %v4528_v12  ;;  %v8656_v27 = vadd.f32 %v6006_v25, %v4536_v14  ;;  %v5922_v28 = vpop.f32.mrb[22].mxu0  ;;  %v6008_v29 = vpop.f32.mrb[22].mxu1  ;;  %v9619_v24 = vld [vmem:[#allocation17 + $0x124] ss:$16 sps:$4 sm:$0xff]   ;;  %v9622_v25 = vld [vmem:[#allocation17 + $0x12c] ss:$16 sps:$4 sm:$0xff]  }
 0x73a   :  { %v8653_v30 = vadd.f32 %v5922_v28, %v4524_v10  ;;  %v8657_v31 = vadd.f32 %v6008_v29, %v4532_v11  ;;  %v5924_v32 = vpop.f32.mrb[23].mxu0  ;;  %v6010_v33 = vpop.f32.mrb[23].mxu1  ;;  %v6185_v37 = vmax.f32 %v8651_v21, 0.0  ;;  %v6187_v38 = vmax.f32 %v8655_v23, 0.0  ;;  %v9607_v10 = vld [vmem:[#allocation17 + $0xe4] ss:$16 sps:$4 sm:$0xff]  }
 0x73b   :  { %v8654_v35 = vadd.f32 %v5924_v32, %v4528_v12  ;;  %v8658_v36 = vadd.f32 %v6010_v33, %v4536_v14  ;;  %v6186_v40 = vmax.f32 %v8652_v26, 0.0  ;;  %v6188_v13 = vmax.f32 %v8656_v27, 0.0  ;;  %v9610_v11 = vld [vmem:[#allocation17 + $0xec] ss:$16 sps:$4 sm:$0xff]   ;;  %v9605_v12 = vld [vmem:[#allocation17 + $0xe0] ss:$16 sps:$4 sm:$0xff]  }
 0x73c   :  { %v6193_v39 = vmax.f32 %v8653_v30, 0.0  ;;  %v6195_v62 = vmax.f32 %v8657_v31, 0.0  ;;  %v9608_v14 = vld [vmem:[#allocation17 + $0xe8] ss:$16 sps:$4 sm:$0xff]   ;;  %v9611_v21 = vld [vmem:[#allocation17 + $0x100] ss:$16 sps:$4 sm:$0xff]  }
 0x73d   :  { %v6194_v41 = vmax.f32 %v8654_v35, 0.0  ;;  %v6196_v42 = vmax.f32 %v8658_v36, 0.0  ;;  %v9614_v23 = vld [vmem:[#allocation17 + $0x108] ss:$16 sps:$4 sm:$0xff]   ;;  %v9617_v26 = vld [vmem:[#allocation17 + $0x120] ss:$16 sps:$4 sm:$0xff]  }
 0x73e   :  { %v6201_v63 = vpack.c.bf16 %v6193_v39, %v6185_v37  ;;  %v6203_v43 = vpack.c.bf16 %v6195_v62, %v6187_v38  ;;  %v9620_v27 = vld [vmem:[#allocation17 + $0x128] ss:$16 sps:$4 sm:$0xff]   ;;  %v9625_v28 = vld [vmem:[#allocation17 + $0x144] ss:$16 sps:$4 sm:$0xff]   ;;  %v9628_v29 = vld [vmem:[#allocation17 + $0x14c] ss:$16 sps:$4 sm:$0xff]  }
 0x73f   :  { %v6202_v44 = vpack.c.bf16 %v6194_v41, %v6186_v40  ;;  %v6204_v45 = vpack.c.bf16 %v6196_v42, %v6188_v13  ;;  %v9623_v30 = vld [vmem:[#allocation17 + $0x140] ss:$16 sps:$4 sm:$0xff]   ;;  %v9626_v31 = vld [vmem:[#allocation17 + $0x148] ss:$16 sps:$4 sm:$0xff]   ;;  %v9631_v32 = vld [vmem:[#allocation17 + $0x164] ss:$16 sps:$4 sm:$0xff]  }
 0x740   :  { %v9634_v33 = vld [vmem:[#allocation17 + $0x16c] ss:$16 sps:$4 sm:$0xff]   ;;  %v9629_v35 = vld [vmem:[#allocation17 + $0x160] ss:$16 sps:$4 sm:$0xff]   ;;  %v9632_v36 = vld [vmem:[#allocation17 + $0x168] ss:$16 sps:$4 sm:$0xff]  }
 0x741   :  { %6504 = vmatprep.mubr.bf16.mxu0 %v6202_v44  ;;  %6545 = vmatprep.mubr.bf16.mxu1 %v6204_v45  ;;  %v9637_v37 = vld [vmem:[#allocation17 + $0x184] ss:$16 sps:$4 sm:$0xff]   ;;  %v9640_v38 = vld [vmem:[#allocation17 + $0x18c] ss:$16 sps:$4 sm:$0xff]   ;;  %v9635_v39 = vld [vmem:[#allocation17 + $0x180] ss:$16 sps:$4 sm:$0xff]  }
 0x742   :  { %6505 = vmatmul.mubr.bf16.vlgmr.msra.gmra.mrb[28].mxu0 %v6201_v63  ;;  %6546 = vmatmul.mubr.bf16.vlgmr.msra.gmra.mrb[28].mxu1 %v6203_v43  ;;  %v9638_v62 = vld [vmem:[#allocation17 + $0x188] ss:$16 sps:$4 sm:$0xff]   ;;  %v9643_v40 = vld [vmem:[#allocation17 + $0x1a4] ss:$16 sps:$4 sm:$0xff]   ;;  %v9646_v13 = vld [vmem:[#allocation17 + $0x1ac] ss:$16 sps:$4 sm:$0xff]  }
 0x743   :  { %7345 = vmatpush1.bf16.msra.mxu0 %v9563_v46  ;;  %7431 = vmatpush1.bf16.msra.mxu1 %v9566_v47  ;;  %v9641_v41 = vld [vmem:[#allocation17 + $0x1a0] ss:$16 sps:$4 sm:$0xff]   ;;  %v9644_v42 = vld [vmem:[#allocation17 + $0x1a8] ss:$16 sps:$4 sm:$0xff]   ;;  %v9649_v63 = vld [vmem:[#allocation17 + $0x1c4] ss:$16 sps:$4 sm:$0xff]  }
 0x744   :  { %7346 = vmatprep.subr.bf16.mxu0 %v9571_v48  ;;  %7432 = vmatprep.subr.bf16.mxu1 %v9574_v49  ;;  %v9652_v43 = vld [vmem:[#allocation17 + $0x1cc] ss:$16 sps:$4 sm:$0xff]   ;;  %v9647_v44 = vld [vmem:[#allocation17 + $0x1c0] ss:$16 sps:$4 sm:$0xff]   ;;  %v9650_v45 = vld [vmem:[#allocation17 + $0x1c8] ss:$16 sps:$4 sm:$0xff]  }
 0x745   :  { %v9655_v46 = vld [vmem:[#allocation17 + $0x1e4] ss:$16 sps:$4 sm:$0xff]   ;;  %v9658_v47 = vld [vmem:[#allocation17 + $0x1ec] ss:$16 sps:$4 sm:$0xff]   ;;  %v9653_v48 = vld [vmem:[#allocation17 + $0x1e0] ss:$16 sps:$4 sm:$0xff]  }
 0x746   :  { %v9656_v49 = vld [vmem:[#allocation17 + $0x1e8] ss:$16 sps:$4 sm:$0xff]  }
 0x747   :  { %7347 = vmatpush1.bf16.msra.mxu0 %v9569_v50  ;;  %7433 = vmatpush1.bf16.msra.mxu1 %v9572_v51  ;;  %v9661_v50 = vld [vmem:[#allocation17 + $0x204] ss:$16 sps:$4 sm:$0xff]   ;;  %v9664_v51 = vld [vmem:[#allocation17 + $0x20c] ss:$16 sps:$4 sm:$0xff]  }
 0x748   :  { %7348 = vmatprep.subr.bf16.mxu0 %v9577_v52  ;;  %7434 = vmatprep.subr.bf16.mxu1 %v9580_v57  ;;  %v4539_v52 = vsub.s32 4, %v10296_v15  ;;  %v4547_v57 = vsub.s32 6, %v10296_v15 }
 0x74b   :  { %7349 = vmatpush1.bf16.msra.mxu0 %v9575_v56  ;;  %7435 = vmatpush1.bf16.msra.mxu1 %v9578_v53  ;;  %v4543_v56 = vsub.s32 5, %v10296_v15  ;;  %v4551_v53 = vsub.s32 7, %v10296_v15 }
 0x74c   :  { %7350 = vmatprep.subr.bf16.mxu0 %v9583_v54  ;;  %7436 = vmatprep.subr.bf16.mxu1 %v9586_v55  ;;  %v4540_v54 = vrot.slane %v10385_v9, %v4539_v52  ;;  %v4548_v55 = vrot.slane %v10385_v9, %v4547_v57  ;;  %v9695_v52 = vld [vmem:[#allocation17 + $0x2c0] ss:$16 sps:$4 sm:$0xff]   ;;  %v9698_v57 = vld [vmem:[#allocation17 + $0x2c8] ss:$16 sps:$4 sm:$0xff]  }
 0x74f   :  { %7351 = vmatpush1.bf16.msra.mxu0 %v9581_v34  ;;  %7437 = vmatpush1.bf16.msra.mxu1 %v9584_v58  ;;  %v4544_v34 = vrot.slane %v10385_v9, %v4543_v56  ;;  %v4552_v58 = vrot.slane %v10385_v9, %v4551_v53  ;;  %v9703_v56 = vld [vmem:[#allocation17 + $0x2e4] ss:$16 sps:$4 sm:$0xff]   ;;  %v9706_v53 = vld [vmem:[#allocation17 + $0x2ec] ss:$16 sps:$4 sm:$0xff]  }
 0x750   :  { %7352 = vmatprep.subr.bf16.mxu0 %v9589_v60  ;;  %7438 = vmatprep.subr.bf16.mxu1 %v9592_v0 }
 0x753   :  { %7353 = vmatpush1.bf16.msra.mxu0 %v9587_v61  ;;  %7439 = vmatpush1.bf16.msra.mxu1 %v9590_v1 }
 0x754   :  { %7354 = vmatprep.subr.bf16.mxu0 %v9595_v2  ;;  %7440 = vmatprep.subr.bf16.mxu1 %v9598_v3 }
 0x757   :  { %7355 = vmatpush1.bf16.msra.mxu0 %v9593_v4  ;;  %7441 = vmatpush1.bf16.msra.mxu1 %v9596_v5 }
 0x758   :  { %7356 = vmatprep.subr.bf16.mxu0 %v9601_v6  ;;  %7442 = vmatprep.subr.bf16.mxu1 %v9604_v7 }
 0x75b   :  { %7357 = vmatpush1.bf16.msra.mxu0 %v9599_v8  ;;  %7443 = vmatpush1.bf16.msra.mxu1 %v9602_v59 }
 0x75c   :  { %7358 = vmatprep.subr.bf16.mxu0 %v9607_v10  ;;  %7444 = vmatprep.subr.bf16.mxu1 %v9610_v11 }
 0x75f   :  { %7359 = vmatpush1.bf16.msra.mxu0 %v9605_v12  ;;  %7445 = vmatpush1.bf16.msra.mxu1 %v9608_v14 }
 0x760   :  { %7360 = vmatprep.subr.bf16.mxu0 %v9613_v16  ;;  %7446 = vmatprep.subr.bf16.mxu1 %v9616_v19 }
 0x763   :  { %7361 = vmatpush1.bf16.msra.mxu0 %v9611_v21  ;;  %7447 = vmatpush1.bf16.msra.mxu1 %v9614_v23 }
 0x764   :  { %7362 = vmatprep.subr.bf16.mxu0 %v9619_v24  ;;  %7448 = vmatprep.subr.bf16.mxu1 %v9622_v25 }
 0x767   :  { %7363 = vmatpush1.bf16.msra.mxu0 %v9617_v26  ;;  %7449 = vmatpush1.bf16.msra.mxu1 %v9620_v27 }
 0x768   :  { %7364 = vmatprep.subr.bf16.mxu0 %v9625_v28  ;;  %7450 = vmatprep.subr.bf16.mxu1 %v9628_v29  ;;  %v9659_v29 = vld [vmem:[#allocation17 + $0x200] ss:$16 sps:$4 sm:$0xff]  }
 0x76b   :  { %7365 = vmatpush1.bf16.msra.mxu0 %v9623_v30  ;;  %7451 = vmatpush1.bf16.msra.mxu1 %v9626_v31  ;;  %v9662_v30 = vld [vmem:[#allocation17 + $0x208] ss:$16 sps:$4 sm:$0xff]  }
 0x76c   :  { %7366 = vmatprep.subr.bf16.mxu0 %v9631_v32  ;;  %7452 = vmatprep.subr.bf16.mxu1 %v9634_v33  ;;  %v9667_v32 = vld [vmem:[#allocation17 + $0x224] ss:$16 sps:$4 sm:$0xff]   ;;  %v9670_v33 = vld [vmem:[#allocation17 + $0x22c] ss:$16 sps:$4 sm:$0xff]  }
 0x76f   :  { %7367 = vmatpush1.bf16.msra.mxu0 %v9629_v35  ;;  %7453 = vmatpush1.bf16.msra.mxu1 %v9632_v36  ;;  %v9665_v35 = vld [vmem:[#allocation17 + $0x220] ss:$16 sps:$4 sm:$0xff]   ;;  %v9668_v36 = vld [vmem:[#allocation17 + $0x228] ss:$16 sps:$4 sm:$0xff]  }
 0x770   :  { %7368 = vmatprep.subr.bf16.mxu0 %v9637_v37  ;;  %7454 = vmatprep.subr.bf16.mxu1 %v9640_v38  ;;  %v9673_v37 = vld [vmem:[#allocation17 + $0x244] ss:$16 sps:$4 sm:$0xff]   ;;  %v9676_v38 = vld [vmem:[#allocation17 + $0x24c] ss:$16 sps:$4 sm:$0xff]  }
 0x773   :  { %7369 = vmatpush1.bf16.msra.mxu0 %v9635_v39  ;;  %7455 = vmatpush1.bf16.msra.mxu1 %v9638_v62  ;;  %v9671_v39 = vld [vmem:[#allocation17 + $0x240] ss:$16 sps:$4 sm:$0xff]   ;;  %v9674_v62 = vld [vmem:[#allocation17 + $0x248] ss:$16 sps:$4 sm:$0xff]  }
 0x774   :  { %7370 = vmatprep.subr.bf16.mxu0 %v9643_v40  ;;  %7456 = vmatprep.subr.bf16.mxu1 %v9646_v13  ;;  %v9679_v40 = vld [vmem:[#allocation17 + $0x264] ss:$16 sps:$4 sm:$0xff]   ;;  %v9682_v13 = vld [vmem:[#allocation17 + $0x26c] ss:$16 sps:$4 sm:$0xff]  }
 0x777   :  { %7371 = vmatpush1.bf16.msra.mxu0 %v9641_v41  ;;  %7457 = vmatpush1.bf16.msra.mxu1 %v9644_v42  ;;  %v9677_v41 = vld [vmem:[#allocation17 + $0x260] ss:$16 sps:$4 sm:$0xff]   ;;  %v9680_v42 = vld [vmem:[#allocation17 + $0x268] ss:$16 sps:$4 sm:$0xff]  }
 0x778   :  { %7372 = vmatprep.subr.bf16.mxu0 %v9649_v63  ;;  %7458 = vmatprep.subr.bf16.mxu1 %v9652_v43  ;;  %v9685_v63 = vld [vmem:[#allocation17 + $0x284] ss:$16 sps:$4 sm:$0xff]   ;;  %v9688_v43 = vld [vmem:[#allocation17 + $0x28c] ss:$16 sps:$4 sm:$0xff]  }
 0x77b   :  { %7373 = vmatpush1.bf16.msra.mxu0 %v9647_v44  ;;  %7459 = vmatpush1.bf16.msra.mxu1 %v9650_v45  ;;  %v9683_v44 = vld [vmem:[#allocation17 + $0x280] ss:$16 sps:$4 sm:$0xff]   ;;  %v9686_v45 = vld [vmem:[#allocation17 + $0x288] ss:$16 sps:$4 sm:$0xff]  }
 0x77c   :  { %7374 = vmatprep.subr.bf16.mxu0 %v9655_v46  ;;  %7460 = vmatprep.subr.bf16.mxu1 %v9658_v47  ;;  %v9691_v46 = vld [vmem:[#allocation17 + $0x2a4] ss:$16 sps:$4 sm:$0xff]   ;;  %v9694_v47 = vld [vmem:[#allocation17 + $0x2ac] ss:$16 sps:$4 sm:$0xff]  }
 0x77f   :  { %7375 = vmatpush1.bf16.msra.mxu0 %v9653_v48  ;;  %7461 = vmatpush1.bf16.msra.mxu1 %v9656_v49  ;;  %v9689_v48 = vld [vmem:[#allocation17 + $0x2a0] ss:$16 sps:$4 sm:$0xff]   ;;  %v9692_v49 = vld [vmem:[#allocation17 + $0x2a8] ss:$16 sps:$4 sm:$0xff]  }
 0x780   :  { %7387 = vmatprep.subr.bf16.mxu0 %v9661_v50  ;;  %7473 = vmatprep.subr.bf16.mxu1 %v9664_v51  ;;  %v9697_v50 = vld [vmem:[#allocation17 + $0x2c4] ss:$16 sps:$4 sm:$0xff]   ;;  %v9700_v51 = vld [vmem:[#allocation17 + $0x2cc] ss:$16 sps:$4 sm:$0xff]  }
 0x7b7   :  { %v6090_v60 = vpop.f32.mrb[24].mxu0 }
 0x7b8   :  { %v8659_v0 = vadd.f32 %v6090_v60, %v4540_v54  ;;  %v6176_v61 = vpop.f32.mrb[24].mxu1  ;;  %v6092_v1 = vpop.f32.mrb[25].mxu0  ;;  %v9707_v60 = vld [vmem:[#allocation17 + $0x300] ss:$16 sps:$4 sm:$0xff]  }
 0x7b9   :  { %v8663_v2 = vadd.f32 %v6176_v61, %v4548_v55  ;;  %v8660_v3 = vadd.f32 %v6092_v1, %v4544_v34  ;;  %v6178_v4 = vpop.f32.mrb[25].mxu1  ;;  %v6094_v5 = vpop.f32.mrb[26].mxu0  ;;  %v9715_v61 = vld [vmem:[#allocation17 + $0x324] ss:$16 sps:$4 sm:$0xff]   ;;  %v9718_v1 = vld [vmem:[#allocation17 + $0x32c] ss:$16 sps:$4 sm:$0xff]  }
 0x7ba   :  { %v8664_v6 = vadd.f32 %v6178_v4, %v4552_v58  ;;  %v8661_v7 = vadd.f32 %v6094_v5, %v4540_v54  ;;  %v6180_v8 = vpop.f32.mrb[26].mxu1  ;;  %v6096_v15 = vpop.f32.mrb[27].mxu0  ;;  %v6189_v12 = vmax.f32 %v8659_v0, 0.0  ;;  %v9701_v54 = vld [vmem:[#allocation17 + $0x2e0] ss:$16 sps:$4 sm:$0xff]  }
 0x7bb   :  { %v8665_v59 = vadd.f32 %v6180_v8, %v4548_v55  ;;  %v8662_v10 = vadd.f32 %v6096_v15, %v4544_v34  ;;  %v6182_v11 = vpop.f32.mrb[27].mxu1  ;;  %v6191_v19 = vmax.f32 %v8663_v2, 0.0  ;;  %v6190_v9 = vmax.f32 %v8660_v3, 0.0  ;;  %v9704_v55 = vld [vmem:[#allocation17 + $0x2e8] ss:$16 sps:$4 sm:$0xff]  }
 0x7bc   :  { %v6197_v14 = vmax.f32 %v8661_v7, 0.0  ;;  %v8666_v16 = vadd.f32 %v6182_v11, %v4552_v58  ;;  %v6192_v24 = vmax.f32 %v8664_v6, 0.0  ;;  %v9709_v34 = vld [vmem:[#allocation17 + $0x304] ss:$16 sps:$4 sm:$0xff]   ;;  %v9712_v58 = vld [vmem:[#allocation17 + $0x30c] ss:$16 sps:$4 sm:$0xff]  }
 0x7bd   :  { %v6199_v21 = vmax.f32 %v8665_v59, 0.0  ;;  %v6198_v23 = vmax.f32 %v8662_v10, 0.0  ;;  %v9710_v0 = vld [vmem:[#allocation17 + $0x308] ss:$16 sps:$4 sm:$0xff]   ;;  %v9713_v2 = vld [vmem:[#allocation17 + $0x320] ss:$16 sps:$4 sm:$0xff]  }
 0x7be   :  { %v6205_v25 = vpack.c.bf16 %v6197_v14, %v6189_v12  ;;  %v6200_v26 = vmax.f32 %v8666_v16, 0.0  ;;  %v9716_v3 = vld [vmem:[#allocation17 + $0x328] ss:$16 sps:$4 sm:$0xff]   ;;  %v9721_v4 = vld [vmem:[#allocation17 + $0x344] ss:$16 sps:$4 sm:$0xff]  }
 0x7bf   :  { %v10403_v27 = vpack.c.bf16 %v6199_v21, %v6191_v19  ;;  %v6206_v28 = vpack.c.bf16 %v6198_v23, %v6190_v9  ;;  %v9724_v5 = vld [vmem:[#allocation17 + $0x34c] ss:$16 sps:$4 sm:$0xff]   ;;  %v9719_v6 = vld [vmem:[#allocation17 + $0x340] ss:$16 sps:$4 sm:$0xff]   ;;  %v9722_v7 = vld [vmem:[#allocation17 + $0x348] ss:$16 sps:$4 sm:$0xff]  }
 0x7c0   :  { %v6208_v31 = vpack.c.bf16 %v6200_v26, %v6192_v24  ;;  %v9727_v8 = vld [vmem:[#allocation17 + $0x364] ss:$16 sps:$4 sm:$0xff]   ;;  %v9730_v15 = vld [vmem:[#allocation17 + $0x36c] ss:$16 sps:$4 sm:$0xff]   ;;  %v9725_v59 = vld [vmem:[#allocation17 + $0x360] ss:$16 sps:$4 sm:$0xff]  }
 0x7c1   :  { %7376 = vmatprep.mubr.bf16.mxu0 %v6206_v28  ;;  %7462 = vmatprep.mubr.bf16.mxu1 %v6206_v28  ;;  %v9728_v10 = vld [vmem:[#allocation17 + $0x368] ss:$16 sps:$4 sm:$0xff]   ;;  %v9733_v11 = vld [vmem:[#allocation17 + $0x384] ss:$16 sps:$4 sm:$0xff]   ;;  %v9736_v12 = vld [vmem:[#allocation17 + $0x38c] ss:$16 sps:$4 sm:$0xff]  }
 0x7c2   :  { %7377 = vmatmul.mubr.bf16.vlgmr.msra.gmra.mrb[32].mxu0 %v6205_v25  ;;  %7463 = vmatmul.mubr.bf16.vlgmr.msra.gmra.mrb[32].mxu1 %v6205_v25  ;;  %v9731_v14 = vld [vmem:[#allocation17 + $0x380] ss:$16 sps:$4 sm:$0xff]   ;;  %v9734_v16 = vld [vmem:[#allocation17 + $0x388] ss:$16 sps:$4 sm:$0xff]   ;;  %v9739_v19 = vld [vmem:[#allocation17 + $0x3a4] ss:$16 sps:$4 sm:$0xff]  }
 0x7c3   :  { %7388 = vmatpush1.bf16.msra.mxu0 %v9659_v29  ;;  %7474 = vmatpush1.bf16.msra.mxu1 %v9662_v30  ;;  %v9742_v9 = vld [vmem:[#allocation17 + $0x3ac] ss:$16 sps:$4 sm:$0xff]   ;;  %v9737_v21 = vld [vmem:[#allocation17 + $0x3a0] ss:$16 sps:$4 sm:$0xff]   ;;  %v9740_v23 = vld [vmem:[#allocation17 + $0x3a8] ss:$16 sps:$4 sm:$0xff]  }
 0x7c4   :  { %7419 = vmatprep.mubr.bf16.mxu0 %v6208_v31  ;;  %7505 = vmatprep.mubr.bf16.mxu1 %v6208_v31  ;;  %v9745_v24 = vld [vmem:[#allocation17 + $0x3c4] ss:$16 sps:$4 sm:$0xff]   ;;  %v9748_v25 = vld [vmem:[#allocation17 + $0x3cc] ss:$16 sps:$4 sm:$0xff]   ;;  %v9743_v26 = vld [vmem:[#allocation17 + $0x3c0] ss:$16 sps:$4 sm:$0xff]  }
 0x7c5   :  { %7389 = vmatprep.subr.bf16.mxu0 %v9667_v32  ;;  %7475 = vmatprep.subr.bf16.mxu1 %v9670_v33  ;;  %v9746_v28 = vld [vmem:[#allocation17 + $0x3c8] ss:$16 sps:$4 sm:$0xff]   ;;  %v9751_v29 = vld [vmem:[#allocation17 + $0x3e4] ss:$16 sps:$4 sm:$0xff]   ;;  %v9754_v30 = vld [vmem:[#allocation17 + $0x3ec] ss:$16 sps:$4 sm:$0xff]  }
 0x7c6   :  { %v9749_v31 = vld [vmem:[#allocation17 + $0x3e0] ss:$16 sps:$4 sm:$0xff]   ;;  %v9752_v32 = vld [vmem:[#allocation17 + $0x3e8] ss:$16 sps:$4 sm:$0xff]  }
 0x7c7   :  { %7390 = vmatpush1.bf16.msra.mxu0 %v9665_v35  ;;  %7476 = vmatpush1.bf16.msra.mxu1 %v9668_v36  ;;  %v8414_v36 = vld [vmem:[%s10446_s14] ss:$0 sm:$0xff]  ;;  %s10062_s14 = smov [#allocation19]  }
 0x7c8   :  { %7391 = vmatprep.subr.bf16.mxu0 %v9673_v37  ;;  %7477 = vmatprep.subr.bf16.mxu1 %v9676_v38  ;;  %s7619_s25 = sshll.u32 %s10062_s14, 4  ;;  %s7620_s25 = int_to_ptr.vmem [resolvable:$true] %s7619_s25 }
 0x7c9   :  { %s10007_s11 = scalar_lea.vmem %s7620_s25, 1024  ;;  %p10012_p11 = scmp.lt.s32.totalorder %s7620_s25, %s7620_s25 }
 0x7ca   :  { %p10008_p10 = scmp.ne.s32.totalorder %s7620_s25, %s10007_s11  ;;  %p10013_p12 = scmp.lt.s32.totalorder %s10007_s11, %s10007_s11 }
 0x7cb   :  { %7392 = vmatpush1.bf16.msra.mxu0 %v9671_v39  ;;  %7478 = vmatpush1.bf16.msra.mxu1 %v9674_v62 }
 0x7cc   :  { %7393 = vmatprep.subr.bf16.mxu0 %v9679_v40  ;;  %7479 = vmatprep.subr.bf16.mxu1 %v9682_v13  ;;  %p10014_p13 = por %p10013_p12, %p10012_p11 }
 0x7ce   :  { %p10015_p0 = pnand %p10014_p13, %p10008_p10 }
 0x7cf   :  { %7394 = vmatpush1.bf16.msra.mxu0 %v9677_v41  ;;  %7480 = vmatpush1.bf16.msra.mxu1 %v9680_v42 }
 0x7d0   :  { %7395 = vmatprep.subr.bf16.mxu0 %v9685_v63  ;;  %7481 = vmatprep.subr.bf16.mxu1 %v9688_v43 }
 0x7d3   :  { %7396 = vmatpush1.bf16.msra.mxu0 %v9683_v44  ;;  %7482 = vmatpush1.bf16.msra.mxu1 %v9686_v45 }
 0x7d4   :  { %7397 = vmatprep.subr.bf16.mxu0 %v9691_v46  ;;  %7483 = vmatprep.subr.bf16.mxu1 %v9694_v47  ;;  %v6682_v47 = vld [vmem:[%s10460_s24] sm:$0xf] }
 0x7d7   :  { %7398 = vmatpush1.bf16.msra.mxu0 %v9689_v48  ;;  %7484 = vmatpush1.bf16.msra.mxu1 %v9692_v49  ;;  %v6687_v48 = vrot.slane %v6682_v47, %v10302_v17  ;;  %v6691_v49 = vrot.slane %v6682_v47, %v10305_v18 }
 0x7d8   :  { %7399 = vmatprep.subr.bf16.mxu0 %v9697_v50  ;;  %7485 = vmatprep.subr.bf16.mxu1 %v9700_v51  ;;  %v6695_v51 = vrot.slane %v6682_v47, %v10309_v20 }
 0x7db   :  { %7400 = vmatpush1.bf16.msra.mxu0 %v9695_v52  ;;  %7486 = vmatpush1.bf16.msra.mxu1 %v9698_v57 }
 0x7dc   :  { %7401 = vmatprep.subr.bf16.mxu0 %v9703_v56  ;;  %7487 = vmatprep.subr.bf16.mxu1 %v9706_v53 }
 0x7df   :  { %7402 = vmatpush1.bf16.msra.mxu0 %v9701_v54  ;;  %7488 = vmatpush1.bf16.msra.mxu1 %v9704_v55  ;;  %v6699_v55 = vrot.slane %v6682_v47, %v10313_v22 }
 0x7e0   :  { %7403 = vmatprep.subr.bf16.mxu0 %v9709_v34  ;;  %7489 = vmatprep.subr.bf16.mxu1 %v9712_v58 }
 0x7e3   :  { %7404 = vmatpush1.bf16.msra.mxu0 %v9707_v60  ;;  %7490 = vmatpush1.bf16.msra.mxu1 %v9710_v0 }
 0x7e4   :  { %7405 = vmatprep.subr.bf16.mxu0 %v9715_v61  ;;  %7491 = vmatprep.subr.bf16.mxu1 %v9718_v1 }
 0x7e7   :  { %7406 = vmatpush1.bf16.msra.mxu0 %v9713_v2  ;;  %7492 = vmatpush1.bf16.msra.mxu1 %v9716_v3 }
 0x7e8   :  { %7407 = vmatprep.subr.bf16.mxu0 %v9721_v4  ;;  %7493 = vmatprep.subr.bf16.mxu1 %v9724_v5 }
 0x7eb   :  { %7408 = vmatpush1.bf16.msra.mxu0 %v9719_v6  ;;  %7494 = vmatpush1.bf16.msra.mxu1 %v9722_v7 }
 0x7ec   :  { %7409 = vmatprep.subr.bf16.mxu0 %v9727_v8  ;;  %7495 = vmatprep.subr.bf16.mxu1 %v9730_v15 }
 0x7ef   :  { %7410 = vmatpush1.bf16.msra.mxu0 %v9725_v59  ;;  %7496 = vmatpush1.bf16.msra.mxu1 %v9728_v10 }
 0x7f0   :  { %7411 = vmatprep.subr.bf16.mxu0 %v9733_v11  ;;  %7497 = vmatprep.subr.bf16.mxu1 %v9736_v12 }
 0x7f3   :  { %7412 = vmatpush1.bf16.msra.mxu0 %v9731_v14  ;;  %7498 = vmatpush1.bf16.msra.mxu1 %v9734_v16 }
 0x7f4   :  { %7413 = vmatprep.subr.bf16.mxu0 %v9739_v19  ;;  %7499 = vmatprep.subr.bf16.mxu1 %v9742_v9 }
 0x7f7   :  { %7414 = vmatpush1.bf16.msra.mxu0 %v9737_v21  ;;  %7500 = vmatpush1.bf16.msra.mxu1 %v9740_v23 }
 0x7f8   :  { %7415 = vmatprep.subr.bf16.mxu0 %v9745_v24  ;;  %7501 = vmatprep.subr.bf16.mxu1 %v9748_v25 }
 0x7fb   :  { %7416 = vmatpush1.bf16.msra.mxu0 %v9743_v26  ;;  %7502 = vmatpush1.bf16.msra.mxu1 %v9746_v28 }
 0x7fc   :  { %7417 = vmatprep.subr.bf16.mxu0 %v9751_v29  ;;  %7503 = vmatprep.subr.bf16.mxu1 %v9754_v30 }
 0x7ff   :  { %7418 = vmatpush1.bf16.msra.mxu0 %v9749_v31  ;;  %7504 = vmatpush1.bf16.msra.mxu1 %v9752_v32 }
 0x802   :  { %7420 = vmatmul.mubr.bf16.vlgmr.msra.gmra.mrb[32].mxu0 %v10403_v27  ;;  %7506 = vmatmul.mubr.bf16.vlgmr.msra.gmra.mrb[32].mxu1 %v10403_v27 }
 0x815   :  { %v8591_v33 = vpop.f32.mrb[28].mxu0  ;;  %v8613_v35 = vpop.f32.mrb[28].mxu1 }
 0x816   :  { %v8592_v37 = vpop.f32.mrb[29].mxu0  ;;  %v8614_v38 = vpop.f32.mrb[29].mxu1 }
 0x817   :  { %v8593_v39 = vadd.f32 %v8592_v37, %v8591_v33  ;;  %v8615_v62 = vadd.f32 %v8614_v38, %v8613_v35  ;;  %v8594_v40 = vpop.f32.mrb[30].mxu0  ;;  %v8616_v13 = vpop.f32.mrb[30].mxu1 }
 0x818   :  { %v8595_v41 = vpop.f32.mrb[31].mxu0  ;;  %v8617_v42 = vpop.f32.mrb[31].mxu1 }
 0x819   :  { %v6507_v63 = vadd.f32 %v8593_v39, %v8414_v36  ;;  %v8596_v43 = vadd.f32 %v8595_v41, %v8594_v40  ;;  %v8618_v44 = vadd.f32 %v8617_v42, %v8616_v13 }
 0x81b   :  { %v6548_v45 = vadd.f32 %v8615_v62, %v6507_v63  ;;  %v6510_v46 = vadd.f32 %v8596_v43, %v8414_v36 }
 0x81d   :  { %v6551_v27 = vadd.f32 %v8618_v44, %v6510_v46 }
 0x8d5   :  { %v7421_v50 = vpop.f32.mrb[32].mxu0  ;;  %v7507_v52 = vpop.f32.mrb[32].mxu1 }
 0x8d6   :  { %v8667_v57 = vadd.f32 %v7421_v50, %v6687_v48  ;;  %v7423_v56 = vpop.f32.mrb[33].mxu0  ;;  %v7509_v53 = vpop.f32.mrb[33].mxu1  ;;  %v8671_v1 = vadd.f32 %v7507_v52, %v6695_v51 }
 0x8d7   :  { %v8668_v54 = vadd.f32 %v7423_v56, %v6691_v49  ;;  %v7425_v34 = vpop.f32.mrb[34].mxu0  ;;  %v7511_v58 = vpop.f32.mrb[34].mxu1  ;;  %v8672_v3 = vadd.f32 %v7509_v53, %v6699_v55 }
 0x8d8   :  { %v8669_v60 = vadd.f32 %v7425_v34, %v6687_v48  ;;  %v7427_v0 = vpop.f32.mrb[35].mxu0  ;;  %v7513_v61 = vpop.f32.mrb[35].mxu1  ;;  %v8673_v4 = vadd.f32 %v7511_v58, %v6695_v51 }
 0x8d9   :  { %v7516_v2 = vadd.f32 %v8668_v54, %v8667_v57  ;;  %v8670_v17 = vadd.f32 %v7427_v0, %v6691_v49  ;;  %v8674_v6 = vadd.f32 %v7513_v61, %v6699_v55 }
 0x8db   :  { %v7518_v18 = vadd.f32 %v8671_v1, %v7516_v2  ;;  %v7517_v5 = vadd.f32 %v8670_v17, %v8669_v60 }
 0x8dd   :  { %v7520_v20 = vadd.f32 %v8672_v3, %v7518_v18  ;;  %v7519_v7 = vadd.f32 %v8673_v4, %v7517_v5 }
 0x8df   :  { %v7522_v8 = vmul.f32 0.25, %v7520_v20  ;;  %v7521_v15 = vadd.f32 %v8674_v6, %v7519_v7 }
 0x8e1   :  { %v7524_v59 = vsub.f32 %v6548_v45, %v7522_v8  ;;  %v7523_v10 = vmul.f32 0.25, %v7521_v15 }
 0x8e3   :  { %v7525_v22 = vsub.f32 %v6551_v27, %v7523_v10  ;;  %v7548_v11 = vadd.f32 %v8668_v54, %v7524_v59  ;;  %v7526_v12 = vadd.f32 %v8667_v57, %v7524_v59  ;;  %v7570_v14 = vadd.f32 %v8671_v1, %v7524_v59 }
 0x8e4   :  { %v7592_v16 = vadd.f32 %v8672_v3, %v7524_v59 }
 0x8e5   :  { %7550 = vmax.xlane.f32.xlu1 %v7548_v11  ;;  %7528 = vmax.xlane.f32.xlu0 %v7526_v12  ;;  %v7549_v19 = vadd.f32 %v8670_v17, %v7525_v22  ;;  %v7571_v9 = vadd.f32 %v8673_v4, %v7525_v22  ;;  %v7527_v21 = vadd.f32 %v8669_v60, %v7525_v22 }
 0x8e6   :  { %v7593_v23 = vadd.f32 %v8674_v6, %v7525_v22 }
 0x8e9   :  { %7552 = vmax.xlane.f32.xlu1 %v7549_v19  ;;  %7572 = vmax.xlane.f32.xlu0 %v7570_v14 }
 0x8ed   :  { %7574 = vmax.xlane.f32.xlu1 %v7571_v9  ;;  %7530 = vmax.xlane.f32.xlu0 %v7527_v21 }
 0x8f1   :  { %7596 = vmax.xlane.f32.xlu1 %v7593_v23  ;;  %7594 = vmax.xlane.f32.xlu0 %v7592_v16 }
 0x972   :  { %v7551_v24 = vpop.xlane.xlu1 %7550  ;;  %v7529_v25 = vpop.xlane.xlu0 %7528 }
 0x973   :  { %v7532_v26 = vsub.f32 %v7526_v12, %v7529_v25  ;;  %v7554_v28 = vsub.f32 %v7548_v11, %v7551_v24 }
 0x975   :  { %v7534_v29 = vmul.f32 1.442695, %v7532_v26  ;;  %v7556_v33 = vmul.f32 1.442695, %v7554_v28 }
 0x976   :  { %v7553_v30 = vpop.xlane.xlu1 %7552  ;;  %v7573_v31 = vpop.xlane.xlu0 %7572 }
 0x977   :  { %v7576_v32 = vsub.f32 %v7570_v14, %v7573_v31  ;;  %9755 = vpow2.f32 %v7534_v29  ;;  %v7555_v36 = vsub.f32 %v7549_v19, %v7553_v30 }
 0x978   :  { %9757 = vpow2.f32 %v7556_v33 }
 0x979   :  { %v7578_v37 = vmul.f32 1.442695, %v7576_v32  ;;  %v7558_v13 = vmul.f32 1.442695, %v7555_v36 }
 0x97a   :  { %v7531_v35 = vpop.xlane.xlu0 %7530  ;;  %v7575_v38 = vpop.xlane.xlu1 %7574 }
 0x97b   :  { %v7533_v39 = vsub.f32 %v7527_v21, %v7531_v35  ;;  %9759 = vpow2.f32 %v7578_v37  ;;  %v7577_v42 = vsub.f32 %v7571_v9, %v7575_v38 }
 0x97d   :  { %v7536_v62 = vmul.f32 1.442695, %v7533_v39  ;;  %v7580_v45 = vmul.f32 1.442695, %v7577_v42 }
 0x97e   :  { %v7595_v40 = vpop.xlane.xlu0 %7594  ;;  %v7597_v63 = vpop.xlane.xlu1 %7596 }
 0x97f   :  { %v7598_v41 = vsub.f32 %v7592_v16, %v7595_v40  ;;  %9761 = vpow2.f32 %v7536_v62  ;;  %v7599_v46 = vsub.f32 %v7593_v23, %v7597_v63 }
 0x980   :  { %9763 = vpow2.f32 %v7558_v13 }
 0x981   :  { %v7600_v43 = vmul.f32 1.442695, %v7598_v41  ;;  %v9756_v44 = vpop.eup %9755  ;;  %v7602_v47 = vmul.f32 1.442695, %v7599_v46 }
 0x982   :  { %7538 = vadd.xlane.f32.xlu0 %v9756_v44  ;;  %v9758_v27 = vpop.eup %9757 }
 0x983   :  { %9765 = vpow2.f32 %v7600_v43 }
 0x984   :  { %9767 = vpow2.f32 %v7580_v45 }
 0x985   :  { %v9760_v48 = vpop.eup %9759  ;;  %9769 = vpow2.f32 %v7602_v47 }
 0x986   :  { %7560 = vadd.xlane.f32.xlu0 %v9758_v27 }
 0x989   :  { %v9762_v49 = vpop.eup %9761 }
 0x98a   :  { %7582 = vadd.xlane.f32.xlu0 %v9760_v48  ;;  %7540 = vadd.xlane.f32.xlu1 %v9762_v49  ;;  %v9764_v50 = vpop.eup %9763 }
 0x98d   :  { %v9766_v51 = vpop.eup %9765 }
 0x98e   :  { %7562 = vadd.xlane.f32.xlu1 %v9764_v50  ;;  %7604 = vadd.xlane.f32.xlu0 %v9766_v51  ;;  %v9768_v52 = vpop.eup %9767 }
 0x98f   :  { %v9770_v57 = vpop.eup %9769 }
 0x992   :  { %7584 = vadd.xlane.f32.xlu1 %v9768_v52 }
 0x996   :  { %7606 = vadd.xlane.f32.xlu1 %v9770_v57 }
 0xa0f   :  { %v7539_v56 = vpop.xlane.xlu0 %7538 }
 0xa10   :  { %9771 = vrcp.f32 %v7539_v56 }
 0xa13   :  { %v7561_v53 = vpop.xlane.xlu0 %7560 }
 0xa14   :  { %9773 = vrcp.f32 %v7561_v53 }
 0xa17   :  { %v7541_v54 = vpop.xlane.xlu1 %7540  ;;  %v7583_v55 = vpop.xlane.xlu0 %7582 }
 0xa18   :  { %9775 = vrcp.f32 %v7541_v54 }
 0xa19   :  { %9777 = vrcp.f32 %v7583_v55 }
 0xa1a   :  { %v9772_v34 = vpop.eup %9771 }
 0xa1b   :  { %v7543_v58 = vmul.f32 %v9772_v34, %v9756_v44  ;;  %v7563_v60 = vpop.xlane.xlu1 %7562  ;;  %v7605_v0 = vpop.xlane.xlu0 %7604 }
 0xa1c   :  { %9779 = vrcp.f32 %v7563_v60 }
 0xa1d   :  { %7546 = vst [vmem:[#allocation19] sm:$0xff] %v7543_v58  ;;  %9781 = vrcp.f32 %v7605_v0 }
 0xa1e   :  { %v9774_v61 = vpop.eup %9773 }
 0xa1f   :  { %v7565_v1 = vmul.f32 %v9774_v61, %v9758_v27  ;;  %v7585_v2 = vpop.xlane.xlu1 %7584 }
 0xa20   :  { %9783 = vrcp.f32 %v7585_v2 }
 0xa21   :  { %7568 = vst [vmem:[#allocation19 + $0x8] sm:$0xff] %v7565_v1 }
 0xa22   :  { %v9776_v17 = vpop.eup %9775 }
 0xa23   :  { %v9778_v3 = vpop.eup %9777  ;;  %v7545_v18 = vmul.f32 %v9776_v17, %v9762_v49  ;;  %v7607_v4 = vpop.xlane.xlu1 %7606 }
 0xa24   :  { %v7587_v5 = vmul.f32 %v9778_v3, %v9760_v48  ;;  %9785 = vrcp.f32 %v7607_v4 }
 0xa25   :  { %7547 = vst [vmem:[#allocation19 + $0x20] sm:$0xff] %v7545_v18 }
 0xa26   :  { %v9780_v20 = vpop.eup %9779  ;;  %7590 = vst [vmem:[#allocation19 + $0x10] sm:$0xff] %v7587_v5 }
 0xa27   :  { %v9782_v6 = vpop.eup %9781  ;;  %v7567_v7 = vmul.f32 %v9780_v20, %v9764_v50 }
 0xa28   :  { %v7609_v8 = vmul.f32 %v9782_v6, %v9766_v51 }
 0xa29   :  { %7569 = vst [vmem:[#allocation19 + $0x28] sm:$0xff] %v7567_v7 }
 0xa2a   :  { %v9784_v15 = vpop.eup %9783  ;;  %7612 = vst [vmem:[#allocation19 + $0x18] sm:$0xff] %v7609_v8 }
 0xa2b   :  { %v7589_v59 = vmul.f32 %v9784_v15, %v9768_v52 }
 0xa2d   :  { %7591 = vst [vmem:[#allocation19 + $0x30] sm:$0xff] %v7589_v59 }
 0xa2e   :  { %v9786_v10 = vpop.eup %9785 }
 0xa2f   :  { %v7611_v22 = vmul.f32 %v9786_v10, %v9770_v57 }
 0xa31   :  { %7613 = vst [vmem:[#allocation19 + $0x38] sm:$0xff] %v7611_v22 }
 0xa32   :  { %10018 = shalt.err (!%p10015_p0)
}
 0xa33   :  { %s10461_s17 = sld [smem:[#allocation30_spill]] }
 0xa39   :  { %s10019_s0 = scalar_lea.hbm %s10461_s17, 1024 }
 0xa3a   :  { %p10020_p1 = scmp.ne.s32.totalorder %s10461_s17, %s10019_s0  ;;  %p10023_p2 = scmp.lt.u32.totalorder %s10019_s0, %s10461_s17 }
 0xa3c   :  { %p10025_p3 = pnand %p10023_p2, %p10020_p1 }
 0xa3e   :  { %10028 = shalt.err (!%p10025_p3)
}
 0xa3f   :  { %s10462_s28 = smov 512  }
 0xa40   :  { %7625 = dma.vmem_to_hbm [thread:$0]  %s7620_s25, 1024, %s10461_s17, [#allocation4], %s10462_s28, %s10462_s28, %s10050_s29  }
 0xa41   :  { %10041 = dma.done.wait [#allocation4], 1024  }
 0xa42   :  { %10042 = vsyncadd [#allocation4], 4294966272 }
 0xa43   :  { %7629 = vsyncpa [#allocation3], 1 }
 0xa44   :  { %7630 = vsyncpa [#allocation6], 1 }
 0xa45   :  { %7631 = vsyncpa [#allocation9], 1 }
 0xa46   :  { %7632 = vsyncpa [#allocation12], 1 }
 0xa47   :  { %7633 = vsyncpa [#allocation15], 1 }
 0xa48   :  { %7634 = vsyncpa [#allocation18], 1 }
 0xa49   :  { %7635 = vsyncpa [#allocation4], 1 }

</bundles_post_ra>
